<compile_context>
chip_gen: v7x
topology: tpu7x:2x2x1
jax: 0.10.0
libtpu: 0.0.40
codegen_flags: <defaults>
</compile_context>

<pallas_src>
import functools

import jax
import jax.numpy as jnp
from jax import lax
from jax.experimental import pallas as pl
from jax.experimental.pallas import tpu as pltpu

EPS = 1e-5


def _bn_conv_bn_kernel(x_ref, w_ref, g1_ref, b1_ref, g2_ref, b2_ref, o_ref, *,
                       transpose_out):
    # x_ref:  [M, Cin]   activations (M = N*H*W on sublanes, channels on lanes)
    # w_ref:  [Cc, Cin]  1x1-conv weight chunk, native PyTorch [Cout, Cin] layout
    # g1/b1:  [1, Cin]   BN1 affine (lane-dense rows)
    # g2/b2:  [1, Cc]    BN2 affine chunk (lane-dense rows)
    # o_ref:  [Cc, M] if transpose_out else [M, Cc]
    x = x_ref[...]
    inv_m = 1.0 / x.shape[0]

    # --- BatchNorm2d #1 (training mode: biased batch stats per input channel) ---
    # Reductions over M = axis 0 -> cheap sublane reductions.
    mean1 = jnp.sum(x, axis=0, keepdims=True) * inv_m                 # [1, Cin]
    xc = x - mean1
    var1 = jnp.sum(xc * xc, axis=0, keepdims=True) * inv_m            # [1, Cin]
    s1 = g1_ref[...] * lax.rsqrt(var1 + EPS)                          # [1, Cin]
    xh = xc * s1 + b1_ref[...]                                        # [M, Cin]

    # --- Conv2d 1x1 (bias=False): A @ B^T with both operands in native layout ---
    y = lax.dot_general(xh, w_ref[...], (((1,), (1,)), ((), ())),
                        preferred_element_type=jnp.float32)           # [M, Cc]

    # --- BatchNorm2d #2 (per output channel, reduce over M = sublanes) ---
    mean2 = jnp.sum(y, axis=0, keepdims=True) * inv_m                 # [1, Cc]
    yc = y - mean2
    var2 = jnp.sum(yc * yc, axis=0, keepdims=True) * inv_m            # [1, Cc]
    s2 = g2_ref[...] * lax.rsqrt(var2 + EPS)                          # [1, Cc]
    out = yc * s2 + b2_ref[...]                                       # [M, Cc]

    if transpose_out:
        # Single in-kernel XLU transpose so the HBM output is directly a free
        # view of NCHW (no wrapper-side transpose of the output).
        o_ref[...] = jnp.transpose(out).astype(o_ref.dtype)           # [Cc, M]
    else:
        o_ref[...] = out.astype(o_ref.dtype)                          # [M, Cc]


def _num_tensorcores_per_device():
    """2 for chips whose grid 'parallel' axes shard across TensorCores."""
    try:
        kind = getattr(jax.devices()[0], "device_kind", "").lower()
        if any(tag in kind for tag in ("v4", "v5p", "v7", "7x")):
            return 2
    except Exception:
        pass
    return 1


def _make_call(M, Cin, Cout, n_chunks, transpose_out):
    cc = Cout // n_chunks
    kernel = functools.partial(_bn_conv_bn_kernel, transpose_out=transpose_out)

    if transpose_out:
        out_shape = jax.ShapeDtypeStruct((Cout, M), jnp.float32)
        out_spec = pl.BlockSpec((cc, M), lambda i: (i, 0))
    else:
        out_shape = jax.ShapeDtypeStruct((M, Cout), jnp.float32)
        out_spec = pl.BlockSpec((M, cc), lambda i: (0, i))

    grid_spec = pltpu.PrefetchScalarGridSpec(
        num_scalar_prefetch=0,
        grid=(n_chunks,),
        in_specs=[
            pl.BlockSpec((M, Cin), lambda i: (0, 0)),    # x (re-used each step)
            pl.BlockSpec((cc, Cin), lambda i: (i, 0)),   # W chunk (native layout)
            pl.BlockSpec((1, Cin), lambda i: (0, 0)),    # gamma1
            pl.BlockSpec((1, Cin), lambda i: (0, 0)),    # beta1
            pl.BlockSpec((1, cc), lambda i: (0, i)),     # gamma2 chunk
            pl.BlockSpec((1, cc), lambda i: (0, i)),     # beta2 chunk
        ],
        out_specs=out_spec,
    )

    cost = pl.CostEstimate(
        flops=2 * M * Cin * Cout + 8 * M * (Cin + Cout),
        transcendentals=Cin + Cout,
        bytes_accessed=4 * (M * Cin + Cout * Cin + 2 * (Cin + Cout) + Cout * M),
    )

    return pl.pallas_call(
        kernel,
        out_shape=out_shape,
        grid_spec=grid_spec,
        compiler_params=pltpu.CompilerParams(
            dimension_semantics=("parallel",)),
        cost_estimate=cost,
    )


def bn_conv_bn(x_nchw, w_oihw, gamma1, beta1, gamma2, beta2):
    """x_nchw: [N, Cin, H, W]; w_oihw: [Cout, Cin, 1, 1] -> [N, Cout, H, W]."""
    N, Cin, H, W = x_nchw.shape
    Cout = w_oihw.shape[0]
    M = N * H * W

    # Tiny NHWC flatten of the 38 KB activation; the 884 KB weight stays in its
    # native [Cout, Cin] layout (free view of OIHW for a 1x1 kernel).
    x_mc = jnp.transpose(x_nchw, (0, 2, 3, 1)).reshape(M, Cin).astype(jnp.float32)
    w2d = w_oihw.reshape(Cout, Cin).astype(jnp.float32)

    args = (
        x_mc,
        w2d,
        gamma1.reshape(1, Cin).astype(jnp.float32),
        beta1.reshape(1, Cin).astype(jnp.float32),
        gamma2.reshape(1, Cout).astype(jnp.float32),
        beta2.reshape(1, Cout).astype(jnp.float32),
    )

    n_chunks = _num_tensorcores_per_device()
    if n_chunks < 1 or Cout % (n_chunks * 128) != 0:
        n_chunks = 1

    try:
        # Primary path: in-kernel transpose -> output is already [Cout, M].
        out_cm = _make_call(M, Cin, Cout, n_chunks, transpose_out=True)(*args)
    except Exception:
        # Fallback if the in-kernel [M,Cout]->[Cout,M] transpose fails to lower:
        # store lane-dense [M, Cout] and transpose the 226 KB result in XLA.
        out_mc = _make_call(M, Cin, Cout, n_chunks, transpose_out=False)(*args)
        out_cm = jnp.transpose(out_mc)

    if N == 1:
        return out_cm.reshape(N, Cout, H, W)           # free view -> NCHW
    return jnp.transpose(out_cm.reshape(Cout, N, H, W), (1, 0, 2, 3))


def _reference(x_nchw, w_oihw, gamma1, beta1, gamma2, beta2):
    """Pure-JAX reference (training-mode BN with biased batch variance)."""
    def bn(x, g, b):
        mean = jnp.mean(x, axis=(0, 2, 3), keepdims=True)
        var = jnp.mean((x - mean) ** 2, axis=(0, 2, 3), keepdims=True)
        return (x - mean) * lax.rsqrt(var + EPS) * g.reshape(1, -1, 1, 1) \
            + b.reshape(1, -1, 1, 1)

    x = bn(x_nchw, gamma1, beta1)
    y = lax.conv_general_dilated(x, w_oihw, window_strides=(1, 1),
                                 padding="VALID",
                                 dimension_numbers=("NCHW", "OIHW", "NCHW"))
    return bn(y, gamma2, beta2)


if __name__ == "__main__":
    # Shapes implied by the PyTorch module: x256 = [1, 192, 7, 7].
    N, Cin, Cout, H, W = 1, 192, 1152, 7, 7

    key = jax.random.PRNGKey(0)
    kx, kw, kg1, kb1, kg2, kb2 = jax.random.split(key, 6)

    x = jax.random.normal(kx, (N, Cin, H, W), dtype=jnp.float32)
    w = jax.random.normal(kw, (Cout, Cin, 1, 1), dtype=jnp.float32) * 0.05
    gamma1 = 1.0 + 0.1 * jax.random.normal(kg1, (Cin,), dtype=jnp.float32)
    beta1 = 0.1 * jax.random.normal(kb1, (Cin,), dtype=jnp.float32)
    gamma2 = 1.0 + 0.1 * jax.random.normal(kg2, (Cout,), dtype=jnp.float32)
    beta2 = 0.1 * jax.random.normal(kb2, (Cout,), dtype=jnp.float32)

    out = jax.block_until_ready(bn_conv_bn(x, w, gamma1, beta1, gamma2, beta2))
    ref = jax.block_until_ready(_reference(x, w, gamma1, beta1, gamma2, beta2))

    assert out.shape == (N, Cout, H, W)
    assert jnp.allclose(out, ref, atol=1e-3, rtol=1e-3)

    print("KERNEL_OK")
</pallas_src>

<mosaic_0001>
module attributes {stable_mosaic.version = 11 : i64} {
  func.func @_bn_conv_bn_kernel(%arg0: i32, %arg1: memref<49x192xf32, #tpu.memory_space<vmem>>, %arg2: memref<1152x192xf32, #tpu.memory_space<vmem>>, %arg3: memref<1x192xf32, #tpu.memory_space<vmem>>, %arg4: memref<1x192xf32, #tpu.memory_space<vmem>>, %arg5: memref<1x1152xf32, #tpu.memory_space<vmem>>, %arg6: memref<1x1152xf32, #tpu.memory_space<vmem>>, %arg7: memref<1152x49xf32, #tpu.memory_space<vmem>>) attributes {dimension_semantics = [#tpu.dimension_semantics<parallel>], iteration_bounds = array<i64: 1>, scalar_prefetch = 0 : i64, scratch_operands = 0 : i64, tpu.core_type = #tpu.core_type<tc>, window_params = [{pipeline_mode = #tpu.pipeline_mode<synchronous>, transform_indices = @transform_0, window_bounds = array<i64: 49, 192>}, {transform_indices = @transform_1, window_bounds = array<i64: 1152, 192>}, {pipeline_mode = #tpu.pipeline_mode<synchronous>, transform_indices = @transform_2, window_bounds = array<i64: 1, 192>}, {pipeline_mode = #tpu.pipeline_mode<synchronous>, transform_indices = @transform_3, window_bounds = array<i64: 1, 192>}, {transform_indices = @transform_4, window_bounds = array<i64: 1, 1152>}, {transform_indices = @transform_5, window_bounds = array<i64: 1, 1152>}, {transform_indices = @transform_6, window_bounds = array<i64: 1152, 49>}]} {
    %c0 = arith.constant 0 : index
    %c0_0 = arith.constant 0 : index
    %0 = vector.load %arg1[%c0, %c0_0] : memref<49x192xf32, #tpu.memory_space<vmem>>, vector<49x192xf32>
    %cst = arith.constant dense<0.000000e+00> : vector<192xf32>
    %1 = vector.multi_reduction <add>, %0, %cst [0] : vector<49x192xf32> to vector<192xf32>
    %2 = vector.shape_cast %1 : vector<192xf32> to vector<1x192xf32>
    %cst_1 = arith.constant 0.0204081628 : f32
    %3 = vector.broadcast %cst_1 : f32 to vector<1x192xf32>
    %4 = arith.mulf %2, %3 : vector<1x192xf32>
    %5 = vector.broadcast %4 : vector<1x192xf32> to vector<49x192xf32>
    %6 = arith.subf %0, %5 : vector<49x192xf32>
    %7 = arith.mulf %6, %6 : vector<49x192xf32>
    %cst_2 = arith.constant dense<0.000000e+00> : vector<192xf32>
    %8 = vector.multi_reduction <add>, %7, %cst_2 [0] : vector<49x192xf32> to vector<192xf32>
    %9 = vector.shape_cast %8 : vector<192xf32> to vector<1x192xf32>
    %cst_3 = arith.constant 0.0204081628 : f32
    %10 = vector.broadcast %cst_3 : f32 to vector<1x192xf32>
    %11 = arith.mulf %9, %10 : vector<1x192xf32>
    %c0_4 = arith.constant 0 : index
    %c0_5 = arith.constant 0 : index
    %12 = vector.load %arg3[%c0_4, %c0_5] : memref<1x192xf32, #tpu.memory_space<vmem>>, vector<1x192xf32>
    %cst_6 = arith.constant 9.99999974E-6 : f32
    %13 = vector.broadcast %cst_6 : f32 to vector<1x192xf32>
    %14 = arith.addf %11, %13 : vector<1x192xf32>
    %15 = math.rsqrt %14 : vector<1x192xf32>
    %16 = arith.mulf %12, %15 : vector<1x192xf32>
    %17 = vector.broadcast %16 : vector<1x192xf32> to vector<49x192xf32>
    %18 = arith.mulf %6, %17 : vector<49x192xf32>
    %c0_7 = arith.constant 0 : index
    %c0_8 = arith.constant 0 : index
    %19 = vector.load %arg4[%c0_7, %c0_8] : memref<1x192xf32, #tpu.memory_space<vmem>>, vector<1x192xf32>
    %20 = vector.broadcast %19 : vector<1x192xf32> to vector<49x192xf32>
    %21 = arith.addf %18, %20 : vector<49x192xf32>
    %c0_9 = arith.constant 0 : index
    %c0_10 = arith.constant 0 : index
    %22 = vector.load %arg2[%c0_9, %c0_10] : memref<1152x192xf32, #tpu.memory_space<vmem>>, vector<1152x192xf32>
    %cst_11 = arith.constant dense<0.000000e+00> : vector<49x1152xf32>
    %23 = tpu.matmul %21, %22, %cst_11 {dimension_numbers = #tpu.dot_dimension_numbers<[1], [1], [0], [0], [0, 0, 1, 0], [], []>} : vector<49x192xf32>, vector<1152x192xf32>, vector<49x1152xf32> -> vector<49x1152xf32>
    %cst_12 = arith.constant dense<0.000000e+00> : vector<1152xf32>
    %24 = vector.multi_reduction <add>, %23, %cst_12 [0] : vector<49x1152xf32> to vector<1152xf32>
    %25 = vector.shape_cast %24 : vector<1152xf32> to vector<1x1152xf32>
    %cst_13 = arith.constant 0.0204081628 : f32
    %26 = vector.broadcast %cst_13 : f32 to vector<1x1152xf32>
    %27 = arith.mulf %25, %26 : vector<1x1152xf32>
    %28 = vector.broadcast %27 : vector<1x1152xf32> to vector<49x1152xf32>
    %29 = arith.subf %23, %28 : vector<49x1152xf32>
    %30 = arith.mulf %29, %29 : vector<49x1152xf32>
    %cst_14 = arith.constant dense<0.000000e+00> : vector<1152xf32>
    %31 = vector.multi_reduction <add>, %30, %cst_14 [0] : vector<49x1152xf32> to vector<1152xf32>
    %32 = vector.shape_cast %31 : vector<1152xf32> to vector<1x1152xf32>
    %cst_15 = arith.constant 0.0204081628 : f32
    %33 = vector.broadcast %cst_15 : f32 to vector<1x1152xf32>
    %34 = arith.mulf %32, %33 : vector<1x1152xf32>
    %c0_16 = arith.constant 0 : index
    %c0_17 = arith.constant 0 : index
    %35 = vector.load %arg5[%c0_16, %c0_17] : memref<1x1152xf32, #tpu.memory_space<vmem>>, vector<1x1152xf32>
    %cst_18 = arith.constant 9.99999974E-6 : f32
    %36 = vector.broadcast %cst_18 : f32 to vector<1x1152xf32>
    %37 = arith.addf %34, %36 : vector<1x1152xf32>
    %38 = math.rsqrt %37 : vector<1x1152xf32>
    %39 = arith.mulf %35, %38 : vector<1x1152xf32>
    %40 = vector.broadcast %39 : vector<1x1152xf32> to vector<49x1152xf32>
    %41 = arith.mulf %29, %40 : vector<49x1152xf32>
    %c0_19 = arith.constant 0 : index
    %c0_20 = arith.constant 0 : index
    %42 = vector.load %arg6[%c0_19, %c0_20] : memref<1x1152xf32, #tpu.memory_space<vmem>>, vector<1x1152xf32>
    %43 = vector.broadcast %42 : vector<1x1152xf32> to vector<49x1152xf32>
    %44 = arith.addf %41, %43 : vector<49x1152xf32>
    %45 = tpu.transpose %44, [1, 0] : vector<49x1152xf32> -> vector<1152x49xf32>
    %c0_21 = arith.constant 0 : index
    %c0_22 = arith.constant 0 : index
    %46 = vector.load %arg7[%c0_21, %c0_22] : memref<1152x49xf32, #tpu.memory_space<vmem>>, vector<1152x49xf32>
    tpu.vector_store %arg7[%c0_21, %c0_22], %45 {strides = array<i32>} : memref<1152x49xf32, #tpu.memory_space<vmem>>, vector<1152x49xf32>,
    return
  }
  func.func @transform_0(%arg0: i32) -> (i32, i32) {
    %c0_i32 = arith.constant 0 : i32
    %c0_i32_0 = arith.constant 0 : i32
    %c0_i32_1 = arith.constant 0 : i32
    return %c0_i32, %c0_i32_0 : i32, i32
  }
  func.func @transform_1(%arg0: i32) -> (i32, i32) {
    %c0_i32 = arith.constant 0 : i32
    %c0_i32_0 = arith.constant 0 : i32
    return %arg0, %c0_i32 : i32, i32
  }
  func.func @transform_2(%arg0: i32) -> (i32, i32) {
    %c0_i32 = arith.constant 0 : i32
    %c0_i32_0 = arith.constant 0 : i32
    %c0_i32_1 = arith.constant 0 : i32
    return %c0_i32, %c0_i32_0 : i32, i32
  }
  func.func @transform_3(%arg0: i32) -> (i32, i32) {
    %c0_i32 = arith.constant 0 : i32
    %c0_i32_0 = arith.constant 0 : i32
    %c0_i32_1 = arith.constant 0 : i32
    return %c0_i32, %c0_i32_0 : i32, i32
  }
  func.func @transform_4(%arg0: i32) -> (i32, i32) {
    %c0_i32 = arith.constant 0 : i32
    %c0_i32_0 = arith.constant 0 : i32
    return %c0_i32, %arg0 : i32, i32
  }
  func.func @transform_5(%arg0: i32) -> (i32, i32) {
    %c0_i32 = arith.constant 0 : i32
    %c0_i32_0 = arith.constant 0 : i32
    return %c0_i32, %arg0 : i32, i32
  }
  func.func @transform_6(%arg0: i32) -> (i32, i32) {
    %c0_i32 = arith.constant 0 : i32
    %c0_i32_0 = arith.constant 0 : i32
    return %arg0, %c0_i32 : i32, i32
  }
}

module attributes {stable_mosaic.version = 11 : i64} {
  func.func @_bn_conv_bn_kernel(%arg0: i32, %arg1: memref<49x192xf32, #tpu.memory_space<vmem>>, %arg2: memref<1152x192xf32, #tpu.memory_space<vmem>>, %arg3: memref<1x192xf32, #tpu.memory_space<vmem>>, %arg4: memref<1x192xf32, #tpu.memory_space<vmem>>, %arg5: memref<1x1152xf32, #tpu.memory_space<vmem>>, %arg6: memref<1x1152xf32, #tpu.memory_space<vmem>>, %arg7: memref<49x1152xf32, #tpu.memory_space<vmem>>) attributes {dimension_semantics = [#tpu.dimension_semantics<parallel>], iteration_bounds = array<i64: 1>, scalar_prefetch = 0 : i64, scratch_operands = 0 : i64, tpu.core_type = #tpu.core_type<tc>, window_params = [{pipeline_mode = #tpu.pipeline_mode<synchronous>, transform_indices = @transform_0, window_bounds = array<i64: 49, 192>}, {transform_indices = @transform_1, window_bounds = array<i64: 1152, 192>}, {pipeline_mode = #tpu.pipeline_mode<synchronous>, transform_indices = @transform_2, window_bounds = array<i64: 1, 192>}, {pipeline_mode = #tpu.pipeline_mode<synchronous>, transform_indices = @transform_3, window_bounds = array<i64: 1, 192>}, {transform_indices = @transform_4, window_bounds = array<i64: 1, 1152>}, {transform_indices = @transform_5, window_bounds = array<i64: 1, 1152>}, {transform_indices = @transform_6, window_bounds = array<i64: 49, 1152>}]} {
    %c0 = arith.constant 0 : index
    %c0_0 = arith.constant 0 : index
    %0 = vector.load %arg1[%c0, %c0_0] : memref<49x192xf32, #tpu.memory_space<vmem>>, vector<49x192xf32>
    %cst = arith.constant dense<0.000000e+00> : vector<192xf32>
    %1 = vector.multi_reduction <add>, %0, %cst [0] : vector<49x192xf32> to vector<192xf32>
    %2 = vector.shape_cast %1 : vector<192xf32> to vector<1x192xf32>
    %cst_1 = arith.constant 0.0204081628 : f32
    %3 = vector.broadcast %cst_1 : f32 to vector<1x192xf32>
    %4 = arith.mulf %2, %3 : vector<1x192xf32>
    %5 = vector.broadcast %4 : vector<1x192xf32> to vector<49x192xf32>
    %6 = arith.subf %0, %5 : vector<49x192xf32>
    %7 = arith.mulf %6, %6 : vector<49x192xf32>
    %cst_2 = arith.constant dense<0.000000e+00> : vector<192xf32>
    %8 = vector.multi_reduction <add>, %7, %cst_2 [0] : vector<49x192xf32> to vector<192xf32>
    %9 = vector.shape_cast %8 : vector<192xf32> to vector<1x192xf32>
    %cst_3 = arith.constant 0.0204081628 : f32
    %10 = vector.broadcast %cst_3 : f32 to vector<1x192xf32>
    %11 = arith.mulf %9, %10 : vector<1x192xf32>
    %c0_4 = arith.constant 0 : index
    %c0_5 = arith.constant 0 : index
    %12 = vector.load %arg3[%c0_4, %c0_5] : memref<1x192xf32, #tpu.memory_space<vmem>>, vector<1x192xf32>
    %cst_6 = arith.constant 9.99999974E-6 : f32
    %13 = vector.broadcast %cst_6 : f32 to vector<1x192xf32>
    %14 = arith.addf %11, %13 : vector<1x192xf32>
    %15 = math.rsqrt %14 : vector<1x192xf32>
    %16 = arith.mulf %12, %15 : vector<1x192xf32>
    %17 = vector.broadcast %16 : vector<1x192xf32> to vector<49x192xf32>
    %18 = arith.mulf %6, %17 : vector<49x192xf32>
    %c0_7 = arith.constant 0 : index
    %c0_8 = arith.constant 0 : index
    %19 = vector.load %arg4[%c0_7, %c0_8] : memref<1x192xf32, #tpu.memory_space<vmem>>, vector<1x192xf32>
    %20 = vector.broadcast %19 : vector<1x192xf32> to vector<49x192xf32>
    %21 = arith.addf %18, %20 : vector<49x192xf32>
    %c0_9 = arith.constant 0 : index
    %c0_10 = arith.constant 0 : index
    %22 = vector.load %arg2[%c0_9, %c0_10] : memref<1152x192xf32, #tpu.memory_space<vmem>>, vector<1152x192xf32>
    %cst_11 = arith.constant dense<0.000000e+00> : vector<49x1152xf32>
    %23 = tpu.matmul %21, %22, %cst_11 {dimension_numbers = #tpu.dot_dimension_numbers<[1], [1], [0], [0], [0, 0, 1, 0], [], []>} : vector<49x192xf32>, vector<1152x192xf32>, vector<49x1152xf32> -> vector<49x1152xf32>
    %cst_12 = arith.constant dense<0.000000e+00> : vector<1152xf32>
    %24 = vector.multi_reduction <add>, %23, %cst_12 [0] : vector<49x1152xf32> to vector<1152xf32>
    %25 = vector.shape_cast %24 : vector<1152xf32> to vector<1x1152xf32>
    %cst_13 = arith.constant 0.0204081628 : f32
    %26 = vector.broadcast %cst_13 : f32 to vector<1x1152xf32>
    %27 = arith.mulf %25, %26 : vector<1x1152xf32>
    %28 = vector.broadcast %27 : vector<1x1152xf32> to vector<49x1152xf32>
    %29 = arith.subf %23, %28 : vector<49x1152xf32>
    %30 = arith.mulf %29, %29 : vector<49x1152xf32>
    %cst_14 = arith.constant dense<0.000000e+00> : vector<1152xf32>
    %31 = vector.multi_reduction <add>, %30, %cst_14 [0] : vector<49x1152xf32> to vector<1152xf32>
    %32 = vector.shape_cast %31 : vector<1152xf32> to vector<1x1152xf32>
    %cst_15 = arith.constant 0.0204081628 : f32
    %33 = vector.broadcast %cst_15 : f32 to vector<1x1152xf32>
    %34 = arith.mulf %32, %33 : vector<1x1152xf32>
    %c0_16 = arith.constant 0 : index
    %c0_17 = arith.constant 0 : index
    %35 = vector.load %arg5[%c0_16, %c0_17] : memref<1x1152xf32, #tpu.memory_space<vmem>>, vector<1x1152xf32>
    %cst_18 = arith.constant 9.99999974E-6 : f32
    %36 = vector.broadcast %cst_18 : f32 to vector<1x1152xf32>
    %37 = arith.addf %34, %36 : vector<1x1152xf32>
    %38 = math.rsqrt %37 : vector<1x1152xf32>
    %39 = arith.mulf %35, %38 : vector<1x1152xf32>
    %40 = vector.broadcast %39 : vector<1x1152xf32> to vector<49x1152xf32>
    %41 = arith.mulf %29, %40 : vector<49x1152xf32>
    %c0_19 = arith.constant 0 : index
    %c0_20 = arith.constant 0 : index
    %42 = vector.load %arg6[%c0_19, %c0_20] : memref<1x1152xf32, #tpu.memory_space<vmem>>, vector<1x1152xf32>
    %43 = vector.broadcast %42 : vector<1x1152xf32> to vector<49x1152xf32>
    %44 = arith.addf %41, %43 : vector<49x1152xf32>
    %c0_21 = arith.constant 0 : index
    %c0_22 = arith.constant 0 : index
    %45 = vector.load %arg7[%c0_21, %c0_22] : memref<49x1152xf32, #tpu.memory_space<vmem>>, vector<49x1152xf32>
    tpu.vector_store %arg7[%c0_21, %c0_22], %44 {strides = array<i32>} : memref<49x1152xf32, #tpu.memory_space<vmem>>, vector<49x1152xf32>,
    return
  }
  func.func @transform_0(%arg0: i32) -> (i32, i32) {
    %c0_i32 = arith.constant 0 : i32
    %c0_i32_0 = arith.constant 0 : i32
    %c0_i32_1 = arith.constant 0 : i32
    return %c0_i32, %c0_i32_0 : i32, i32
  }
  func.func @transform_1(%arg0: i32) -> (i32, i32) {
    %c0_i32 = arith.constant 0 : i32
    %c0_i32_0 = arith.constant 0 : i32
    return %arg0, %c0_i32 : i32, i32
  }
  func.func @transform_2(%arg0: i32) -> (i32, i32) {
    %c0_i32 = arith.constant 0 : i32
    %c0_i32_0 = arith.constant 0 : i32
    %c0_i32_1 = arith.constant 0 : i32
    return %c0_i32, %c0_i32_0 : i32, i32
  }
  func.func @transform_3(%arg0: i32) -> (i32, i32) {
    %c0_i32 = arith.constant 0 : i32
    %c0_i32_0 = arith.constant 0 : i32
    %c0_i32_1 = arith.constant 0 : i32
    return %c0_i32, %c0_i32_0 : i32, i32
  }
  func.func @transform_4(%arg0: i32) -> (i32, i32) {
    %c0_i32 = arith.constant 0 : i32
    %c0_i32_0 = arith.constant 0 : i32
    return %c0_i32, %arg0 : i32, i32
  }
  func.func @transform_5(%arg0: i32) -> (i32, i32) {
    %c0_i32 = arith.constant 0 : i32
    %c0_i32_0 = arith.constant 0 : i32
    return %c0_i32, %arg0 : i32, i32
  }
  func.func @transform_6(%arg0: i32) -> (i32, i32) {
    %c0_i32 = arith.constant 0 : i32
    %c0_i32_0 = arith.constant 0 : i32
    return %c0_i32, %arg0 : i32, i32
  }
}

</mosaic_0001>

<bundles_post_ra>
// kernel: tpu_custom_call.1
= control target key start
LH: loop header
LB: loop body
LE: loop exit
PB: predicated region body
PF: predicated region fallthrough
CT: control target
= control target key end

     0   :  { %vm51_vm0 = vcmask 523264   ;;  %vm42_vm2 = vcmask 1040384   ;;  %vm63_vm3 = vcmask 516096   ;;  %vm2464_vm4 = vcmask 400384   ;;  %s5985_s1 = inlined_call_operand.vmem [shape: f32[1152,192], index: 1, kind: input, shape index: {}]   ;;  %s5986_s0 = inlined_call_operand.vmem [shape: f32[49,192], index: 0, kind: input, shape index: {}]   ;;  %s5987_s2 = inlined_call_operand.vmem [shape: f32[1,192], index: 2, kind: input, shape index: {}]   ;;  %s5988_s3 = inlined_call_operand.vmem [shape: f32[1,192], index: 3, kind: input, shape index: {}]   ;;  %s5989_s4 = inlined_call_operand.vmem [shape: f32[1,1152], index: 4, kind: input, shape index: {}]   ;;  %s5990_s5 = inlined_call_operand.vmem [shape: f32[1,1152], index: 5, kind: input, shape index: {}]   ;;  %s5991_s6 = inlined_call_operand.vmem [shape: f32[1152,49], index: 6, kind: output, shape index: {}]  }
   0x1   :  { %v212_v0 = vld [vmem:[%s5985_s1 + $0x8] sm:$0xff]  ;;  %v214_v1 = vld [vmem:[%s5985_s1 + $0x18] sm:$0xff]  ;;  %vm3237_vm1 = vmpackc.low %vm51_vm0, %vm51_vm0 }
   0x2   :  { %v2793_v3 = vpack.c.bf16 %v214_v1, %v212_v0  ;;  %v276_v4 = vld [vmem:[%s5985_s1 + $0x208] sm:$0xff]  ;;  %v278_v5 = vld [vmem:[%s5985_s1 + $0x218] sm:$0xff]  ;;  %v211_v6 = vld [vmem:[%s5985_s1] sm:$0xff] }
   0x3   :  { %v2873_v7 = vpack.c.bf16 %v278_v5, %v276_v4  ;;  %v213_v8 = vld [vmem:[%s5985_s1 + $0x10] sm:$0xff]  ;;  %v275_v9 = vld [vmem:[%s5985_s1 + $0x200] sm:$0xff]  ;;  %v216_v13 = vld [vmem:[%s5985_s1 + $0x28] sm:$0xff] }
   0x4   :  { %v277_v10 = vld [vmem:[%s5985_s1 + $0x210] sm:$0xff]  ;;  %2795 = vmatprep.subr.msk.bf16.mxu0 %vm3237_vm1, %v2793_v3  ;;  %v2796_v11 = vpack.c.bf16 %v213_v8, %v211_v6  ;;  %v218_v14 = vld [vmem:[%s5985_s1 + $0x38] sm:$0xff]  ;;  %v280_v15 = vld [vmem:[%s5985_s1 + $0x228] sm:$0xff] }
   0x5   :  { %v2876_v12 = vpack.c.bf16 %v277_v10, %v275_v9  ;;  %2875 = vmatprep.subr.msk.bf16.mxu1 %vm3237_vm1, %v2873_v7  ;;  %v2798_v16 = vpack.c.bf16 %v218_v14, %v216_v13  ;;  %v282_v17 = vld [vmem:[%s5985_s1 + $0x238] sm:$0xff]  ;;  %v215_v19 = vld [vmem:[%s5985_s1 + $0x20] sm:$0xff]  ;;  %v217_v20 = vld [vmem:[%s5985_s1 + $0x30] sm:$0xff] }
   0x6   :  { %2797 = vmatpush1.bf16.xpose.msra.mxu0 %v2796_v11  ;;  %v2878_v18 = vpack.c.bf16 %v282_v17, %v280_v15  ;;  %v279_v21 = vld [vmem:[%s5985_s1 + $0x220] sm:$0xff]  ;;  %v281_v22 = vld [vmem:[%s5985_s1 + $0x230] sm:$0xff]  ;;  %v220_v23 = vld [vmem:[%s5985_s1 + $0x48] sm:$0xff]  ;;  %v2801_v27 = vpack.c.bf16 %v217_v20, %v215_v19 }
   0x7   :  { %2877 = vmatpush1.bf16.xpose.msra.mxu1 %v2876_v12  ;;  %2800 = vmatprep.subr.msk.bf16.mxu0 %vm3237_vm1, %v2798_v16  ;;  %v222_v24 = vld [vmem:[%s5985_s1 + $0x58] sm:$0xff]  ;;  %v284_v25 = vld [vmem:[%s5985_s1 + $0x248] sm:$0xff]  ;;  %v2881_v28 = vpack.c.bf16 %v281_v22, %v279_v21  ;;  %v219_v31 = vld [vmem:[%s5985_s1 + $0x40] sm:$0xff] }
   0x8   :  { %2880 = vmatprep.subr.msk.bf16.mxu1 %vm3237_vm1, %v2878_v18  ;;  %v286_v26 = vld [vmem:[%s5985_s1 + $0x258] sm:$0xff]  ;;  %v2803_v29 = vpack.c.bf16 %v222_v24, %v220_v23  ;;  %v221_v32 = vld [vmem:[%s5985_s1 + $0x50] sm:$0xff]  ;;  %v283_v33 = vld [vmem:[%s5985_s1 + $0x240] sm:$0xff] }
   0x9   :  { %v2883_v30 = vpack.c.bf16 %v286_v26, %v284_v25  ;;  %v285_v34 = vld [vmem:[%s5985_s1 + $0x250] sm:$0xff]  ;;  %v224_v35 = vld [vmem:[%s5985_s1 + $0x68] sm:$0xff]  ;;  %v226_v36 = vld [vmem:[%s5985_s1 + $0x78] sm:$0xff]  ;;  %v2806_v39 = vpack.c.bf16 %v221_v32, %v219_v31 }
   0xa   :  { %v288_v37 = vld [vmem:[%s5985_s1 + $0x268] sm:$0xff]  ;;  %v290_v38 = vld [vmem:[%s5985_s1 + $0x278] sm:$0xff]  ;;  %v2886_v40 = vpack.c.bf16 %v285_v34, %v283_v33  ;;  %v2808_v41 = vpack.c.bf16 %v226_v36, %v224_v35  ;;  %v223_v43 = vld [vmem:[%s5985_s1 + $0x60] sm:$0xff] }
   0xb   :  { %v2888_v42 = vpack.c.bf16 %v290_v38, %v288_v37  ;;  %v225_v44 = vld [vmem:[%s5985_s1 + $0x70] sm:$0xff]  ;;  %v287_v45 = vld [vmem:[%s5985_s1 + $0x260] sm:$0xff]  ;;  %v228_v47 = vld [vmem:[%s5985_s1 + $0x88] sm:$0xff] }
   0xc   :  { %v289_v46 = vld [vmem:[%s5985_s1 + $0x270] sm:$0xff]  ;;  %v230_v48 = vld [vmem:[%s5985_s1 + $0x98] sm:$0xff]  ;;  %v292_v49 = vld [vmem:[%s5985_s1 + $0x288] sm:$0xff]  ;;  %v2811_v51 = vpack.c.bf16 %v225_v44, %v223_v43 }
   0xd   :  { %v294_v50 = vld [vmem:[%s5985_s1 + $0x298] sm:$0xff]  ;;  %v2891_v52 = vpack.c.bf16 %v289_v46, %v287_v45  ;;  %v2813_v53 = vpack.c.bf16 %v230_v48, %v228_v47  ;;  %v227_v55 = vld [vmem:[%s5985_s1 + $0x80] sm:$0xff]  ;;  %v229_v56 = vld [vmem:[%s5985_s1 + $0x90] sm:$0xff] }
   0xe   :  { %2802 = vmatpush1.bf16.xpose.msra.mxu0 %v2801_v27  ;;  %v2893_v54 = vpack.c.bf16 %v294_v50, %v292_v49  ;;  %v291_v57 = vld [vmem:[%s5985_s1 + $0x280] sm:$0xff]  ;;  %v293_v58 = vld [vmem:[%s5985_s1 + $0x290] sm:$0xff]  ;;  %v232_v59 = vld [vmem:[%s5985_s1 + $0xa8] sm:$0xff]  ;;  %v2816_v63 = vpack.c.bf16 %v229_v56, %v227_v55 }
   0xf   :  { %2882 = vmatpush1.bf16.xpose.msra.mxu1 %v2881_v28  ;;  %2805 = vmatprep.subr.msk.bf16.mxu0 %vm3237_vm1, %v2803_v29  ;;  %v234_v60 = vld [vmem:[%s5985_s1 + $0xb8] sm:$0xff]  ;;  %v296_v61 = vld [vmem:[%s5985_s1 + $0x2a8] sm:$0xff]  ;;  %v2896_v0 = vpack.c.bf16 %v293_v58, %v291_v57  ;;  %v231_v4 = vld [vmem:[%s5985_s1 + $0xa0] sm:$0xff] }
  0x10   :  { %2885 = vmatprep.subr.msk.bf16.mxu1 %vm3237_vm1, %v2883_v30  ;;  %v298_v62 = vld [vmem:[%s5985_s1 + $0x2b8] sm:$0xff]  ;;  %v2818_v1 = vpack.c.bf16 %v234_v60, %v232_v59  ;;  %v233_v5 = vld [vmem:[%s5985_s1 + $0xb0] sm:$0xff]  ;;  %v295_v6 = vld [vmem:[%s5985_s1 + $0x2a0] sm:$0xff] }
  0x11   :  { %v2898_v3 = vpack.c.bf16 %v298_v62, %v296_v61  ;;  %v297_v7 = vld [vmem:[%s5985_s1 + $0x2b0] sm:$0xff]  ;;  %v236_v8 = vld [vmem:[%s5985_s1 + $0xc8] sm:$0xff]  ;;  %v238_v9 = vld [vmem:[%s5985_s1 + $0xd8] sm:$0xff]  ;;  %v2821_v12 = vpack.c.bf16 %v233_v5, %v231_v4 }
  0x12   :  { %v300_v10 = vld [vmem:[%s5985_s1 + $0x2c8] sm:$0xff]  ;;  %v302_v11 = vld [vmem:[%s5985_s1 + $0x2d8] sm:$0xff]  ;;  %v2901_v13 = vpack.c.bf16 %v297_v7, %v295_v6  ;;  %v2823_v14 = vpack.c.bf16 %v238_v9, %v236_v8  ;;  %v3418_v16 = vld [vmem:[%s5986_s0] sm:$0xff] }
  0x13   :  { %v2903_v15 = vpack.c.bf16 %v302_v11, %v300_v10  ;;  %v3423_v17 = vld [vmem:[%s5986_s0 + $0x8] sm:$0xff]  ;;  %v3428_v18 = vld [vmem:[%s5986_s0 + $0x10] sm:$0xff]  ;;  %v235_v19 = vld [vmem:[%s5985_s1 + $0xc0] sm:$0xff] }
  0x14   :  { %v237_v20 = vld [vmem:[%s5985_s1 + $0xd0] sm:$0xff]  ;;  %v299_v21 = vld [vmem:[%s5985_s1 + $0x2c0] sm:$0xff]  ;;  %v3442_v22 = vld [vmem:[%s5986_s0 + $0x18] sm:$0xff]  ;;  %v37_v25 = vadd.f32 %v3428_v18, %v3418_v16  ;;  %v52_v26 = vsel %vm51_vm0, %v3423_v17, 0.0 }
  0x15   :  { %v3447_v23 = vld [vmem:[%s5986_s0 + $0x20] sm:$0xff]  ;;  %v3452_v24 = vld [vmem:[%s5986_s0 + $0x28] sm:$0xff]  ;;  %v301_v27 = vld [vmem:[%s5985_s1 + $0x2d0] sm:$0xff]  ;;  %v53_v30 = vsel %vm51_vm0, %v3442_v22, 0.0  ;;  %v2826_v45 = vpack.c.bf16 %v237_v20, %v235_v19 }
  0x16   :  { %2807 = vmatpush1.bf16.xpose.msra.mxu0 %v2806_v39  ;;  %v3464_v28 = vld [vmem:[%s5986_s0 + $0x30] sm:$0xff]  ;;  %v3469_v29 = vld [vmem:[%s5986_s0 + $0x38] sm:$0xff]  ;;  %v55_v31 = vsel %vm51_vm0, %v3452_v24, 0.0  ;;  %v240_v32 = vld [vmem:[%s5985_s1 + $0xe8] sm:$0xff]  ;;  %v38_v35 = vadd.f32 %v37_v25, %v3447_v23  ;;  %v54_v36 = vadd.f32 %v53_v30, %v52_v26  ;;  %v2906_v46 = vpack.c.bf16 %v301_v27, %v299_v21 }
  0x17   :  { %2887 = vmatpush1.bf16.xpose.msra.mxu1 %v2886_v40  ;;  %2810 = vmatprep.subr.msk.bf16.mxu0 %vm3237_vm1, %v2808_v41  ;;  %v242_v33 = vld [vmem:[%s5985_s1 + $0xf8] sm:$0xff]  ;;  %v3488_v34 = vld [vmem:[%s5986_s0 + $0x48] sm:$0xff]  ;;  %v3500_v39 = vld [vmem:[%s5986_s0 + $0x40] sm:$0xff]  ;;  %v57_v40 = vsel %vm51_vm0, %v3469_v29, 0.0 }
  0x18   :  { %2890 = vmatprep.subr.msk.bf16.mxu1 %vm3237_vm1, %v2888_v42  ;;  %v304_v37 = vld [vmem:[%s5985_s1 + $0x2e8] sm:$0xff]  ;;  %v306_v38 = vld [vmem:[%s5985_s1 + $0x2f8] sm:$0xff]  ;;  %v3512_v42 = vld [vmem:[%s5986_s0 + $0x60] sm:$0x1]  ;;  %v39_v43 = vadd.f32 %v38_v35, %v3464_v28  ;;  %v56_v44 = vadd.f32 %v55_v31, %v54_v36  ;;  %v59_v48 = vsel %vm51_vm0, %v3488_v34, 0.0  ;;  %v2828_v49 = vpack.c.bf16 %v242_v33, %v240_v32 }
  0x19   :  { %v3507_v41 = vld [vmem:[%s5986_s0 + $0x58] sm:$0xff]  ;;  %v3518_v47 = vld [vmem:[%s5986_s0 + $0x50] sm:$0xff]  ;;  %v2908_v50 = vpack.c.bf16 %v306_v38, %v304_v37  ;;  %v239_v58 = vld [vmem:[%s5985_s1 + $0xe0] sm:$0xff] }
  0x1a   :  { %v61_v55 = vsel %vm51_vm0, %v3507_v41, 0.0  ;;  %v241_v59 = vld [vmem:[%s5985_s1 + $0xf0] sm:$0xff]  ;;  %v303_v61 = vld [vmem:[%s5985_s1 + $0x2e0] sm:$0xff]  ;;  %v308_v4 = vld [vmem:[%s5985_s1 + $0x308] sm:$0xff] }
  0x1b   :  { %v305_v62 = vld [vmem:[%s5985_s1 + $0x2f0] sm:$0xff]  ;;  %v310_v5 = vld [vmem:[%s5985_s1 + $0x318] sm:$0xff]  ;;  %v2831_v8 = vpack.c.bf16 %v241_v59, %v239_v58  ;;  %v243_v19 = vld [vmem:[%s5985_s1 + $0x100] sm:$0xff] }
  0x1c   :  { %v2911_v9 = vpack.c.bf16 %v305_v62, %v303_v61  ;;  %v2913_v11 = vpack.c.bf16 %v310_v5, %v308_v4  ;;  %v245_v20 = vld [vmem:[%s5985_s1 + $0x110] sm:$0xff]  ;;  %v307_v21 = vld [vmem:[%s5985_s1 + $0x300] sm:$0xff]  ;;  %v248_v26 = vld [vmem:[%s5985_s1 + $0x128] sm:$0xff] }
  0x1d   :  { %v309_v25 = vld [vmem:[%s5985_s1 + $0x310] sm:$0xff]  ;;  %v250_v31 = vld [vmem:[%s5985_s1 + $0x138] sm:$0xff]  ;;  %v312_v32 = vld [vmem:[%s5985_s1 + $0x328] sm:$0xff]  ;;  %v2836_v37 = vpack.c.bf16 %v245_v20, %v243_v19 }
  0x1e   :  { %2812 = vmatpush1.bf16.xpose.msra.mxu0 %v2811_v51  ;;  %v3525_v51 = vld [vmem:[%s5986_s0 + $0x68] sm:$0x1]  ;;  %v314_v33 = vld [vmem:[%s5985_s1 + $0x338] sm:$0xff]  ;;  %v2916_v38 = vpack.c.bf16 %v309_v25, %v307_v21 }
  0x1f   :  { %2892 = vmatpush1.bf16.xpose.msra.mxu1 %v2891_v52  ;;  %2815 = vmatprep.subr.msk.bf16.mxu0 %vm3237_vm1, %v2813_v53  ;;  %v40_v52 = vadd.f32 %v39_v43, %v3500_v39  ;;  %v58_v53 = vadd.f32 %v57_v40, %v56_v44  ;;  %v64_v60 = vsel %vm63_vm3, %v3525_v51, 0.0  ;;  %v2838_v40 = vpack.c.bf16 %v250_v31, %v248_v26  ;;  %v256_v19 = vld [vmem:[%s5985_s1 + $0x168] sm:$0xff]  ;;  %v258_v25 = vld [vmem:[%s5985_s1 + $0x178] sm:$0xff] }
  0x20   :  { %2895 = vmatprep.subr.msk.bf16.mxu1 %vm3237_vm1, %v2893_v54  ;;  %v43_v54 = vsel %vm42_vm2, %v3512_v42, 0.0  ;;  %v2918_v43 = vpack.c.bf16 %v314_v33, %v312_v32  ;;  %v320_v26 = vld [vmem:[%s5985_s1 + $0x368] sm:$0xff] }
  0x21   :  { %v41_v56 = vadd.f32 %v40_v52, %v3518_v47  ;;  %v60_v57 = vadd.f32 %v59_v48, %v58_v53  ;;  %v249_v48 = vld [vmem:[%s5985_s1 + $0x130] sm:$0xff] }
  0x26   :  { %2817 = vmatpush1.bf16.xpose.msra.mxu0 %v2816_v63  ;;  %v244_v63 = vld [vmem:[%s5985_s1 + $0x108] sm:$0xff] }
  0x27   :  { %2897 = vmatpush1.bf16.xpose.msra.mxu1 %v2896_v0  ;;  %2820 = vmatprep.subr.msk.bf16.mxu0 %vm3237_vm1, %v2818_v1  ;;  %v44_v0 = vadd.f32 %v43_v54, %v41_v56  ;;  %v62_v1 = vadd.f32 %v61_v55, %v60_v57  ;;  %v252_v54 = vld [vmem:[%s5985_s1 + $0x148] sm:$0xff]  ;;  %v254_v55 = vld [vmem:[%s5985_s1 + $0x158] sm:$0xff] }
  0x28   :  { %2900 = vmatprep.subr.msk.bf16.mxu1 %vm3237_vm1, %v2898_v3  ;;  %v246_v3 = vld [vmem:[%s5985_s1 + $0x118] sm:$0xff]  ;;  %v316_v56 = vld [vmem:[%s5985_s1 + $0x348] sm:$0xff]  ;;  %v2843_v4 = vpack.c.bf16 %v254_v55, %v252_v54  ;;  %v255_v55 = vld [vmem:[%s5985_s1 + $0x160] sm:$0xff] }
  0x29   :  { %v45_v6 = vrot.slane %v44_v0, 4  ;;  %v65_v7 = vadd.f32 %v64_v60, %v62_v1  ;;  %v2833_v10 = vpack.c.bf16 %v246_v3, %v244_v63  ;;  %v318_v57 = vld [vmem:[%s5985_s1 + $0x358] sm:$0xff] }
  0x2a   :  { %v2923_v5 = vpack.c.bf16 %v318_v57, %v316_v56  ;;  %v257_v56 = vld [vmem:[%s5985_s1 + $0x170] sm:$0xff] }
  0x2e   :  { %2822 = vmatpush1.bf16.xpose.msra.mxu0 %v2821_v12  ;;  %v46_v12 = vadd.f32 %v45_v6, %v44_v0 }
  0x2f   :  { %2902 = vmatpush1.bf16.xpose.msra.mxu1 %v2901_v13  ;;  %2825 = vmatprep.subr.msk.bf16.mxu0 %vm3237_vm1, %v2823_v14  ;;  %v66_v13 = vrot.slane %v65_v7, 4 }
  0x30   :  { %2905 = vmatprep.subr.msk.bf16.mxu1 %vm3237_vm1, %v2903_v15  ;;  %v47_v14 = vrot.slane %v46_v12, 2 }
  0x31   :  { %v67_v15 = vadd.f32 %v66_v13, %v65_v7 }
  0x32   :  { %v48_v27 = vadd.f32 %v47_v14, %v46_v12  ;;  %v253_v12 = vld [vmem:[%s5985_s1 + $0x150] sm:$0xff] }
  0x33   :  { %v68_v30 = vrot.slane %v67_v15, 2 }
  0x34   :  { %v49_v35 = vrot.slane %v48_v27, 1 }
  0x35   :  { %v69_v36 = vadd.f32 %v68_v30, %v67_v15 }
  0x36   :  { %2827 = vmatpush1.bf16.xpose.msra.mxu0 %v2826_v45  ;;  %v50_v44 = vadd.f32 %v49_v35, %v48_v27  ;;  %v322_v27 = vld [vmem:[%s5985_s1 + $0x378] sm:$0xff] }
  0x37   :  { %2907 = vmatpush1.bf16.xpose.msra.mxu1 %v2906_v46  ;;  %2830 = vmatprep.subr.msk.bf16.mxu0 %vm3237_vm1, %v2828_v49  ;;  %v70_v45 = vrot.slane %v69_v36, 1  ;;  %v247_v46 = vld [vmem:[%s5985_s1 + $0x120] sm:$0xff] }
  0x38   :  { %2910 = vmatprep.subr.msk.bf16.mxu1 %vm3237_vm1, %v2908_v50  ;;  %v311_v49 = vld [vmem:[%s5985_s1 + $0x320] sm:$0xff]  ;;  %v313_v50 = vld [vmem:[%s5985_s1 + $0x330] sm:$0xff]  ;;  %v72_v53 = vmul.f32 0.020408163, %v50_v44  ;;  %v2841_v61 = vpack.c.bf16 %v249_v48, %v247_v46  ;;  %v2848_v46 = vpack.c.bf16 %v258_v25, %v256_v19  ;;  %v2928_v48 = vpack.c.bf16 %v322_v27, %v320_v26  ;;  %v266_v26 = vld [vmem:[%s5985_s1 + $0x1b8] sm:$0xff] }
  0x39   :  { %v71_v52 = vadd.f32 %v70_v45, %v69_v36  ;;  %v2921_v62 = vpack.c.bf16 %v313_v50, %v311_v49  ;;  %v323_v19 = vld [vmem:[%s5985_s1 + $0x380] sm:$0xff]  ;;  %v328_v27 = vld [vmem:[%s5985_s1 + $0x3a8] sm:$0xff] }
  0x3a   :  { %v3620_v59 = vsub.f32 %v3418_v16, %v72_v53  ;;  %v3623_v60 = vsub.f32 %v3428_v18, %v72_v53  ;;  %v3626_v63 = vsub.f32 %v3447_v23, %v72_v53  ;;  %v3629_v0 = vsub.f32 %v3464_v28, %v72_v53 }
  0x3b   :  { %v73_v58 = vmul.f32 0.020408163, %v71_v52 }
  0x3c   :  { %v88_v28 = vmul.f32 %v3620_v59, %v3620_v59 }
  0x3d   :  { %v3632_v1 = vsub.f32 %v3423_v17, %v73_v58  ;;  %v3635_v3 = vsub.f32 %v3442_v22, %v73_v58  ;;  %v3638_v16 = vsub.f32 %v3452_v24, %v73_v58  ;;  %v3641_v18 = vsub.f32 %v3469_v29, %v73_v58 }
  0x3e   :  { %2832 = vmatpush1.bf16.xpose.msra.mxu0 %v2831_v8  ;;  %v3644_v23 = vsub.f32 %v3488_v34, %v73_v58  ;;  %v3649_v17 = vsub.f32 %v3500_v39, %v72_v53  ;;  %v90_v24 = vmul.f32 %v3623_v60, %v3623_v60  ;;  %v3658_v6 = vsub.f32 %v3507_v41, %v73_v58  ;;  %v251_v8 = vld [vmem:[%s5985_s1 + $0x140] sm:$0xff] }
  0x3f   :  { %2912 = vmatpush1.bf16.xpose.msra.mxu1 %v2911_v9  ;;  %2835 = vmatprep.subr.msk.bf16.mxu0 %vm3237_vm1, %v2833_v10  ;;  %v89_v22 = vmul.f32 %v3632_v1, %v3632_v1  ;;  %v91_v29 = vmul.f32 %v3635_v3, %v3635_v3  ;;  %v92_v34 = vmul.f32 %v3626_v63, %v3626_v63 }
  0x40   :  { %2915 = vmatprep.subr.msk.bf16.mxu1 %vm3237_vm1, %v2913_v11  ;;  %v93_v7 = vmul.f32 %v3638_v16, %v3638_v16  ;;  %v95_v39 = vmul.f32 %v3641_v18, %v3641_v18  ;;  %v3670_v9 = vsub.f32 %v3518_v47, %v72_v53  ;;  %v3673_v10 = vsub.f32 %v3512_v42, %v72_v53  ;;  %v315_v47 = vld [vmem:[%s5985_s1 + $0x340] sm:$0xff]  ;;  %v317_v42 = vld [vmem:[%s5985_s1 + $0x350] sm:$0xff] }
  0x41   :  { %v3676_v41 = vsub.f32 %v3525_v51, %v73_v58  ;;  %v94_v11 = vmul.f32 %v3629_v0, %v3629_v0  ;;  %v97_v51 = vmul.f32 %v3644_v23, %v3644_v23  ;;  %v102_v13 = vadd.f32 %v90_v24, %v88_v28  ;;  %v262_v28 = vld [vmem:[%s5985_s1 + $0x198] sm:$0xff] }
  0x42   :  { %v115_v14 = vsel %vm51_vm0, %v89_v22, 0.0  ;;  %v116_v15 = vsel %vm51_vm0, %v91_v29, 0.0  ;;  %v118_v21 = vsel %vm51_vm0, %v93_v7, 0.0  ;;  %v96_v30 = vmul.f32 %v3649_v17, %v3649_v17  ;;  %v324_v22 = vld [vmem:[%s5985_s1 + $0x388] sm:$0xff]  ;;  %v326_v24 = vld [vmem:[%s5985_s1 + $0x398] sm:$0xff] }
  0x43   :  { %v117_v20 = vadd.f32 %v116_v15, %v115_v14  ;;  %v99_v31 = vmul.f32 %v3658_v6, %v3658_v6  ;;  %v103_v32 = vadd.f32 %v102_v13, %v92_v34  ;;  %v120_v33 = vsel %vm51_vm0, %v95_v39, 0.0  ;;  %v259_v13 = vld [vmem:[%s5985_s1 + $0x180] sm:$0xff]  ;;  %v261_v14 = vld [vmem:[%s5985_s1 + $0x190] sm:$0xff] }
  0x44   :  { %v2846_v35 = vpack.c.bf16 %v253_v12, %v251_v8  ;;  %v2926_v36 = vpack.c.bf16 %v317_v42, %v315_v47  ;;  %v122_v45 = vsel %vm51_vm0, %v97_v51, 0.0  ;;  %v2851_v7 = vpack.c.bf16 %v257_v56, %v255_v55  ;;  %v332_v55 = vld [vmem:[%s5985_s1 + $0x3c8] sm:$0xff]  ;;  %v334_v56 = vld [vmem:[%s5985_s1 + $0x3d8] sm:$0xff] }
  0x45   :  { %v104_v44 = vadd.f32 %v103_v32, %v94_v11  ;;  %v124_v52 = vsel %vm51_vm0, %v99_v31, 0.0  ;;  %v2933_v12 = vpack.c.bf16 %v326_v24, %v324_v22  ;;  %v147_v24 = vlaneseq }
  0x46   :  { %2837 = vmatpush1.bf16.xpose.msra.mxu0 %v2836_v37  ;;  %v100_v37 = vmul.f32 %v3673_v10, %v3673_v10 }
  0x47   :  { %2917 = vmatpush1.bf16.xpose.msra.mxu1 %v2916_v38  ;;  %2840 = vmatprep.subr.msk.bf16.mxu0 %vm3237_vm1, %v2838_v40  ;;  %v119_v38 = vadd.f32 %v118_v21, %v117_v20  ;;  %v98_v40 = vmul.f32 %v3670_v9, %v3670_v9  ;;  %v105_v50 = vadd.f32 %v104_v44, %v96_v30  ;;  %v325_v20 = vld [vmem:[%s5985_s1 + $0x390] sm:$0xff]  ;;  %v264_v21 = vld [vmem:[%s5985_s1 + $0x1a8] sm:$0xff]  ;;  %v330_v30 = vld [vmem:[%s5985_s1 + $0x3b8] sm:$0xff] }
  0x48   :  { %2920 = vmatprep.subr.msk.bf16.mxu1 %vm3237_vm1, %v2918_v43  ;;  %v101_v43 = vmul.f32 %v3676_v41, %v3676_v41  ;;  %v107_v53 = vsel %vm42_vm2, %v100_v37, 0.0  ;;  %v2858_v37 = vpack.c.bf16 %v266_v26, %v264_v21  ;;  %v271_v26 = vld [vmem:[%s5985_s1 + $0x1e0] sm:$0xff] }
  0x49   :  { %v121_v49 = vadd.f32 %v120_v33, %v119_v38  ;;  %v106_v57 = vadd.f32 %v105_v50, %v98_v40  ;;  %v2856_v33 = vpack.c.bf16 %v261_v14, %v259_v13  ;;  %v2938_v38 = vpack.c.bf16 %v330_v30, %v328_v27  ;;  %v329_v50 = vld [vmem:[%s5985_s1 + $0x3b0] sm:$0xff] }
  0x4a   :  { %v126_v58 = vsel %vm63_vm3, %v101_v43, 0.0  ;;  %v273_v27 = vld [vmem:[%s5985_s1 + $0x1f0] sm:$0xff] }
  0x4b   :  { %v123_v54 = vadd.f32 %v122_v45, %v121_v49  ;;  %v108_v29 = vadd.f32 %v107_v53, %v106_v57  ;;  %v263_v45 = vld [vmem:[%s5985_s1 + $0x1a0] sm:$0xff] }
  0x4c   :  { %v327_v49 = vld [vmem:[%s5985_s1 + $0x3a0] sm:$0xff] }
  0x4d   :  { %v109_v8 = vrot.slane %v108_v29, 4 }
  0x4e   :  { %2842 = vmatpush1.bf16.xpose.msra.mxu0 %v2841_v61  ;;  %v319_v61 = vld [vmem:[%s5985_s1 + $0x360] sm:$0xff] }
  0x4f   :  { %2922 = vmatpush1.bf16.xpose.msra.mxu1 %v2921_v62  ;;  %2845 = vmatprep.subr.msk.bf16.mxu0 %vm3237_vm1, %v2843_v4  ;;  %v321_v62 = vld [vmem:[%s5985_s1 + $0x370] sm:$0xff]  ;;  %v260_v4 = vld [vmem:[%s5985_s1 + $0x188] sm:$0xff]  ;;  %v110_v42 = vadd.f32 %v109_v8, %v108_v29  ;;  %v267_v29 = vld [vmem:[%s5985_s1 + $0x1c0] sm:$0xff] }
  0x50   :  { %2925 = vmatprep.subr.msk.bf16.mxu1 %vm3237_vm1, %v2923_v5  ;;  %v125_v5 = vadd.f32 %v124_v52, %v123_v54  ;;  %v2931_v39 = vpack.c.bf16 %v321_v62, %v319_v61  ;;  %v2853_v11 = vpack.c.bf16 %v262_v28, %v260_v4  ;;  %v268_v52 = vld [vmem:[%s5985_s1 + $0x1c8] sm:$0xff]  ;;  %v270_v54 = vld [vmem:[%s5985_s1 + $0x1d8] sm:$0xff]  ;;  %v2941_v62 = vpack.c.bf16 %v329_v50, %v327_v49 }
  0x51   :  { %v111_v15 = vrot.slane %v110_v42, 2  ;;  %v2863_v4 = vpack.c.bf16 %v270_v54, %v268_v52  ;;  %v3193_v28 = vmov 1966171168   ;;  %v272_v8 = vld [vmem:[%s5985_s1 + $0x1e8] sm:$0xff] }
  0x52   :  { %v127_v34 = vadd.f32 %v126_v58, %v125_v5  ;;  %v2943_v5 = vpack.c.bf16 %v334_v56, %v332_v55  ;;  %v145_v22 = vunpack.c.l.s4 %v3193_v28 }
  0x53   :  { %v112_v31 = vadd.f32 %v111_v15, %v110_v42 }
  0x54   :  { %v128_v47 = vrot.slane %v127_v34, 4  ;;  %v146_v42 = vunpack.c.0.s8 %v145_v22 }
  0x56   :  { %2847 = vmatpush1.bf16.xpose.msra.mxu0 %v2846_v35  ;;  %v129_v51 = vadd.f32 %v128_v47, %v127_v34  ;;  %v2936_v35 = vpack.c.bf16 %v325_v20, %v323_v19  ;;  %v269_v34 = vld [vmem:[%s5985_s1 + $0x1d0] sm:$0xff]  ;;  %v338_v47 = vld [vmem:[%s5985_s1 + $0x3f8] sm:$0xff] }
  0x57   :  { %2927 = vmatpush1.bf16.xpose.msra.mxu1 %v2926_v36  ;;  %2850 = vmatprep.subr.msk.bf16.mxu0 %vm3237_vm1, %v2848_v46  ;;  %v113_v36 = vrot.slane %v112_v31, 1  ;;  %v265_v46 = vld [vmem:[%s5985_s1 + $0x1b0] sm:$0xff]  ;;  %v2866_v13 = vpack.c.bf16 %v269_v34, %v267_v29 }
  0x58   :  { %2930 = vmatprep.subr.msk.bf16.mxu1 %vm3237_vm1, %v2928_v48  ;;  %v130_v25 = vrot.slane %v129_v51, 2  ;;  %v2861_v61 = vpack.c.bf16 %v265_v46, %v263_v45 }
  0x59   :  { %v114_v43 = vadd.f32 %v113_v36, %v112_v31  ;;  %v335_v31 = vld [vmem:[%s5985_s1 + $0x3e0] sm:$0xff]  ;;  %v342_v36 = vld [vmem:[%s5985_s1 + $0x418] sm:$0xff] }
  0x5a   :  { %v131_v32 = vadd.f32 %v130_v25, %v129_v51  ;;  %v3837_v51 = vshrl.u32 %v147_v24, 7  ;;  %v344_v24 = vld [vmem:[%s5985_s1 + $0x428] sm:$0xff] }
  0x5b   :  { %v134_v48 = vmul.f32 0.020408163, %v114_v43 }
  0x5c   :  { %v132_v40 = vrot.slane %v131_v32, 1  ;;  %v3840_v21 = vsub.s32 %v146_v42, %v3837_v51  ;;  %v3875_v43 = vsub.s32 1, %v3837_v51  ;;  %v3882_v49 = vsub.s32 0, %v3837_v51 }
  0x5d   :  { %v137_v57 = vadd.f32 1e-05, %v134_v48  ;;  %v185_v48 = vld [vmem:[%s5988_s3] sm:$0x3] }
  0x5e   :  { %2852 = vmatpush1.bf16.xpose.msra.mxu0 %v2851_v7  ;;  %v133_v44 = vadd.f32 %v132_v40, %v131_v32  ;;  %v331_v7 = vld [vmem:[%s5985_s1 + $0x3c0] sm:$0xff]  ;;  %6037 = vst [vmem:[#allocation2_spill] sm:$0xff] %v3840_v21  ;;  %v337_v32 = vld [vmem:[%s5985_s1 + $0x3f0] sm:$0xff]  ;;  %6038 = vst [vmem:[#allocation3_spill] sm:$0xff] %v3882_v49  ;;  %v3885_v54 = vrot.slane %v185_v48, %v3875_v43 }
  0x5f   :  { %2932 = vmatpush1.bf16.xpose.msra.mxu1 %v2931_v39  ;;  %2855 = vmatprep.subr.msk.bf16.mxu0 %vm3237_vm1, %v2853_v11  ;;  %3171 = vrsqrt.f32 %v137_v57  ;;  %v333_v39 = vld [vmem:[%s5985_s1 + $0x3d0] sm:$0xff]  ;;  %v274_v11 = vld [vmem:[%s5985_s1 + $0x1f8] sm:$0xff]  ;;  %v136_v40 = vld [vmem:[%s5987_s2] sm:$0x3]  ;;  %v2951_v45 = vpack.c.bf16 %v337_v32, %v335_v31  ;;  %v3894_v57 = vrot.slane %v185_v48, %v3882_v49 }
  0x60   :  { %2935 = vmatprep.subr.msk.bf16.mxu1 %vm3237_vm1, %v2933_v12  ;;  %v135_v53 = vmul.f32 0.020408163, %v133_v44  ;;  %v336_v12 = vld [vmem:[%s5985_s1 + $0x3e8] sm:$0xff]  ;;  %v2946_v14 = vpack.c.bf16 %v333_v39, %v331_v7  ;;  %v2868_v15 = vpack.c.bf16 %v274_v11, %v272_v8  ;;  %v2871_v44 = vpack.c.bf16 %v273_v27, %v271_v26  ;;  %v346_v7 = vld [vmem:[%s5985_s1 + $0x438] sm:$0xff] }
  0x61   :  { %v2948_v19 = vpack.c.bf16 %v338_v47, %v336_v12  ;;  %v2958_v12 = vpack.c.bf16 %v346_v7, %v344_v24  ;;  %v350_v27 = vld [vmem:[%s5985_s1 + $0x458] sm:$0xff] }
  0x62   :  { %v138_v58 = vadd.f32 1e-05, %v135_v53  ;;  %v414_v31 = vld [vmem:[%s5985_s1 + $0x658] sm:$0xff] }
  0x63   :  { %v358_v7 = vld [vmem:[%s5985_s1 + $0x498] sm:$0xff] }
  0x64   :  { %3173 = vrsqrt.f32 %v138_v58  ;;  %v339_v58 = vld [vmem:[%s5985_s1 + $0x400] sm:$0xff] }
  0x66   :  { %2857 = vmatpush1.bf16.xpose.msra.mxu0 %v2856_v33  ;;  %v340_v33 = vld [vmem:[%s5985_s1 + $0x408] sm:$0xff] }
  0x67   :  { %2937 = vmatpush1.bf16.xpose.msra.mxu1 %v2936_v35  ;;  %2860 = vmatprep.subr.msk.bf16.mxu0 %vm3237_vm1, %v2858_v37  ;;  %v404_v37 = vld [vmem:[%s5985_s1 + $0x608] sm:$0xff]  ;;  %v2953_v50 = vpack.c.bf16 %v342_v36, %v340_v33 }
  0x68   :  { %2940 = vmatprep.subr.msk.bf16.mxu1 %vm3237_vm1, %v2938_v38  ;;  %v406_v38 = vld [vmem:[%s5985_s1 + $0x618] sm:$0xff] }
  0x69   :  { %v3172_v20 = vpop.eup %3171  ;;  %v3033_v52 = vpack.c.bf16 %v406_v38, %v404_v37 }
  0x6e   :  { %2862 = vmatpush1.bf16.xpose.msra.mxu0 %v2861_v61  ;;  %v3174_v25 = vpop.eup %3173  ;;  %v341_v61 = vld [vmem:[%s5985_s1 + $0x410] sm:$0xff] }
  0x6f   :  { %2942 = vmatpush1.bf16.xpose.msra.mxu1 %v2941_v62  ;;  %2865 = vmatprep.subr.msk.bf16.mxu0 %vm3237_vm1, %v2863_v4  ;;  %v143_v30 = vcombine.low %v3172_v20, %v3174_v25  ;;  %v403_v62 = vld [vmem:[%s5985_s1 + $0x600] sm:$0xff]  ;;  %v405_v4 = vld [vmem:[%s5985_s1 + $0x610] sm:$0xff]  ;;  %v2956_v29 = vpack.c.bf16 %v341_v61, %v339_v58  ;;  %v348_v25 = vld [vmem:[%s5985_s1 + $0x448] sm:$0xff] }
  0x70   :  { %2945 = vmatprep.subr.msk.bf16.mxu1 %vm3237_vm1, %v2943_v5  ;;  %v3036_v8 = vpack.c.bf16 %v405_v4, %v403_v62  ;;  %v2963_v36 = vpack.c.bf16 %v350_v27, %v348_v25  ;;  %v416_v58 = vld [vmem:[%s5985_s1 + $0x668] sm:$0xff]  ;;  %v418_v61 = vld [vmem:[%s5985_s1 + $0x678] sm:$0xff] }
  0x71   :  { %v150_v35 = vrot.slane %v143_v30, %v3840_v21  ;;  %v412_v30 = vld [vmem:[%s5985_s1 + $0x648] sm:$0xff] }
  0x72   :  { %v3043_v37 = vpack.c.bf16 %v414_v31, %v412_v30  ;;  %v424_v25 = vld [vmem:[%s5985_s1 + $0x6a8] sm:$0xff] }
  0x73   :  { %v157_v46 = vrot.slane %v150_v35, %v3840_v21 }
  0x75   :  { %v159_v53 = vmul.f32 %v157_v46, %v136_v40  ;;  %v413_v46 = vld [vmem:[%s5985_s1 + $0x650] sm:$0xff] }
  0x76   :  { %2867 = vmatpush1.bf16.xpose.msra.mxu0 %v2866_v13 }
  0x77   :  { %2947 = vmatpush1.bf16.xpose.msra.mxu1 %v2946_v14  ;;  %2870 = vmatprep.subr.msk.bf16.mxu0 %vm3237_vm1, %v2868_v15  ;;  %v3888_v55 = vrot.slane %v159_v53, %v3875_v43  ;;  %v3891_v56 = vrot.slane %v159_v53, %v3882_v49  ;;  %v343_v14 = vld [vmem:[%s5985_s1 + $0x420] sm:$0xff]  ;;  %v345_v15 = vld [vmem:[%s5985_s1 + $0x430] sm:$0xff]  ;;  %v354_v53 = vld [vmem:[%s5985_s1 + $0x478] sm:$0xff] }
  0x78   :  { %2950 = vmatprep.subr.msk.bf16.mxu1 %vm3237_vm1, %v2948_v19  ;;  %v409_v19 = vld [vmem:[%s5985_s1 + $0x630] sm:$0xff]  ;;  %v2961_v32 = vpack.c.bf16 %v345_v15, %v343_v14  ;;  %v419_v15 = vld [vmem:[%s5985_s1 + $0x680] sm:$0xff] }
  0x79   :  { %v172_v5 = vmul.f32 %v3888_v55, %v3632_v1  ;;  %v171_v28 = vmul.f32 %v3891_v56, %v3620_v59  ;;  %v174_v22 = vmul.f32 %v3888_v55, %v3635_v3  ;;  %v173_v34 = vmul.f32 %v3891_v56, %v3623_v60  ;;  %v408_v1 = vld [vmem:[%s5985_s1 + $0x628] sm:$0xff]  ;;  %v410_v59 = vld [vmem:[%s5985_s1 + $0x638] sm:$0xff]  ;;  %v357_v14 = vld [vmem:[%s5985_s1 + $0x490] sm:$0xff] }
  0x7a   :  { %v176_v60 = vmul.f32 %v3888_v55, %v3638_v16  ;;  %v3038_v47 = vpack.c.bf16 %v410_v59, %v408_v1  ;;  %v175_v16 = vmul.f32 %v3891_v56, %v3626_v63  ;;  %v407_v63 = vld [vmem:[%s5985_s1 + $0x620] sm:$0xff]  ;;  %v178_v20 = vmul.f32 %v3888_v55, %v3641_v18  ;;  %v420_v1 = vld [vmem:[%s5985_s1 + $0x688] sm:$0xff]  ;;  %v422_v59 = vld [vmem:[%s5985_s1 + $0x698] sm:$0xff] }
  0x7b   :  { %v3933_v3 = vadd.f32 %v3885_v54, %v172_v5  ;;  %v3936_v39 = vadd.f32 %v3894_v57, %v171_v28  ;;  %v3941_v11 = vadd.f32 %v3885_v54, %v174_v22  ;;  %v3950_v42 = vadd.f32 %v3894_v57, %v173_v34 }
  0x7c   :  { %v3955_v13 = vadd.f32 %v3885_v54, %v176_v60  ;;  %v3985_v26 = vadd.f32 %v3894_v57, %v175_v16  ;;  %v177_v18 = vmul.f32 %v3891_v56, %v3629_v0  ;;  %v3041_v0 = vpack.c.bf16 %v409_v19, %v407_v63  ;;  %v421_v63 = vld [vmem:[%s5985_s1 + $0x690] sm:$0xff]  ;;  %v360_v19 = vld [vmem:[%s5985_s1 + $0x4a8] sm:$0xff] }
  0x7d   :  { %2645 = vmatprep.mubr.msk.f32.mxu0 %vm51_vm0, %v3933_v3  ;;  %2684 = vmatprep.mubr.msk.f32.mxu1 %vm51_vm0, %v3933_v3  ;;  %v180_v33 = vmul.f32 %v3888_v55, %v3644_v23  ;;  %v4005_v35 = vadd.f32 %v3885_v54, %v178_v20  ;;  %v179_v40 = vmul.f32 %v3891_v56, %v3649_v17  ;;  %v347_v23 = vld [vmem:[%s5985_s1 + $0x440] sm:$0xff]  ;;  %v362_v20 = vld [vmem:[%s5985_s1 + $0x4b8] sm:$0xff] }
  0x7e   :  { %2872 = vmatpush1.bf16.xpose.msra.mxu0 %v2871_v44  ;;  %v4010_v38 = vadd.f32 %v3894_v57, %v177_v18  ;;  %v411_v17 = vld [vmem:[%s5985_s1 + $0x640] sm:$0xff]  ;;  %v182_v48 = vmul.f32 %v3888_v55, %v3658_v6  ;;  %v181_v6 = vmul.f32 %v3891_v56, %v3670_v9  ;;  %v184_v4 = vmul.f32 %v3888_v55, %v3676_v41  ;;  %v353_v55 = vld [vmem:[%s5985_s1 + $0x470] sm:$0xff]  ;;  %v426_v18 = vld [vmem:[%s5985_s1 + $0x6b8] sm:$0xff] }
  0x7f   :  { %2952 = vmatpush1.bf16.xpose.msra.mxu1 %v2951_v45  ;;  %2955 = vmatprep.subr.msk.bf16.mxu0 %vm3237_vm1, %v2953_v50  ;;  %v4015_v44 = vadd.f32 %v3885_v54, %v180_v33  ;;  %v349_v45 = vld [vmem:[%s5985_s1 + $0x450] sm:$0xff]  ;;  %v352_v50 = vld [vmem:[%s5985_s1 + $0x468] sm:$0xff]  ;;  %v3046_v9 = vpack.c.bf16 %v413_v46, %v411_v17  ;;  %v3048_v22 = vpack.c.bf16 %v418_v61, %v416_v58  ;;  %v351_v41 = vld [vmem:[%s5985_s1 + $0x460] sm:$0xff] }
  0x80   :  { %3035 = vmatprep.subr.msk.bf16.mxu1 %vm3237_vm1, %v3033_v52  ;;  %v4045_v52 = vadd.f32 %v3894_v57, %v179_v40  ;;  %v2966_v62 = vpack.c.bf16 %v349_v45, %v347_v23  ;;  %v4065_v5 = vadd.f32 %v3885_v54, %v182_v48  ;;  %v2968_v28 = vpack.c.bf16 %v354_v53, %v352_v50  ;;  %v361_v33 = vld [vmem:[%s5985_s1 + $0x4b0] sm:$0xff]  ;;  %v364_v40 = vld [vmem:[%s5985_s1 + $0x4c8] sm:$0xff]  ;;  %v366_v23 = vld [vmem:[%s5985_s1 + $0x4d8] sm:$0xff] }
  0x81   :  { %v4070_v24 = vadd.f32 %v3894_v57, %v181_v6  ;;  %v4075_v34 = vadd.f32 %v3885_v54, %v184_v4  ;;  %v417_v54 = vld [vmem:[%s5985_s1 + $0x670] sm:$0xff]  ;;  %v2971_v60 = vpack.c.bf16 %v353_v55, %v351_v41  ;;  %v3053_v16 = vpack.c.bf16 %v422_v59, %v420_v1  ;;  %v428_v45 = vld [vmem:[%s5985_s1 + $0x6c8] sm:$0xff]  ;;  %v430_v17 = vld [vmem:[%s5985_s1 + $0x6d8] sm:$0xff] }
  0x82   :  { %v3056_v30 = vpack.c.bf16 %v421_v63, %v419_v15  ;;  %v2978_v31 = vpack.c.bf16 %v362_v20, %v360_v19  ;;  %v2983_v50 = vpack.c.bf16 %v366_v23, %v364_v40  ;;  %v3063_v6 = vpack.c.bf16 %v430_v17, %v428_v45  ;;  %v363_v53 = vld [vmem:[%s5985_s1 + $0x4c0] sm:$0xff]  ;;  %v365_v58 = vld [vmem:[%s5985_s1 + $0x4d0] sm:$0xff]  ;;  %v370_v4 = vld [vmem:[%s5985_s1 + $0x4f8] sm:$0xff] }
  0x83   :  { %v427_v61 = vld [vmem:[%s5985_s1 + $0x6c0] sm:$0xff]  ;;  %v433_v1 = vld [vmem:[%s5985_s1 + $0x6f0] sm:$0xff]  ;;  %v372_v59 = vld [vmem:[%s5985_s1 + $0x508] sm:$0xff] }
  0x84   :  { %v371_v63 = vld [vmem:[%s5985_s1 + $0x500] sm:$0xff]  ;;  %v373_v19 = vld [vmem:[%s5985_s1 + $0x510] sm:$0xff]  ;;  %v380_v17 = vld [vmem:[%s5985_s1 + $0x548] sm:$0xff] }
  0x85   :  { %1017 = vmatmul.mubr.f32.vlgmr.msra.gmra.mrb[0].mxu0 %v3936_v39  ;;  %v435_v20 = vld [vmem:[%s5985_s1 + $0x700] sm:$0xff]  ;;  %v377_v40 = vld [vmem:[%s5985_s1 + $0x530] sm:$0xff] }
  0x86   :  { %1124 = vmatmul.mubr.f32.vlgmr.msra.gmra.mrb[0].mxu1 %v3936_v39  ;;  %2957 = vmatpush1.bf16.xpose.msra.mxu0 %v2956_v29  ;;  %v183_v29 = vmul.f32 %v3891_v56, %v3673_v10  ;;  %v415_v10 = vld [vmem:[%s5985_s1 + $0x660] sm:$0xff]  ;;  %v356_v56 = vld [vmem:[%s5985_s1 + $0x488] sm:$0xff]  ;;  %v441_v45 = vld [vmem:[%s5985_s1 + $0x730] sm:$0xff] }
  0x87   :  { %3037 = vmatpush1.bf16.xpose.msra.mxu1 %v3036_v8  ;;  %2646 = vmatprep.mubr.msk.f32.mxu0 %vm51_vm0, %v3941_v11  ;;  %v439_v23 = vld [vmem:[%s5985_s1 + $0x720] sm:$0xff] }
  0x88   :  { %2685 = vmatprep.mubr.msk.f32.mxu1 %vm51_vm0, %v3941_v11  ;;  %2960 = vmatprep.subr.msk.bf16.mxu0 %vm3237_vm1, %v2958_v12  ;;  %v4112_v8 = vadd.f32 %v3894_v57, %v183_v29  ;;  %v3051_v12 = vpack.c.bf16 %v417_v54, %v415_v10  ;;  %v355_v57 = vld [vmem:[%s5985_s1 + $0x480] sm:$0xff]  ;;  %v2986_v29 = vpack.c.bf16 %v365_v58, %v363_v53 }
  0x89   :  { %3040 = vmatprep.subr.msk.bf16.mxu1 %vm3237_vm1, %v3038_v47  ;;  %1023 = vmatmul.mubr.f32.gmra.mrb[2].mxu0 %v3950_v42  ;;  %v2973_v47 = vpack.c.bf16 %v358_v7, %v356_v56  ;;  %v2976_v27 = vpack.c.bf16 %v357_v14, %v355_v57  ;;  %v367_v54 = vld [vmem:[%s5985_s1 + $0x4e0] sm:$0xff]  ;;  %v369_v56 = vld [vmem:[%s5985_s1 + $0x4f0] sm:$0xff]  ;;  %v3081_v53 = vpack.c.bf16 %v441_v45, %v439_v23 }
  0x8a   :  { %1130 = vmatmul.mubr.f32.gmra.mrb[2].mxu1 %v3950_v42  ;;  %2647 = vmatprep.mubr.msk.f32.mxu0 %vm51_vm0, %v3955_v13  ;;  %v431_v7 = vld [vmem:[%s5985_s1 + $0x6e0] sm:$0xff] }
  0x8b   :  { %2686 = vmatprep.mubr.msk.f32.mxu1 %vm51_vm0, %v3955_v13  ;;  %v3071_v57 = vpack.c.bf16 %v433_v1, %v431_v7  ;;  %v383_v1 = vld [vmem:[%s5985_s1 + $0x560] sm:$0xff] }
  0x8c   :  { %v391_v45 = vld [vmem:[%s5985_s1 + $0x5a0] sm:$0xff] }
  0x8d   :  { %1029 = vmatmul.mubr.f32.gmra.mrb[4].mxu0 %v3985_v26 }
  0x8e   :  { %1136 = vmatmul.mubr.f32.gmra.mrb[4].mxu1 %v3985_v26  ;;  %2962 = vmatpush1.bf16.xpose.msra.mxu0 %v2961_v32  ;;  %v3058_v32 = vpack.c.bf16 %v426_v18, %v424_v25  ;;  %v437_v25 = vld [vmem:[%s5985_s1 + $0x710] sm:$0xff]  ;;  %v376_v18 = vld [vmem:[%s5985_s1 + $0x528] sm:$0xff] }
  0x8f   :  { %3042 = vmatpush1.bf16.xpose.msra.mxu1 %v3041_v0  ;;  %2648 = vmatprep.mubr.msk.f32.mxu0 %vm51_vm0, %v4005_v35  ;;  %v359_v0 = vld [vmem:[%s5985_s1 + $0x4a0] sm:$0xff] }
  0x90   :  { %2687 = vmatprep.mubr.msk.f32.mxu1 %vm51_vm0, %v4005_v35  ;;  %2965 = vmatprep.subr.msk.bf16.mxu0 %vm3237_vm1, %v2963_v36  ;;  %v423_v36 = vld [vmem:[%s5985_s1 + $0x6a0] sm:$0xff]  ;;  %v2981_v46 = vpack.c.bf16 %v361_v33, %v359_v0  ;;  %v3076_v0 = vpack.c.bf16 %v437_v25, %v435_v20 }
  0x91   :  { %3045 = vmatprep.subr.msk.bf16.mxu1 %vm3237_vm1, %v3043_v37  ;;  %1035 = vmatmul.mubr.f32.gmra.mrb[6].mxu0 %v4010_v38  ;;  %v425_v37 = vld [vmem:[%s5985_s1 + $0x6b0] sm:$0xff]  ;;  %v387_v25 = vld [vmem:[%s5985_s1 + $0x580] sm:$0xff] }
  0x92   :  { %1142 = vmatmul.mubr.f32.gmra.mrb[6].mxu1 %v4010_v38  ;;  %2649 = vmatprep.mubr.msk.f32.mxu0 %vm51_vm0, %v4015_v44  ;;  %v3061_v48 = vpack.c.bf16 %v425_v37, %v423_v36  ;;  %v375_v37 = vld [vmem:[%s5985_s1 + $0x520] sm:$0xff] }
  0x93   :  { %2688 = vmatprep.mubr.msk.f32.mxu1 %vm51_vm0, %v4015_v44 }
  0x95   :  { %1041 = vmatmul.mubr.f32.gmra.mrb[8].mxu0 %v4045_v52 }
  0x96   :  { %1148 = vmatmul.mubr.f32.gmra.mrb[8].mxu1 %v4045_v52  ;;  %2967 = vmatpush1.bf16.xpose.msra.mxu0 %v2966_v62  ;;  %v429_v62 = vld [vmem:[%s5985_s1 + $0x6d0] sm:$0xff] }
  0x97   :  { %3047 = vmatpush1.bf16.xpose.msra.mxu1 %v3046_v9  ;;  %2650 = vmatprep.mubr.msk.f32.mxu0 %vm51_vm0, %v4065_v5  ;;  %v368_v9 = vld [vmem:[%s5985_s1 + $0x4e8] sm:$0xff]  ;;  %v3066_v41 = vpack.c.bf16 %v429_v62, %v427_v61  ;;  %v379_v62 = vld [vmem:[%s5985_s1 + $0x540] sm:$0xff] }
  0x98   :  { %2689 = vmatprep.mubr.msk.f32.mxu1 %vm51_vm0, %v4065_v5  ;;  %2970 = vmatprep.subr.msk.bf16.mxu0 %vm3237_vm1, %v2968_v28  ;;  %v432_v28 = vld [vmem:[%s5985_s1 + $0x6e8] sm:$0xff]  ;;  %v2988_v55 = vpack.c.bf16 %v370_v4, %v368_v9  ;;  %v381_v9 = vld [vmem:[%s5985_s1 + $0x550] sm:$0xff]  ;;  %v443_v4 = vld [vmem:[%s5985_s1 + $0x740] sm:$0xff] }
  0x99   :  { %3050 = vmatprep.subr.msk.bf16.mxu1 %vm3237_vm1, %v3048_v22  ;;  %1047 = vmatmul.mubr.f32.gmra.mrb[10].mxu0 %v4070_v24  ;;  %v434_v22 = vld [vmem:[%s5985_s1 + $0x6f8] sm:$0xff] }
  0x9a   :  { %1154 = vmatmul.mubr.f32.gmra.mrb[10].mxu1 %v4070_v24  ;;  %2651 = vmatprep.mubr.msk.f32.mxu0 %vm51_vm0, %v4075_v34  ;;  %v3068_v10 = vpack.c.bf16 %v434_v22, %v432_v28  ;;  %v445_v28 = vld [vmem:[%s5985_s1 + $0x750] sm:$0xff]  ;;  %v384_v22 = vld [vmem:[%s5985_s1 + $0x568] sm:$0xff] }
  0x9b   :  { %2690 = vmatprep.mubr.msk.f32.mxu1 %vm51_vm0, %v4075_v34 }
  0x9d   :  { %1053 = vmatmul.mubr.f32.gmra.mrb[12].mxu0 %v4112_v8 }
  0x9e   :  { %1160 = vmatmul.mubr.f32.gmra.mrb[12].mxu1 %v4112_v8  ;;  %2972 = vmatpush1.bf16.xpose.msra.mxu0 %v2971_v60  ;;  %v374_v60 = vld [vmem:[%s5985_s1 + $0x518] sm:$0xff] }
  0x9f   :  { %3052 = vmatpush1.bf16.xpose.msra.mxu1 %v3051_v12  ;;  %2975 = vmatprep.subr.msk.bf16.mxu0 %vm3237_vm1, %v2973_v47  ;;  %v436_v12 = vld [vmem:[%s5985_s1 + $0x708] sm:$0xff]  ;;  %v438_v47 = vld [vmem:[%s5985_s1 + $0x718] sm:$0xff]  ;;  %v2993_v14 = vpack.c.bf16 %v374_v60, %v372_v59  ;;  %v385_v59 = vld [vmem:[%s5985_s1 + $0x570] sm:$0xff] }
  0xa0   :  { %3055 = vmatprep.subr.msk.bf16.mxu1 %vm3237_vm1, %v3053_v16  ;;  %2723 = vmatprep.mubr.msk.f32.mxu0 %vm51_vm0, %v3933_v3  ;;  %v2991_v16 = vpack.c.bf16 %v369_v56, %v367_v54  ;;  %v3073_v15 = vpack.c.bf16 %v438_v47, %v436_v12  ;;  %v3086_v54 = vpack.c.bf16 %v445_v28, %v443_v4  ;;  %v447_v60 = vld [vmem:[%s5985_s1 + $0x760] sm:$0xff]  ;;  %v449_v12 = vld [vmem:[%s5985_s1 + $0x770] sm:$0xff]  ;;  %v388_v47 = vld [vmem:[%s5985_s1 + $0x588] sm:$0xff] }
  0xa1   :  { %2762 = vmatprep.mubr.msk.f32.mxu1 %vm51_vm0, %v3933_v3  ;;  %v395_v28 = vld [vmem:[%s5985_s1 + $0x5c0] sm:$0xff] }
  0xa6   :  { %2977 = vmatpush1.bf16.xpose.msra.mxu0 %v2976_v27  ;;  %v378_v27 = vld [vmem:[%s5985_s1 + $0x538] sm:$0xff] }
  0xa7   :  { %3057 = vmatpush1.bf16.xpose.msra.mxu1 %v3056_v30  ;;  %2980 = vmatprep.subr.msk.bf16.mxu0 %vm3237_vm1, %v2978_v31  ;;  %v440_v30 = vld [vmem:[%s5985_s1 + $0x728] sm:$0xff]  ;;  %v442_v31 = vld [vmem:[%s5985_s1 + $0x738] sm:$0xff]  ;;  %v2998_v33 = vpack.c.bf16 %v378_v27, %v376_v18  ;;  %v389_v18 = vld [vmem:[%s5985_s1 + $0x590] sm:$0xff] }
  0xa8   :  { %3060 = vmatprep.subr.msk.bf16.mxu1 %vm3237_vm1, %v3058_v32  ;;  %v2996_v32 = vpack.c.bf16 %v373_v19, %v371_v63  ;;  %v3078_v36 = vpack.c.bf16 %v442_v31, %v440_v30  ;;  %v3091_v63 = vpack.c.bf16 %v449_v12, %v447_v60  ;;  %v451_v27 = vld [vmem:[%s5985_s1 + $0x780] sm:$0xff]  ;;  %v453_v30 = vld [vmem:[%s5985_s1 + $0x790] sm:$0xff]  ;;  %v392_v31 = vld [vmem:[%s5985_s1 + $0x5a8] sm:$0xff] }
  0xa9   :  { %v399_v12 = vld [vmem:[%s5985_s1 + $0x5e0] sm:$0xff] }
  0xae   :  { %2982 = vmatpush1.bf16.xpose.msra.mxu0 %v2981_v46  ;;  %v382_v46 = vld [vmem:[%s5985_s1 + $0x558] sm:$0xff] }
  0xaf   :  { %3062 = vmatpush1.bf16.xpose.msra.mxu1 %v3061_v48  ;;  %2985 = vmatprep.subr.msk.bf16.mxu0 %vm3237_vm1, %v2983_v50  ;;  %v444_v48 = vld [vmem:[%s5985_s1 + $0x748] sm:$0xff]  ;;  %v446_v50 = vld [vmem:[%s5985_s1 + $0x758] sm:$0xff]  ;;  %v3003_v58 = vpack.c.bf16 %v382_v46, %v380_v17  ;;  %v393_v17 = vld [vmem:[%s5985_s1 + $0x5b0] sm:$0xff] }
  0xb0   :  { %3065 = vmatprep.subr.msk.bf16.mxu1 %vm3237_vm1, %v3063_v6  ;;  %v3001_v6 = vpack.c.bf16 %v377_v40, %v375_v37  ;;  %v3083_v61 = vpack.c.bf16 %v446_v50, %v444_v48  ;;  %v3096_v37 = vpack.c.bf16 %v453_v30, %v451_v27  ;;  %v455_v46 = vld [vmem:[%s5985_s1 + $0x7a0] sm:$0xff]  ;;  %v457_v48 = vld [vmem:[%s5985_s1 + $0x7b0] sm:$0xff]  ;;  %v396_v50 = vld [vmem:[%s5985_s1 + $0x5c8] sm:$0xff] }
  0xb1   :  { %v472_v30 = vld [vmem:[%s5985_s1 + $0x828] sm:$0xff] }
  0xb6   :  { %2987 = vmatpush1.bf16.xpose.msra.mxu0 %v2986_v29  ;;  %v386_v29 = vld [vmem:[%s5985_s1 + $0x578] sm:$0xff] }
  0xb7   :  { %3067 = vmatpush1.bf16.xpose.msra.mxu1 %v3066_v41  ;;  %2990 = vmatprep.subr.msk.bf16.mxu0 %vm3237_vm1, %v2988_v55  ;;  %v448_v41 = vld [vmem:[%s5985_s1 + $0x768] sm:$0xff]  ;;  %v450_v55 = vld [vmem:[%s5985_s1 + $0x778] sm:$0xff]  ;;  %v3008_v56 = vpack.c.bf16 %v386_v29, %v384_v22  ;;  %v397_v22 = vld [vmem:[%s5985_s1 + $0x5d0] sm:$0xff] }
  0xb8   :  { %3070 = vmatprep.subr.msk.bf16.mxu1 %vm3237_vm1, %v3068_v10  ;;  %v3006_v10 = vpack.c.bf16 %v381_v9, %v379_v62  ;;  %v3088_v7 = vpack.c.bf16 %v450_v55, %v448_v41  ;;  %v3101_v62 = vpack.c.bf16 %v457_v48, %v455_v46  ;;  %v459_v29 = vld [vmem:[%s5985_s1 + $0x7c0] sm:$0xff]  ;;  %v461_v41 = vld [vmem:[%s5985_s1 + $0x7d0] sm:$0xff]  ;;  %v400_v55 = vld [vmem:[%s5985_s1 + $0x5e8] sm:$0xff] }
  0xb9   :  { %v480_v48 = vld [vmem:[%s5985_s1 + $0x868] sm:$0xff] }
  0xbe   :  { %2992 = vmatpush1.bf16.xpose.msra.mxu0 %v2991_v16  ;;  %v390_v16 = vld [vmem:[%s5985_s1 + $0x598] sm:$0xff] }
  0xbf   :  { %3072 = vmatpush1.bf16.xpose.msra.mxu1 %v3071_v57  ;;  %2995 = vmatprep.subr.msk.bf16.mxu0 %vm3237_vm1, %v2993_v14  ;;  %v452_v57 = vld [vmem:[%s5985_s1 + $0x788] sm:$0xff]  ;;  %v454_v14 = vld [vmem:[%s5985_s1 + $0x798] sm:$0xff]  ;;  %v3013_v19 = vpack.c.bf16 %v390_v16, %v388_v47  ;;  %v401_v47 = vld [vmem:[%s5985_s1 + $0x5f0] sm:$0xff] }
  0xc0   :  { %3075 = vmatprep.subr.msk.bf16.mxu1 %vm3237_vm1, %v3073_v15  ;;  %v3011_v15 = vpack.c.bf16 %v385_v59, %v383_v1  ;;  %v3093_v20 = vpack.c.bf16 %v454_v14, %v452_v57  ;;  %v3106_v1 = vpack.c.bf16 %v461_v41, %v459_v29  ;;  %v463_v16 = vld [vmem:[%s5985_s1 + $0x7e0] sm:$0xff]  ;;  %v465_v57 = vld [vmem:[%s5985_s1 + $0x7f0] sm:$0xff]  ;;  %v3031_v14 = vpack.c.bf16 %v401_v47, %v399_v12  ;;  %v490_v29 = vld [vmem:[%s5985_s1 + $0x8b8] sm:$0xff] }
  0xc1   :  { %v496_v47 = vld [vmem:[%s5985_s1 + $0x8e8] sm:$0xff] }
  0xc6   :  { %2997 = vmatpush1.bf16.xpose.msra.mxu0 %v2996_v32  ;;  %v394_v32 = vld [vmem:[%s5985_s1 + $0x5b8] sm:$0xff] }
  0xc7   :  { %3077 = vmatpush1.bf16.xpose.msra.mxu1 %v3076_v0  ;;  %3000 = vmatprep.subr.msk.bf16.mxu0 %vm3237_vm1, %v2998_v33  ;;  %v456_v0 = vld [vmem:[%s5985_s1 + $0x7a8] sm:$0xff]  ;;  %v458_v33 = vld [vmem:[%s5985_s1 + $0x7b8] sm:$0xff]  ;;  %v3018_v40 = vpack.c.bf16 %v394_v32, %v392_v31 }
  0xc8   :  { %3080 = vmatprep.subr.msk.bf16.mxu1 %vm3237_vm1, %v3078_v36  ;;  %v3016_v36 = vpack.c.bf16 %v389_v18, %v387_v25  ;;  %v3098_v23 = vpack.c.bf16 %v458_v33, %v456_v0  ;;  %v467_v25 = vld [vmem:[%s5985_s1 + $0x800] sm:$0xff]  ;;  %v469_v18 = vld [vmem:[%s5985_s1 + $0x810] sm:$0xff]  ;;  %v474_v31 = vld [vmem:[%s5985_s1 + $0x838] sm:$0xff] }
  0xc9   :  { %v3116_v27 = vpack.c.bf16 %v469_v18, %v467_v25  ;;  %v3118_v32 = vpack.c.bf16 %v474_v31, %v472_v30  ;;  %v471_v0 = vld [vmem:[%s5985_s1 + $0x820] sm:$0xff]  ;;  %v473_v33 = vld [vmem:[%s5985_s1 + $0x830] sm:$0xff] }
  0xce   :  { %3002 = vmatpush1.bf16.xpose.msra.mxu0 %v3001_v6  ;;  %v398_v6 = vld [vmem:[%s5985_s1 + $0x5d8] sm:$0xff] }
  0xcf   :  { %3082 = vmatpush1.bf16.xpose.msra.mxu1 %v3081_v53  ;;  %3005 = vmatprep.subr.msk.bf16.mxu0 %vm3237_vm1, %v3003_v58  ;;  %v460_v53 = vld [vmem:[%s5985_s1 + $0x7c8] sm:$0xff]  ;;  %v462_v58 = vld [vmem:[%s5985_s1 + $0x7d8] sm:$0xff]  ;;  %v3023_v9 = vpack.c.bf16 %v398_v6, %v396_v50  ;;  %v481_v6 = vld [vmem:[%s5985_s1 + $0x870] sm:$0xff] }
  0xd0   :  { %3085 = vmatprep.subr.msk.bf16.mxu1 %vm3237_vm1, %v3083_v61  ;;  %v3021_v61 = vpack.c.bf16 %v393_v17, %v391_v45  ;;  %v3103_v4 = vpack.c.bf16 %v462_v58, %v460_v53  ;;  %v475_v45 = vld [vmem:[%s5985_s1 + $0x840] sm:$0xff]  ;;  %v477_v17 = vld [vmem:[%s5985_s1 + $0x850] sm:$0xff]  ;;  %v482_v50 = vld [vmem:[%s5985_s1 + $0x878] sm:$0xff] }
  0xd1   :  { %v3126_v46 = vpack.c.bf16 %v477_v17, %v475_v45  ;;  %v484_v58 = vld [vmem:[%s5985_s1 + $0x888] sm:$0xff] }
  0xd6   :  { %3007 = vmatpush1.bf16.xpose.msra.mxu0 %v3006_v10  ;;  %v402_v10 = vld [vmem:[%s5985_s1 + $0x5f8] sm:$0xff] }
  0xd7   :  { %3087 = vmatpush1.bf16.xpose.msra.mxu1 %v3086_v54  ;;  %3010 = vmatprep.subr.msk.bf16.mxu0 %vm3237_vm1, %v3008_v56  ;;  %v464_v54 = vld [vmem:[%s5985_s1 + $0x7e8] sm:$0xff]  ;;  %v466_v56 = vld [vmem:[%s5985_s1 + $0x7f8] sm:$0xff]  ;;  %v3028_v59 = vpack.c.bf16 %v402_v10, %v400_v55  ;;  %v487_v55 = vld [vmem:[%s5985_s1 + $0x8a0] sm:$0xff] }
  0xd8   :  { %3090 = vmatprep.subr.msk.bf16.mxu1 %vm3237_vm1, %v3088_v7  ;;  %v3026_v7 = vpack.c.bf16 %v397_v22, %v395_v28  ;;  %v3108_v60 = vpack.c.bf16 %v466_v56, %v464_v54  ;;  %v488_v22 = vld [vmem:[%s5985_s1 + $0x8a8] sm:$0xff]  ;;  %v489_v10 = vld [vmem:[%s5985_s1 + $0x8b0] sm:$0xff] }
  0xd9   :  { %v3138_v41 = vpack.c.bf16 %v490_v29, %v488_v22  ;;  %v3141_v54 = vpack.c.bf16 %v489_v10, %v487_v55  ;;  %v492_v56 = vld [vmem:[%s5985_s1 + $0x8c8] sm:$0xff] }
  0xde   :  { %3012 = vmatpush1.bf16.xpose.msra.mxu0 %v3011_v15  ;;  %v3111_v15 = vpack.c.bf16 %v465_v57, %v463_v16  ;;  %v498_v16 = vld [vmem:[%s5985_s1 + $0x8f8] sm:$0xff]  ;;  %v495_v57 = vld [vmem:[%s5985_s1 + $0x8e0] sm:$0xff] }
  0xdf   :  { %3092 = vmatpush1.bf16.xpose.msra.mxu1 %v3091_v63  ;;  %3015 = vmatprep.subr.msk.bf16.mxu0 %vm3237_vm1, %v3013_v19  ;;  %v468_v63 = vld [vmem:[%s5985_s1 + $0x808] sm:$0xff]  ;;  %v470_v19 = vld [vmem:[%s5985_s1 + $0x818] sm:$0xff] }
  0xe0   :  { %3095 = vmatprep.subr.msk.bf16.mxu1 %vm3237_vm1, %v3093_v20  ;;  %v3113_v20 = vpack.c.bf16 %v470_v19, %v468_v63 }
  0xe6   :  { %3017 = vmatpush1.bf16.xpose.msra.mxu0 %v3016_v36  ;;  %v3121_v36 = vpack.c.bf16 %v473_v33, %v471_v0 }
  0xe7   :  { %3097 = vmatpush1.bf16.xpose.msra.mxu1 %v3096_v37  ;;  %3020 = vmatprep.subr.msk.bf16.mxu0 %vm3237_vm1, %v3018_v40  ;;  %v476_v37 = vld [vmem:[%s5985_s1 + $0x848] sm:$0xff]  ;;  %v478_v40 = vld [vmem:[%s5985_s1 + $0x858] sm:$0xff] }
  0xe8   :  { %3100 = vmatprep.subr.msk.bf16.mxu1 %vm3237_vm1, %v3098_v23  ;;  %v3123_v23 = vpack.c.bf16 %v478_v40, %v476_v37 }
  0xee   :  { %3022 = vmatpush1.bf16.xpose.msra.mxu0 %v3021_v61  ;;  %v486_v61 = vld [vmem:[%s5985_s1 + $0x898] sm:$0xff] }
  0xef   :  { %3102 = vmatpush1.bf16.xpose.msra.mxu1 %v3101_v62  ;;  %3025 = vmatprep.subr.msk.bf16.mxu0 %vm3237_vm1, %v3023_v9  ;;  %v3133_v62 = vpack.c.bf16 %v486_v61, %v484_v58  ;;  %v483_v9 = vld [vmem:[%s5985_s1 + $0x880] sm:$0xff] }
  0xf0   :  { %3105 = vmatprep.subr.msk.bf16.mxu1 %vm3237_vm1, %v3103_v4  ;;  %v485_v4 = vld [vmem:[%s5985_s1 + $0x890] sm:$0xff] }
  0xf1   :  { %v3136_v28 = vpack.c.bf16 %v485_v4, %v483_v9 }
  0xf6   :  { %3027 = vmatpush1.bf16.xpose.msra.mxu0 %v3026_v7  ;;  %v494_v7 = vld [vmem:[%s5985_s1 + $0x8d8] sm:$0xff] }
  0xf7   :  { %3107 = vmatpush1.bf16.xpose.msra.mxu1 %v3106_v1  ;;  %3030 = vmatprep.subr.msk.bf16.mxu0 %vm3237_vm1, %v3028_v59  ;;  %v3143_v1 = vpack.c.bf16 %v494_v7, %v492_v56  ;;  %v491_v59 = vld [vmem:[%s5985_s1 + $0x8c0] sm:$0xff] }
  0xf8   :  { %3110 = vmatprep.subr.msk.bf16.mxu1 %vm3237_vm1, %v3108_v60  ;;  %v493_v60 = vld [vmem:[%s5985_s1 + $0x8d0] sm:$0xff] }
  0xf9   :  { %v3146_v12 = vpack.c.bf16 %v493_v60, %v491_v59 }
  0xfe   :  { %3032 = vmatpush1.bf16.xpose.msra.mxu0 %v3031_v14  ;;  %v3148_v14 = vpack.c.bf16 %v498_v16, %v496_v47 }
  0xff   :  { %3112 = vmatpush1.bf16.xpose.msra.mxu1 %v3111_v15  ;;  %3115 = vmatprep.subr.msk.bf16.mxu0 %vm3237_vm1, %v3113_v20  ;;  %v497_v15 = vld [vmem:[%s5985_s1 + $0x8f0] sm:$0xff] }
 0x100   :  { %3153 = vmatprep.subr.msk.bf16.mxu1 %vm3237_vm1, %v3113_v20  ;;  %v3151_v63 = vpack.c.bf16 %v497_v15, %v495_v57 }
 0x105   :  { %1231 = vmatmul.mubr.f32.vlgmr.msra.gmra.mrb[14].mxu0 %v3936_v39 }
 0x106   :  { %1338 = vmatmul.mubr.f32.vlgmr.msra.gmra.mrb[14].mxu1 %v3936_v39  ;;  %2724 = vmatprep.mubr.msk.f32.mxu0 %vm51_vm0, %v3941_v11 }
 0x107   :  { %2763 = vmatprep.mubr.msk.f32.mxu1 %vm51_vm0, %v3941_v11  ;;  %3117 = vmatpush1.bf16.xpose.msra.mxu0 %v3116_v27 }
 0x108   :  { %3161 = vmatpush1.bf16.xpose.msra.mxu1 %v3116_v27  ;;  %3120 = vmatprep.subr.msk.bf16.mxu0 %vm3237_vm1, %v3118_v32 }
 0x109   :  { %1237 = vmatmul.mubr.f32.gmra.mrb[16].mxu0 %v3950_v42  ;;  %3154 = vmatprep.subr.msk.bf16.mxu1 %vm3237_vm1, %v3118_v32 }
 0x10a   :  { %1344 = vmatmul.mubr.f32.gmra.mrb[16].mxu1 %v3950_v42  ;;  %2725 = vmatprep.mubr.msk.f32.mxu0 %vm51_vm0, %v3955_v13 }
 0x10b   :  { %2764 = vmatprep.mubr.msk.f32.mxu1 %vm51_vm0, %v3955_v13 }
 0x10d   :  { %1243 = vmatmul.mubr.f32.gmra.mrb[18].mxu0 %v3985_v26 }
 0x10e   :  { %1350 = vmatmul.mubr.f32.gmra.mrb[18].mxu1 %v3985_v26  ;;  %2726 = vmatprep.mubr.msk.f32.mxu0 %vm51_vm0, %v4005_v35 }
 0x10f   :  { %2765 = vmatprep.mubr.msk.f32.mxu1 %vm51_vm0, %v4005_v35  ;;  %3122 = vmatpush1.bf16.xpose.msra.mxu0 %v3121_v36 }
 0x110   :  { %3162 = vmatpush1.bf16.xpose.msra.mxu1 %v3121_v36  ;;  %3125 = vmatprep.subr.msk.bf16.mxu0 %vm3237_vm1, %v3123_v23 }
 0x111   :  { %1249 = vmatmul.mubr.f32.gmra.mrb[20].mxu0 %v4010_v38  ;;  %3155 = vmatprep.subr.msk.bf16.mxu1 %vm3237_vm1, %v3123_v23 }
 0x112   :  { %1356 = vmatmul.mubr.f32.gmra.mrb[20].mxu1 %v4010_v38  ;;  %2727 = vmatprep.mubr.msk.f32.mxu0 %vm51_vm0, %v4015_v44 }
 0x113   :  { %2766 = vmatprep.mubr.msk.f32.mxu1 %vm51_vm0, %v4015_v44 }
 0x115   :  { %1255 = vmatmul.mubr.f32.gmra.mrb[22].mxu0 %v4045_v52 }
 0x116   :  { %1362 = vmatmul.mubr.f32.gmra.mrb[22].mxu1 %v4045_v52  ;;  %2728 = vmatprep.mubr.msk.f32.mxu0 %vm51_vm0, %v4065_v5 }
 0x117   :  { %2767 = vmatprep.mubr.msk.f32.mxu1 %vm51_vm0, %v4065_v5  ;;  %3127 = vmatpush1.bf16.xpose.msra.mxu0 %v3126_v46 }
 0x118   :  { %3163 = vmatpush1.bf16.xpose.msra.mxu1 %v3126_v46 }
 0x119   :  { %1261 = vmatmul.mubr.f32.gmra.mrb[24].mxu0 %v4070_v24 }
 0x11a   :  { %1368 = vmatmul.mubr.f32.gmra.mrb[24].mxu1 %v4070_v24  ;;  %2729 = vmatprep.mubr.msk.f32.mxu0 %vm51_vm0, %v4075_v34 }
 0x11b   :  { %2768 = vmatprep.mubr.msk.f32.mxu1 %vm51_vm0, %v4075_v34 }
 0x11d   :  { %1267 = vmatmul.mubr.f32.gmra.mrb[26].mxu0 %v4112_v8 }
 0x11e   :  { %1374 = vmatmul.mubr.f32.gmra.mrb[26].mxu1 %v4112_v8  ;;  %2785 = vmatprep.mubr.msk.f32.mxu0 %vm51_vm0, %v3933_v3  ;;  %v3128_v3 = vpack.c.bf16 %v482_v50, %v480_v48 }
 0x11f   :  { %2789 = vmatprep.mubr.msk.f32.mxu1 %vm51_vm0, %v4015_v44  ;;  %v479_v44 = vld [vmem:[%s5985_s1 + $0x860] sm:$0xff] }
 0x120   :  { %v3131_v53 = vpack.c.bf16 %v481_v6, %v479_v44  ;;  %3130 = vmatprep.subr.msk.bf16.mxu0 %vm3237_vm1, %v3128_v3  ;;  %3156 = vmatprep.subr.msk.bf16.mxu1 %vm3237_vm1, %v3128_v3 }
 0x122   :  { %3132 = vmatpush1.bf16.xpose.msra.mxu0 %v3131_v53  ;;  %3164 = vmatpush1.bf16.xpose.msra.mxu1 %v3131_v53 }
 0x123   :  { %3135 = vmatprep.subr.msk.bf16.mxu0 %vm3237_vm1, %v3133_v62  ;;  %3157 = vmatprep.subr.msk.bf16.mxu1 %vm3237_vm1, %v3133_v62 }
 0x12a   :  { %3137 = vmatpush1.bf16.xpose.msra.mxu0 %v3136_v28  ;;  %3165 = vmatpush1.bf16.xpose.msra.mxu1 %v3136_v28 }
 0x12b   :  { %3140 = vmatprep.subr.msk.bf16.mxu0 %vm3237_vm1, %v3138_v41  ;;  %3158 = vmatprep.subr.msk.bf16.mxu1 %vm3237_vm1, %v3138_v41 }
 0x132   :  { %3142 = vmatpush1.bf16.xpose.msra.mxu0 %v3141_v54  ;;  %3166 = vmatpush1.bf16.xpose.msra.mxu1 %v3141_v54 }
 0x133   :  { %3145 = vmatprep.subr.msk.bf16.mxu0 %vm3237_vm1, %v3143_v1  ;;  %3159 = vmatprep.subr.msk.bf16.mxu1 %vm3237_vm1, %v3143_v1 }
 0x13a   :  { %3147 = vmatpush1.bf16.xpose.msra.mxu0 %v3146_v12  ;;  %3167 = vmatpush1.bf16.xpose.msra.mxu1 %v3146_v12 }
 0x13b   :  { %3150 = vmatprep.subr.msk.bf16.mxu0 %vm3237_vm1, %v3148_v14  ;;  %3160 = vmatprep.subr.msk.bf16.mxu1 %vm3237_vm1, %v3148_v14 }
 0x142   :  { %3152 = vmatpush1.bf16.xpose.msra.mxu0 %v3151_v63  ;;  %3168 = vmatpush1.bf16.xpose.msra.mxu1 %v3151_v63 }
 0x149   :  { %1445 = vmatmul.mubr.f32.vlgmr.msra.gmra.mrb[28].mxu0 %v3936_v39  ;;  %1465 = vmatmul.mubr.f32.vlgmr.msra.gmra.mrb[28].mxu1 %v4045_v52 }
 0x14a   :  { %2786 = vmatprep.mubr.msk.f32.mxu0 %vm51_vm0, %v3941_v11  ;;  %2790 = vmatprep.mubr.msk.f32.mxu1 %vm51_vm0, %v4065_v5 }
 0x14d   :  { %1450 = vmatmul.mubr.f32.gmra.mrb[30].mxu0 %v3950_v42  ;;  %1470 = vmatmul.mubr.f32.gmra.mrb[30].mxu1 %v4070_v24 }
 0x14e   :  { %2787 = vmatprep.mubr.msk.f32.mxu0 %vm51_vm0, %v3955_v13  ;;  %2791 = vmatprep.mubr.msk.f32.mxu1 %vm51_vm0, %v4075_v34 }
 0x151   :  { %1455 = vmatmul.mubr.f32.gmra.mrb[32].mxu0 %v3985_v26  ;;  %1475 = vmatmul.mubr.f32.gmra.mrb[32].mxu1 %v4112_v8 }
 0x152   :  { %2788 = vmatprep.mubr.msk.f32.mxu0 %vm51_vm0, %v4005_v35 }
 0x155   :  { %1460 = vmatmul.mubr.f32.gmra.mrb[34].mxu0 %v4010_v38 }
 0x158   :  { %v4632_v2 = vpop.f32.mrb[0].mxu0 }
 0x159   :  { %v4634_v39 = vpop.f32.mrb[0].mxu1  ;;  %v4638_v11 = vpop.f32.mrb[1].mxu0 }
 0x15a   :  { %v4640_v42 = vpop.f32.mrb[1].mxu1 }
 0x15c   :  { %v4643_v13 = vpop.f32.mrb[2].mxu0 }
 0x15d   :  { %v4645_v52 = vpop.f32.mrb[2].mxu1  ;;  %v1480_v26 = vadd.f32 %v4643_v13, %v4632_v2  ;;  %v4651_v24 = vpop.f32.mrb[3].mxu0 }
 0x15e   :  { %v1506_v5 = vadd.f32 %v4645_v52, %v4634_v39  ;;  %v4653_v34 = vpop.f32.mrb[3].mxu1  ;;  %v1493_v35 = vadd.f32 %v4651_v24, %v4638_v11 }
 0x15f   :  { %v1519_v38 = vadd.f32 %v4653_v34, %v4640_v42 }
 0x160   :  { %v4659_v8 = vpop.f32.mrb[4].mxu0 }
 0x161   :  { %v4661_v19 = vpop.f32.mrb[4].mxu1  ;;  %v1481_v20 = vadd.f32 %v1480_v26, %v4659_v8  ;;  %v4665_v18 = vpop.f32.mrb[5].mxu0 }
 0x162   :  { %v1507_v25 = vadd.f32 %v1506_v5, %v4661_v19  ;;  %v4667_v27 = vpop.f32.mrb[5].mxu1  ;;  %v1494_v30 = vadd.f32 %v1493_v35, %v4665_v18 }
 0x163   :  { %v1520_v31 = vadd.f32 %v1519_v38, %v4667_v27 }
 0x164   :  { %v4671_v32 = vpop.f32.mrb[6].mxu0 }
 0x165   :  { %v4673_v0 = vpop.f32.mrb[6].mxu1  ;;  %v1482_v33 = vadd.f32 %v1481_v20, %v4671_v32  ;;  %v4677_v37 = vpop.f32.mrb[7].mxu0 }
 0x166   :  { %v1508_v36 = vadd.f32 %v1507_v25, %v4673_v0  ;;  %v4679_v40 = vpop.f32.mrb[7].mxu1  ;;  %v1495_v23 = vadd.f32 %v1494_v30, %v4677_v37 }
 0x167   :  { %v1521_v45 = vadd.f32 %v1520_v31, %v4679_v40 }
 0x168   :  { %v1042_v17 = vpop.f32.mrb[8].mxu0 }
 0x169   :  { %v4683_v46 = vpop.f32.mrb[8].mxu1  ;;  %v1483_v48 = vadd.f32 %v1482_v33, %v1042_v17  ;;  %v4686_v3 = vpop.f32.mrb[9].mxu0 }
 0x16a   :  { %v1509_v50 = vadd.f32 %v1508_v36, %v4683_v46  ;;  %v4688_v44 = vpop.f32.mrb[9].mxu1  ;;  %v1496_v6 = vadd.f32 %v1495_v23, %v4686_v3 }
 0x16b   :  { %v1522_v53 = vadd.f32 %v1521_v45, %v4688_v44 }
 0x16c   :  { %v1048_v58 = vpop.f32.mrb[10].mxu0 }
 0x16d   :  { %v1155_v61 = vpop.f32.mrb[10].mxu1  ;;  %v1484_v62 = vadd.f32 %v1483_v48, %v1048_v58  ;;  %v4692_v4 = vpop.f32.mrb[11].mxu0 }
 0x16e   :  { %v1510_v9 = vadd.f32 %v1509_v50, %v1155_v61  ;;  %v4694_v28 = vpop.f32.mrb[11].mxu1  ;;  %v1497_v22 = vadd.f32 %v1496_v6, %v4692_v4 }
 0x16f   :  { %v1523_v29 = vadd.f32 %v1522_v53, %v4694_v28 }
 0x170   :  { %v1054_v41 = vpop.f32.mrb[12].mxu0 }
 0x171   :  { %v1161_v55 = vpop.f32.mrb[12].mxu1  ;;  %v1485_v10 = vsel %vm42_vm2, %v1054_v41, 0.0  ;;  %v4700_v56 = vpop.f32.mrb[13].mxu0 }
 0x172   :  { %v1511_v54 = vsel %vm42_vm2, %v1161_v55, 0.0  ;;  %v4702_v7 = vpop.f32.mrb[13].mxu1  ;;  %v1486_v1 = vadd.f32 %v1485_v10, %v1484_v62  ;;  %v1498_v60 = vsel %vm42_vm2, %v4700_v56, 0.0 }
 0x173   :  { %v1512_v59 = vadd.f32 %v1511_v54, %v1510_v9  ;;  %v1524_v12 = vsel %vm42_vm2, %v4702_v7, 0.0  ;;  %v1499_v47 = vadd.f32 %v1498_v60, %v1497_v22 }
 0x174   :  { %v1525_v16 = vadd.f32 %v1524_v12, %v1523_v29  ;;  %v1487_v57 = vrot.slane %v1486_v1, 4 }
 0x175   :  { %v1513_v14 = vrot.slane %v1512_v59, 4  ;;  %v1500_v15 = vrot.slane %v1499_v47, 4 }
 0x176   :  { %v1526_v63 = vrot.slane %v1525_v16, 4  ;;  %v1488_v26 = vadd.f32 %v1487_v57, %v1486_v1 }
 0x177   :  { %v1514_v5 = vadd.f32 %v1513_v14, %v1512_v59  ;;  %v1501_v35 = vadd.f32 %v1500_v15, %v1499_v47 }
 0x178   :  { %v1527_v38 = vadd.f32 %v1526_v63, %v1525_v16  ;;  %v1489_v20 = vrot.slane %v1488_v26, 2 }
 0x179   :  { %v1515_v25 = vrot.slane %v1514_v5, 2  ;;  %v1502_v30 = vrot.slane %v1501_v35, 2 }
 0x17a   :  { %v1528_v31 = vrot.slane %v1527_v38, 2  ;;  %v1490_v33 = vadd.f32 %v1489_v20, %v1488_v26 }
 0x17b   :  { %v1516_v36 = vadd.f32 %v1515_v25, %v1514_v5  ;;  %v1503_v23 = vadd.f32 %v1502_v30, %v1501_v35 }
 0x17c   :  { %v1491_v45 = vrot.slane %v1490_v33, 1  ;;  %v1529_v6 = vadd.f32 %v1528_v31, %v1527_v38 }
 0x17d   :  { %v1517_v48 = vrot.slane %v1516_v36, 1  ;;  %v1504_v50 = vrot.slane %v1503_v23, 1 }
 0x17e   :  { %v1492_v53 = vadd.f32 %v1491_v45, %v1490_v33  ;;  %v1530_v10 = vrot.slane %v1529_v6, 1 }
 0x17f   :  { %v1518_v62 = vadd.f32 %v1517_v48, %v1516_v36  ;;  %v1505_v29 = vadd.f32 %v1504_v50, %v1503_v23 }
 0x180   :  { %v1597_v9 = vmul.f32 0.020408163, %v1492_v53  ;;  %v1531_v26 = vadd.f32 %v1530_v10, %v1529_v6 }
 0x181   :  { %v1599_v22 = vmul.f32 0.020408163, %v1518_v62 }
 0x182   :  { %v4709_v54 = vsub.f32 %v4632_v2, %v1597_v9  ;;  %v4712_v1 = vsub.f32 %v4643_v13, %v1597_v9  ;;  %v4715_v59 = vsub.f32 %v4659_v8, %v1597_v9  ;;  %v4718_v60 = vsub.f32 %v4671_v32, %v1597_v9 }
 0x183   :  { %v4720_v12 = vsub.f32 %v1042_v17, %v1597_v9  ;;  %v4722_v47 = vsub.f32 %v1048_v58, %v1597_v9  ;;  %v4724_v16 = vsub.f32 %v1054_v41, %v1597_v9  ;;  %v4727_v57 = vsub.f32 %v4634_v39, %v1599_v22 }
 0x184   :  { %6039 = vst [vmem:[#allocation4_spill] sm:$0xff] %v4709_v54  ;;  %6040 = vst [vmem:[#allocation5_spill] sm:$0xff] %v4712_v1  ;;  %v1669_v2 = vmul.f32 %v4709_v54, %v4709_v54  ;;  %v1678_v13 = vmul.f32 %v4712_v1, %v4712_v1  ;;  %v1687_v8 = vmul.f32 %v4715_v59, %v4715_v59  ;;  %v1598_v17 = vmul.f32 0.020408163, %v1505_v29 }
 0x185   :  { %6041 = vst [vmem:[#allocation6_spill] sm:$0xff] %v4715_v59  ;;  %6042 = vst [vmem:[#allocation7_spill] sm:$0xff] %v4718_v60  ;;  %v4736_v32 = vsub.f32 %v4645_v52, %v1599_v22  ;;  %v4739_v41 = vsub.f32 %v4661_v19, %v1599_v22  ;;  %v4742_v39 = vsub.f32 %v4673_v0, %v1599_v22 }
 0x186   :  { %6043 = vst [vmem:[#allocation8_spill] sm:$0xff] %v4720_v12  ;;  %6044 = vst [vmem:[#allocation9_spill] sm:$0xff] %v4722_v47  ;;  %v1732_v58 = vadd.f32 %v1678_v13, %v1669_v2  ;;  %v4745_v14 = vsub.f32 %v4683_v46, %v1599_v22  ;;  %v4747_v15 = vsub.f32 %v1155_v61, %v1599_v22 }
 0x187   :  { %6045 = vst [vmem:[#allocation10_spill] sm:$0xff] %v4724_v16  ;;  %6046 = vst [vmem:[#allocation11_spill] sm:$0xff] %v4727_v57  ;;  %v4749_v63 = vsub.f32 %v1161_v55, %v1599_v22  ;;  %v1696_v52 = vmul.f32 %v4718_v60, %v4718_v60  ;;  %v1705_v35 = vmul.f32 %v4720_v12, %v4720_v12 }
 0x188   :  { %6047 = vst [vmem:[#allocation12_spill] sm:$0xff] %v4736_v32  ;;  %6048 = vst [vmem:[#allocation13_spill] sm:$0xff] %v4739_v41  ;;  %v1733_v5 = vadd.f32 %v1732_v58, %v1687_v8  ;;  %v4756_v19 = vsub.f32 %v4638_v11, %v1598_v17  ;;  %v1723_v0 = vmul.f32 %v4724_v16, %v4724_v16  ;;  %v1600_v11 = vmul.f32 0.020408163, %v1531_v26 }
 0x189   :  { %6049 = vst [vmem:[#allocation14_spill] sm:$0xff] %v4742_v39  ;;  %6050 = vst [vmem:[#allocation15_spill] sm:$0xff] %v4745_v14  ;;  %v4761_v61 = vsub.f32 %v4651_v24, %v1598_v17  ;;  %v4764_v55 = vsub.f32 %v4665_v18, %v1598_v17  ;;  %v4767_v38 = vsub.f32 %v4677_v37, %v1598_v17 }
 0x18a   :  { %6051 = vst [vmem:[#allocation16_spill] sm:$0xff] %v4747_v15  ;;  %6052 = vst [vmem:[#allocation17_spill] sm:$0xff] %v4749_v63  ;;  %v1734_v46 = vadd.f32 %v1733_v5, %v1696_v52  ;;  %v4770_v20 = vsub.f32 %v4686_v3, %v1598_v17  ;;  %v4773_v25 = vsub.f32 %v4692_v4, %v1598_v17  ;;  %v1737_v3 = vsel %vm42_vm2, %v1723_v0, 0.0 }
 0x18b   :  { %6053 = vst [vmem:[#allocation18_spill] sm:$0xff] %v4756_v19  ;;  %6054 = vst [vmem:[#allocation19_spill] sm:$0xff] %v4761_v61  ;;  %v1714_v30 = vmul.f32 %v4722_v47, %v4722_v47  ;;  %v4778_v24 = vsub.f32 %v4700_v56, %v1598_v17  ;;  %v1670_v18 = vmul.f32 %v4756_v19, %v4756_v19 }
 0x18c   :  { %6055 = vst [vmem:[#allocation20_spill] sm:$0xff] %v4764_v55  ;;  %6056 = vst [vmem:[#allocation21_spill] sm:$0xff] %v4767_v38  ;;  %v1735_v31 = vadd.f32 %v1734_v46, %v1705_v35  ;;  %v1679_v37 = vmul.f32 %v4761_v61, %v4761_v61  ;;  %v1688_v4 = vmul.f32 %v4764_v55, %v4764_v55 }
 0x18d   :  { %6057 = vst [vmem:[#allocation22_spill] sm:$0xff] %v4770_v20  ;;  %6058 = vst [vmem:[#allocation23_spill] sm:$0xff] %v4773_v25  ;;  %v4788_v23 = vsub.f32 %v4640_v42, %v1600_v11  ;;  %v4791_v45 = vsub.f32 %v4653_v34, %v1600_v11  ;;  %v4794_v56 = vsub.f32 %v4667_v27, %v1600_v11 }
 0x18e   :  { %6059 = vst [vmem:[#allocation24_spill] sm:$0xff] %v4778_v24  ;;  %v1736_v33 = vadd.f32 %v1735_v31, %v1714_v30  ;;  %v1745_v36 = vadd.f32 %v1679_v37, %v1670_v18  ;;  %v1697_v50 = vmul.f32 %v4767_v38, %v4767_v38  ;;  %v4799_v6 = vsub.f32 %v4679_v40, %v1600_v11 }
 0x18f   :  { %6060 = vst [vmem:[#allocation25_spill] sm:$0xff] %v4788_v23  ;;  %6061 = vst [vmem:[#allocation26_spill] sm:$0xff] %v4791_v45  ;;  %v4802_v62 = vsub.f32 %v4688_v44, %v1600_v11  ;;  %v4805_v42 = vsub.f32 %v4694_v28, %v1600_v11  ;;  %v4808_v34 = vsub.f32 %v4702_v7, %v1600_v11 }
 0x190   :  { %6062 = vst [vmem:[#allocation27_spill] sm:$0xff] %v4794_v56  ;;  %v1738_v48 = vadd.f32 %v1737_v3, %v1736_v33  ;;  %6063 = vst [vmem:[#allocation28_spill] sm:$0xff] %v4799_v6  ;;  %v1746_v53 = vadd.f32 %v1745_v36, %v1688_v4  ;;  %v1706_v27 = vmul.f32 %v4770_v20, %v4770_v20 }
 0x191   :  { %6064 = vst [vmem:[#allocation29_spill] sm:$0xff] %v4802_v62  ;;  %6065 = vst [vmem:[#allocation30_spill] sm:$0xff] %v4805_v42  ;;  %v1724_v40 = vmul.f32 %v4778_v24, %v4778_v24  ;;  %v1715_v10 = vmul.f32 %v4773_v25, %v4773_v25  ;;  %v1726_v20 = vmul.f32 %v4808_v34, %v4808_v34 }
 0x192   :  { %6066 = vst [vmem:[#allocation31_spill] sm:$0xff] %v4808_v34  ;;  %v1739_v9 = vrot.slane %v1738_v48, 4  ;;  %v1747_v22 = vadd.f32 %v1746_v53, %v1697_v50 }
 0x193   :  { %v1750_v8 = vsel %vm42_vm2, %v1724_v40, 0.0 }
 0x194   :  { %v1740_v29 = vadd.f32 %v1739_v9, %v1738_v48  ;;  %v1748_v44 = vadd.f32 %v1747_v22, %v1706_v27 }
 0x196   :  { %v1741_v2 = vrot.slane %v1740_v29, 2  ;;  %v1749_v13 = vadd.f32 %v1748_v44, %v1715_v10 }
 0x198   :  { %v1742_v28 = vadd.f32 %v1741_v2, %v1740_v29  ;;  %v1751_v7 = vadd.f32 %v1750_v8, %v1749_v13  ;;  %v1671_v2 = vmul.f32 %v4727_v57, %v4727_v57  ;;  %v1680_v13 = vmul.f32 %v4736_v32, %v4736_v32 }
 0x199   :  { %v1689_v32 = vmul.f32 %v4739_v41, %v4739_v41 }
 0x19a   :  { %v1743_v17 = vrot.slane %v1742_v28, 1  ;;  %v1752_v58 = vrot.slane %v1751_v7, 4 }
 0x19c   :  { %v1744_v26 = vadd.f32 %v1743_v17, %v1742_v28  ;;  %v1753_v52 = vadd.f32 %v1752_v58, %v1751_v7  ;;  %v1672_v7 = vmul.f32 %v4788_v23, %v4788_v23  ;;  %v1681_v17 = vmul.f32 %v4791_v45, %v4791_v45 }
 0x19e   :  { %v1754_v5 = vrot.slane %v1753_v52, 2  ;;  %v1849_v35 = vmul.f32 0.020408163, %v1744_v26 }
 0x1a0   :  { %v1755_v0 = vadd.f32 %v1754_v5, %v1753_v52  ;;  %v1860_v11 = vadd.f32 1e-05, %v1849_v35 }
 0x1a2   :  { %v1756_v46 = vrot.slane %v1755_v0, 1  ;;  %3175 = vrsqrt.f32 %v1860_v11 }
 0x1a4   :  { %v1757_v30 = vadd.f32 %v1756_v46, %v1755_v0  ;;  %v1758_v46 = vadd.f32 %v1680_v13, %v1671_v2  ;;  %v1690_v2 = vmul.f32 %v4794_v56, %v4794_v56 }
 0x1a6   :  { %v1850_v31 = vmul.f32 0.020408163, %v1757_v30  ;;  %v1759_v13 = vadd.f32 %v1758_v46, %v1689_v32  ;;  %v1699_v46 = vmul.f32 %v4799_v6, %v4799_v6 }
 0x1a8   :  { %v1861_v18 = vadd.f32 1e-05, %v1850_v31  ;;  %v1771_v31 = vadd.f32 %v1681_v17, %v1672_v7 }
 0x1aa   :  { %3177 = vrsqrt.f32 %v1861_v18 }
 0x1ac   :  { %v4817_v37 = vpop.eup %3175 }
 0x1b4   :  { %v4819_v33 = vpop.eup %3177 }
 0x1d8   :  { %v4823_v4 = vpop.f32.mrb[14].mxu0 }
 0x1d9   :  { %v4825_v36 = vpop.f32.mrb[14].mxu1  ;;  %v4827_v48 = vpop.f32.mrb[15].mxu0 }
 0x1da   :  { %v4829_v50 = vpop.f32.mrb[15].mxu1 }
 0x1dc   :  { %v4831_v53 = vpop.f32.mrb[16].mxu0 }
 0x1dd   :  { %v4833_v9 = vpop.f32.mrb[16].mxu1  ;;  %v1532_v27 = vadd.f32 %v4831_v53, %v4823_v4  ;;  %v4839_v29 = vpop.f32.mrb[17].mxu0 }
 0x1de   :  { %v1558_v22 = vadd.f32 %v4833_v9, %v4825_v36  ;;  %v4841_v40 = vpop.f32.mrb[17].mxu1  ;;  %v1545_v10 = vadd.f32 %v4839_v29, %v4827_v48 }
 0x1df   :  { %v1571_v44 = vadd.f32 %v4841_v40, %v4829_v50 }
 0x1e0   :  { %v4851_v28 = vpop.f32.mrb[18].mxu0 }
 0x1e1   :  { %v4853_v8 = vpop.f32.mrb[18].mxu1  ;;  %v1533_v58 = vadd.f32 %v1532_v27, %v4851_v28  ;;  %v4861_v52 = vpop.f32.mrb[19].mxu0 }
 0x1e2   :  { %v1559_v26 = vadd.f32 %v1558_v22, %v4853_v8  ;;  %v4863_v5 = vpop.f32.mrb[19].mxu1  ;;  %v1546_v35 = vadd.f32 %v1545_v10, %v4861_v52 }
 0x1e3   :  { %v1572_v0 = vadd.f32 %v1571_v44, %v4863_v5 }
 0x1e4   :  { %v4867_v11 = vpop.f32.mrb[20].mxu0 }
 0x1e5   :  { %v4869_v30 = vpop.f32.mrb[20].mxu1  ;;  %v1534_v18 = vadd.f32 %v1533_v58, %v4867_v11  ;;  %v4873_v3 = vpop.f32.mrb[21].mxu0  ;;  %v1772_v58 = vadd.f32 %v1771_v31, %v1690_v2 }
 0x1e6   :  { %v1560_v27 = vadd.f32 %v1559_v26, %v4869_v30  ;;  %v4875_v22 = vpop.f32.mrb[21].mxu1  ;;  %v1547_v10 = vadd.f32 %v1546_v35, %v4873_v3  ;;  %v1698_v35 = vmul.f32 %v4742_v39, %v4742_v39 }
 0x1e7   :  { %v1573_v44 = vadd.f32 %v1572_v0, %v4875_v22 }
 0x1e8   :  { %v4883_v7 = vpop.f32.mrb[22].mxu0  ;;  %v1760_v56 = vadd.f32 %v1759_v13, %v1698_v35  ;;  %v1708_v35 = vmul.f32 %v4802_v62, %v4802_v62 }
 0x1e9   :  { %v4885_v17 = vpop.f32.mrb[22].mxu1  ;;  %v1535_v26 = vadd.f32 %v1534_v18, %v4883_v7  ;;  %v4889_v57 = vpop.f32.mrb[23].mxu0 }
 0x1ea   :  { %v1561_v45 = vadd.f32 %v1560_v27, %v4885_v17  ;;  %v4891_v41 = vpop.f32.mrb[23].mxu1  ;;  %v1548_v0 = vadd.f32 %v1547_v10, %v4889_v57  ;;  %v1773_v27 = vadd.f32 %v1772_v58, %v1699_v46  ;;  %v1707_v10 = vmul.f32 %v4745_v14, %v4745_v14 }
 0x1eb   :  { %v1574_v32 = vadd.f32 %v1573_v44, %v4891_v41 }
 0x1ec   :  { %v4899_v31 = vpop.f32.mrb[24].mxu0  ;;  %v1761_v6 = vadd.f32 %v1760_v56, %v1707_v10 }
 0x1ed   :  { %v4901_v18 = vpop.f32.mrb[24].mxu1  ;;  %v1536_v2 = vadd.f32 %v1535_v26, %v4899_v31  ;;  %v4905_v16 = vpop.f32.mrb[25].mxu0  ;;  %v1774_v26 = vadd.f32 %v1773_v27, %v1708_v35  ;;  %v1725_v27 = vmul.f32 %v4749_v63, %v4749_v63  ;;  %v1717_v35 = vmul.f32 %v4805_v42, %v4805_v42 }
 0x1ee   :  { %v1562_v23 = vadd.f32 %v1561_v45, %v4901_v18  ;;  %v4907_v39 = vpop.f32.mrb[25].mxu1  ;;  %v1549_v44 = vadd.f32 %v1548_v0, %v4905_v16  ;;  %v1716_v45 = vmul.f32 %v4747_v15, %v4747_v15  ;;  %v1776_v42 = vsel %vm42_vm2, %v1726_v20, 0.0 }
 0x1ef   :  { %v1575_v13 = vadd.f32 %v1574_v32, %v4907_v39  ;;  %v1763_v55 = vsel %vm42_vm2, %v1725_v27, 0.0 }
 0x1f0   :  { %v1268_v58 = vpop.f32.mrb[26].mxu0  ;;  %v1762_v12 = vadd.f32 %v1761_v6, %v1716_v45 }
 0x1f1   :  { %v4915_v46 = vpop.f32.mrb[26].mxu1  ;;  %v1537_v24 = vsel %vm42_vm2, %v1268_v58, 0.0  ;;  %v4922_v47 = vpop.f32.mrb[27].mxu0 }
 0x1f2   :  { %v1563_v14 = vsel %vm42_vm2, %v4915_v46, 0.0  ;;  %v4924_v0 = vpop.f32.mrb[27].mxu1  ;;  %v1538_v32 = vadd.f32 %v1537_v24, %v1536_v2  ;;  %v1550_v56 = vsel %vm42_vm2, %v4922_v47, 0.0  ;;  %v1764_v61 = vadd.f32 %v1763_v55, %v1762_v12 }
 0x1f3   :  { %v1564_v25 = vadd.f32 %v1563_v14, %v1562_v23  ;;  %v1576_v10 = vsel %vm42_vm2, %v4924_v0, 0.0  ;;  %v1551_v15 = vadd.f32 %v1550_v56, %v1549_v44  ;;  %v1775_v23 = vadd.f32 %v1774_v26, %v1717_v35 }
 0x1f4   :  { %v1577_v62 = vadd.f32 %v1576_v10, %v1575_v13  ;;  %v1539_v24 = vrot.slane %v1538_v32, 4  ;;  %v1765_v35 = vrot.slane %v1764_v61, 4 }
 0x1f5   :  { %v1565_v14 = vrot.slane %v1564_v25, 4  ;;  %v1552_v2 = vrot.slane %v1551_v15, 4  ;;  %v1777_v6 = vadd.f32 %v1776_v42, %v1775_v23 }
 0x1f6   :  { %v1578_v60 = vrot.slane %v1577_v62, 4  ;;  %v1540_v38 = vadd.f32 %v1539_v24, %v1538_v32  ;;  %v4938_v12 = vadd.f32 %v1765_v35, %v1764_v61 }
 0x1f7   :  { %v1566_v59 = vadd.f32 %v1565_v14, %v1564_v25  ;;  %v1553_v1 = vadd.f32 %v1552_v2, %v1551_v15  ;;  %v1778_v25 = vrot.slane %v1777_v6, 4 }
 0x1f8   :  { %v1579_v63 = vadd.f32 %v1578_v60, %v1577_v62  ;;  %v1541_v44 = vrot.slane %v1540_v38, 2 }
 0x1f9   :  { %v1567_v13 = vrot.slane %v1566_v59, 2  ;;  %v1554_v45 = vrot.slane %v1553_v1, 2  ;;  %v4940_v62 = vadd.f32 %v1778_v25, %v1777_v6 }
 0x1fa   :  { %v1580_v56 = vrot.slane %v1579_v63, 2  ;;  %v1542_v10 = vadd.f32 %v1541_v44, %v1540_v38 }
 0x1fb   :  { %v1568_v34 = vadd.f32 %v1567_v13, %v1566_v59  ;;  %v1555_v54 = vadd.f32 %v1554_v45, %v1553_v1 }
 0x1fc   :  { %v1581_v26 = vadd.f32 %v1580_v56, %v1579_v63  ;;  %v1543_v19 = vrot.slane %v1542_v10, 1 }
 0x1fd   :  { %v1569_v32 = vrot.slane %v1568_v34, 1  ;;  %v1556_v24 = vrot.slane %v1555_v54, 1 }
 0x1fe   :  { %v1582_v27 = vrot.slane %v1581_v26, 1  ;;  %v1544_v15 = vadd.f32 %v1543_v19, %v1542_v10 }
 0x1ff   :  { %v1570_v60 = vadd.f32 %v1569_v32, %v1568_v34  ;;  %v1557_v42 = vadd.f32 %v1556_v24, %v1555_v54 }
 0x200   :  { %v1601_v55 = vmul.f32 0.020408163, %v1544_v15  ;;  %v1583_v14 = vadd.f32 %v1582_v27, %v1581_v26 }
 0x201   :  { %v1603_v20 = vmul.f32 0.020408163, %v1570_v60 }
 0x202   :  { %v4943_v59 = vsub.f32 %v4823_v4, %v1601_v55  ;;  %v4946_v1 = vsub.f32 %v4831_v53, %v1601_v55  ;;  %v4949_v63 = vsub.f32 %v4851_v28, %v1601_v55  ;;  %v4952_v19 = vsub.f32 %v4867_v11, %v1601_v55 }
 0x203   :  { %v4955_v61 = vsub.f32 %v4883_v7, %v1601_v55  ;;  %v4958_v38 = vsub.f32 %v4899_v31, %v1601_v55  ;;  %v4960_v54 = vsub.f32 %v1268_v58, %v1601_v55  ;;  %v4963_v34 = vsub.f32 %v4825_v36, %v1603_v20 }
 0x204   :  { %v1767_v4 = vrot.slane %v4938_v12, 2  ;;  %v1673_v53 = vmul.f32 %v4943_v59, %v4943_v59  ;;  %v1682_v28 = vmul.f32 %v4946_v1, %v4946_v1  ;;  %v1780_v11 = vrot.slane %v4940_v62, 2 }
 0x205   :  { %v1691_v7 = vmul.f32 %v4949_v63, %v4949_v63  ;;  %v4974_v31 = vsub.f32 %v4833_v9, %v1603_v20  ;;  %v1602_v58 = vmul.f32 0.020408163, %v1557_v42  ;;  %v4977_v36 = vsub.f32 %v4853_v8, %v1603_v20 }
 0x206   :  { %v1784_v23 = vadd.f32 %v1682_v28, %v1673_v53  ;;  %v4980_v2 = vsub.f32 %v4869_v30, %v1603_v20  ;;  %v4983_v44 = vsub.f32 %v4885_v17, %v1603_v20  ;;  %v4986_v13 = vsub.f32 %v4901_v18, %v1603_v20 }
 0x207   :  { %v4989_v6 = vsub.f32 %v4915_v46, %v1603_v20  ;;  %v1675_v9 = vmul.f32 %v4963_v34, %v4963_v34  ;;  %v1604_v45 = vmul.f32 0.020408163, %v1583_v14  ;;  %v1700_v8 = vmul.f32 %v4952_v19, %v4952_v19 }
 0x208   :  { %6067 = vst [vmem:[#allocation32_spill] sm:$0xff] %v4983_v44  ;;  %6068 = vst [vmem:[#allocation33_spill] sm:$0xff] %v4986_v13  ;;  %v1709_v30 = vmul.f32 %v4955_v61, %v4955_v61  ;;  %v1785_v56 = vadd.f32 %v1784_v23, %v1691_v7  ;;  %v1684_v17 = vmul.f32 %v4974_v31, %v4974_v31 }
 0x209   :  { %6069 = vst [vmem:[#allocation34_spill] sm:$0xff] %v4989_v6  ;;  %v1718_v18 = vmul.f32 %v4958_v38, %v4958_v38  ;;  %v1727_v46 = vmul.f32 %v4960_v54, %v4960_v54  ;;  %v1693_v10 = vmul.f32 %v4977_v36, %v4977_v36  ;;  %v5006_v26 = vsub.f32 %v4827_v48, %v1602_v58 }
 0x20a   :  { %v1786_v35 = vadd.f32 %v1785_v56, %v1700_v8  ;;  %v1810_v32 = vadd.f32 %v1684_v17, %v1675_v9  ;;  %v5009_v25 = vsub.f32 %v4839_v29, %v1602_v58  ;;  %v5012_v24 = vsub.f32 %v4861_v52, %v1602_v58 }
 0x20b   :  { %v1702_v27 = vmul.f32 %v4980_v2, %v4980_v2  ;;  %v5017_v15 = vsub.f32 %v4873_v3, %v1602_v58  ;;  %v5020_v60 = vsub.f32 %v4889_v57, %v1602_v58  ;;  %v5023_v48 = vsub.f32 %v4905_v16, %v1602_v58 }
 0x20c   :  { %v1787_v55 = vadd.f32 %v1786_v35, %v1709_v30  ;;  %v1811_v20 = vadd.f32 %v1810_v32, %v1693_v10  ;;  %v5026_v29 = vsub.f32 %v4922_v47, %v1602_v58  ;;  %v1674_v52 = vmul.f32 %v5006_v26, %v5006_v26 }
 0x20d   :  { %v1789_v42 = vsel %vm42_vm2, %v1727_v46, 0.0  ;;  %v1711_v3 = vmul.f32 %v4983_v44, %v4983_v44  ;;  %v1720_v57 = vmul.f32 %v4986_v13, %v4986_v13  ;;  %v1683_v16 = vmul.f32 %v5009_v25, %v5009_v25 }
 0x20e   :  { %v1788_v14 = vadd.f32 %v1787_v55, %v1718_v18  ;;  %v1729_v53 = vmul.f32 %v4989_v6, %v4989_v6  ;;  %v1812_v47 = vadd.f32 %v1811_v20, %v1702_v27  ;;  %v1692_v28 = vmul.f32 %v5012_v24, %v5012_v24 }
 0x20f   :  { %v1797_v7 = vadd.f32 %v1683_v16, %v1674_v52  ;;  %v5042_v58 = vsub.f32 %v4829_v50, %v1604_v45  ;;  %v5045_v23 = vsub.f32 %v4841_v40, %v1604_v45  ;;  %v5048_v9 = vsub.f32 %v4863_v5, %v1604_v45 }
 0x210   :  { %v1790_v8 = vadd.f32 %v1789_v42, %v1788_v14  ;;  %v1813_v30 = vadd.f32 %v1812_v47, %v1711_v3  ;;  %v1701_v56 = vmul.f32 %v5017_v15, %v5017_v15  ;;  %v5053_v17 = vsub.f32 %v4875_v22, %v1604_v45 }
 0x211   :  { %v1798_v18 = vadd.f32 %v1797_v7, %v1692_v28  ;;  %v5056_v46 = vsub.f32 %v4891_v41, %v1604_v45  ;;  %v5059_v50 = vsub.f32 %v4907_v39, %v1604_v45  ;;  %v5062_v40 = vsub.f32 %v4924_v0, %v1604_v45 }
 0x212   :  { %v1791_v5 = vrot.slane %v1790_v8, 4  ;;  %v1814_v10 = vadd.f32 %v1813_v30, %v1720_v57  ;;  %v1676_v35 = vmul.f32 %v5042_v58, %v5042_v58  ;;  %v1685_v32 = vmul.f32 %v5045_v23, %v5045_v23 }
 0x213   :  { %v1768_v22 = vadd.f32 %v1767_v4, %v4938_v12  ;;  %v1815_v27 = vsel %vm42_vm2, %v1729_v53, 0.0  ;;  %v1710_v41 = vmul.f32 %v5020_v60, %v5020_v60  ;;  %v1799_v39 = vadd.f32 %v1798_v18, %v1701_v56 }
 0x214   :  { %v1781_v55 = vadd.f32 %v1780_v11, %v4940_v62  ;;  %v1792_v0 = vadd.f32 %v1791_v5, %v1790_v8  ;;  %v1816_v45 = vadd.f32 %v1815_v27, %v1814_v10  ;;  %v1728_v20 = vmul.f32 %v5026_v29, %v5026_v29 }
 0x215   :  { %v1719_v52 = vmul.f32 %v5023_v48, %v5023_v48  ;;  %v1800_v42 = vadd.f32 %v1799_v39, %v1710_v41  ;;  %v1694_v12 = vmul.f32 %v5048_v9, %v5048_v9  ;;  %v1823_v4 = vadd.f32 %v1685_v32, %v1676_v35 }
 0x216   :  { %v1793_v3 = vrot.slane %v1792_v0, 2  ;;  %v1817_v57 = vrot.slane %v1816_v45, 4  ;;  %v1703_v14 = vmul.f32 %v5053_v17, %v5053_v17  ;;  %v1769_v11 = vrot.slane %v1768_v22, 1 }
 0x217   :  { %v1801_v16 = vadd.f32 %v1800_v42, %v1719_v52  ;;  %v1824_v62 = vadd.f32 %v1823_v4, %v1694_v12  ;;  %v1802_v28 = vsel %vm42_vm2, %v1728_v20, 0.0  ;;  %v1782_v7 = vrot.slane %v1781_v55, 1 }
 0x218   :  { %v1794_v53 = vadd.f32 %v1793_v3, %v1792_v0  ;;  %v1818_v47 = vadd.f32 %v1817_v57, %v1816_v45  ;;  %v1712_v30 = vmul.f32 %v5056_v46, %v5056_v46  ;;  %v1730_v10 = vmul.f32 %v5062_v40, %v5062_v40 }
 0x219   :  { %v1803_v8 = vadd.f32 %v1802_v28, %v1801_v16  ;;  %v1825_v56 = vadd.f32 %v1824_v62, %v1703_v14  ;;  %v1721_v32 = vmul.f32 %v5059_v50, %v5059_v50  ;;  %v1770_v41 = vadd.f32 %v1769_v11, %v1768_v22 }
 0x21a   :  { %v1795_v18 = vrot.slane %v1794_v53, 1  ;;  %v1819_v5 = vrot.slane %v1818_v47, 2  ;;  %v1783_v0 = vadd.f32 %v1782_v7, %v1781_v55  ;;  %v1828_v42 = vsel %vm42_vm2, %v1730_v10, 0.0 }
 0x21b   :  { %v1804_v35 = vrot.slane %v1803_v8, 4  ;;  %v1826_v27 = vadd.f32 %v1825_v56, %v1712_v30  ;;  %v1851_v57 = vmul.f32 0.020408163, %v1770_v41 }
 0x21c   :  { %v1820_v39 = vadd.f32 %v1819_v5, %v1818_v47  ;;  %v1796_v52 = vadd.f32 %v1795_v18, %v1794_v53  ;;  %v1852_v16 = vmul.f32 0.020408163, %v1783_v0  ;;  %v5089_v30 = vpop.f32.mrb[28].mxu0  ;;  %v5091_v22 = vpop.f32.mrb[28].mxu1 }
 0x21d   :  { %v1805_v45 = vadd.f32 %v1804_v35, %v1803_v8  ;;  %v1827_v20 = vadd.f32 %v1826_v27, %v1721_v32  ;;  %v1862_v55 = vadd.f32 1e-05, %v1851_v57  ;;  %v1448_v11 = vpop.f32.mrb[29].mxu0  ;;  %v1468_v53 = vpop.f32.mrb[29].mxu1 }
 0x21e   :  { %v1821_v12 = vrot.slane %v1820_v39, 1  ;;  %v1853_v28 = vmul.f32 0.020408163, %v1796_v52  ;;  %v1863_v47 = vadd.f32 1e-05, %v1852_v16 }
 0x21f   :  { %v1806_v4 = vrot.slane %v1805_v45, 2  ;;  %v1829_v3 = vadd.f32 %v1828_v42, %v1827_v20  ;;  %3179 = vrsqrt.f32 %v1862_v55 }
 0x220   :  { %v1822_v6 = vadd.f32 %v1821_v12, %v1820_v39  ;;  %v1864_v56 = vadd.f32 1e-05, %v1853_v28  ;;  %v5093_v18 = vpop.f32.mrb[30].mxu0  ;;  %v5095_v5 = vpop.f32.mrb[30].mxu1  ;;  %3181 = vrsqrt.f32 %v1863_v47 }
 0x221   :  { %v1807_v14 = vadd.f32 %v1806_v4, %v1805_v45  ;;  %v1830_v62 = vrot.slane %v1829_v3, 4  ;;  %v1584_v27 = vadd.f32 %v5093_v18, %v5089_v30  ;;  %v1453_v41 = vpop.f32.mrb[31].mxu0  ;;  %v1473_v39 = vpop.f32.mrb[31].mxu1 }
 0x222   :  { %v1855_v10 = vmul.f32 0.020408163, %v1822_v6  ;;  %3183 = vrsqrt.f32 %v1864_v56  ;;  %v6070_v41 = vcombine.low %v4817_v37, %v4819_v33  ;;  %v1858_v37 = vld [vmem:[%s5989_s4] sm:$0xff] }
 0x223   :  { %v1808_v13 = vrot.slane %v1807_v14, 1  ;;  %v1831_v44 = vadd.f32 %v1830_v62, %v1829_v3 }
 0x224   :  { %v1476_v20 = vpop.f32.mrb[32].mxu1  ;;  %v1866_v52 = vadd.f32 1e-05, %v1855_v10  ;;  %v1897_v39 = vrot.slane %v6070_v41, %v3840_v21 }
 0x225   :  { %v1809_v7 = vadd.f32 %v1808_v13, %v1807_v14  ;;  %v1832_v8 = vrot.slane %v1831_v44, 2  ;;  %v1456_v13 = vpop.f32.mrb[32].mxu0  ;;  %v1478_v6 = vpop.f32.mrb[33].mxu1  ;;  %v1589_v55 = vsel %vm42_vm2, %v1476_v20, 0.0 }
 0x226   :  { %v1585_v12 = vadd.f32 %v1584_v27, %v1456_v13  ;;  %v1458_v4 = vpop.f32.mrb[33].mxu0 }
 0x227   :  { %v1854_v35 = vmul.f32 0.020408163, %v1809_v7  ;;  %v1833_v32 = vadd.f32 %v1832_v8, %v1831_v44 }
 0x228   :  { %v1461_v44 = vpop.f32.mrb[34].mxu0 }
 0x229   :  { %v1865_v0 = vadd.f32 1e-05, %v1854_v35  ;;  %v1834_v45 = vrot.slane %v1833_v32, 1  ;;  %v1586_v16 = vadd.f32 %v1585_v12, %v1461_v44  ;;  %v1463_v14 = vpop.f32.mrb[35].mxu0  ;;  %v3180_v28 = vpop.eup %3179 }
 0x22a   :  { %v3182_v11 = vpop.eup %3181 }
 0x22b   :  { %3185 = vrsqrt.f32 %v1865_v0  ;;  %v1835_v42 = vadd.f32 %v1834_v45, %v1833_v32  ;;  %v1587_v62 = vadd.f32 %v1586_v16, %v5091_v22  ;;  %v1888_v56 = vcombine.low %v3180_v28, %v3182_v11 }
 0x22c   :  { %3187 = vrsqrt.f32 %v1866_v52  ;;  %v3184_v47 = vpop.eup %3183  ;;  %v1986_v11 = vsub.s32 7, %v3837_v51 }
 0x22d   :  { %v1856_v3 = vmul.f32 0.020408163, %v1835_v42  ;;  %v1588_v53 = vadd.f32 %v1587_v62, %v5095_v5  ;;  %v1904_v0 = vrot.slane %v1888_v56, %v3840_v21 }
 0x22f   :  { %v1867_v57 = vadd.f32 1e-05, %v1856_v3  ;;  %v1590_v8 = vadd.f32 %v1589_v55, %v1588_v53  ;;  %v1919_v6 = vcombine.low %v1897_v39, %v1904_v0  ;;  %v5118_v53 = vld [vmem:[%s5990_s5] sm:$0xff]  ;;  %v6080_v39 = vld [vmem:[#allocation4_spill] sm:$0xff] }
 0x230   :  { %6071 = vst [vmem:[#allocation35_spill] sm:$0xff] %v5118_v53 }
 0x231   :  { %3189 = vrsqrt.f32 %v1867_v57  ;;  %v1591_v10 = vrot.slane %v1590_v8, 4  ;;  %v1927_v62 = vrot.slane %v1919_v6, %v3840_v21  ;;  %v6084_v6 = vld [vmem:[#allocation6_spill] sm:$0xff] }
 0x233   :  { %v1592_v27 = vadd.f32 %v1591_v10, %v1590_v8 }
 0x235   :  { %v3186_v7 = vpop.eup %3185  ;;  %v1593_v52 = vrot.slane %v1592_v27, 2 }
 0x236   :  { %v1889_v35 = vcombine.low %v3184_v47, %v3186_v7  ;;  %v3188_v32 = vpop.eup %3187 }
 0x237   :  { %v1594_v4 = vadd.f32 %v1593_v52, %v1592_v27 }
 0x238   :  { %v1911_v42 = vrot.slane %v1889_v35, %v3840_v21 }
 0x239   :  { %v1595_v57 = vrot.slane %v1594_v4, 1 }
 0x23b   :  { %v3190_v45 = vpop.eup %3189  ;;  %v1596_v14 = vadd.f32 %v1595_v57, %v1594_v4  ;;  %v6083_v4 = vld [vmem:[#allocation20_spill] sm:$0xff]  ;;  %v6085_v57 = vld [vmem:[#allocation21_spill] sm:$0xff] }
 0x23c   :  { %v1890_v12 = vcombine.low %v3188_v32, %v3190_v45  ;;  %v6081_v45 = vld [vmem:[#allocation19_spill] sm:$0xff] }
 0x23d   :  { %v1605_v33 = vmul.f32 0.020408163, %v1596_v14 }
 0x23e   :  { %v1918_v3 = vrot.slane %v1890_v12, %v3840_v21 }
 0x23f   :  { %v5121_v47 = vsub.f32 %v5089_v30, %v1605_v33  ;;  %v5124_v7 = vsub.f32 %v5093_v18, %v1605_v33  ;;  %v5126_v8 = vsub.f32 %v1456_v13, %v1605_v33  ;;  %v5128_v56 = vsub.f32 %v1461_v44, %v1605_v33 }
 0x240   :  { %v1920_v16 = vcombine.low %v1911_v42, %v1918_v3  ;;  %v5133_v35 = vsub.f32 %v5091_v22, %v1605_v33  ;;  %v5136_v32 = vsub.f32 %v5095_v5, %v1605_v33  ;;  %v5138_v27 = vsub.f32 %v1476_v20, %v1605_v33  ;;  %v6079_v20 = vld [vmem:[#allocation18_spill] sm:$0xff]  ;;  %v6082_v42 = vld [vmem:[#allocation5_spill] sm:$0xff] }
 0x241   :  { %6072 = vst [vmem:[#allocation36_spill] sm:$0xff] %v5121_v47  ;;  %6073 = vst [vmem:[#allocation37_spill] sm:$0xff] %v5124_v7  ;;  %v2075_v30 = vrot.slane %v5118_v53, %v3875_v43  ;;  %v2071_v22 = vrot.slane %v5118_v53, %v3882_v49 }
 0x242   :  { %v1934_v28 = vrot.slane %v1920_v16, %v3840_v21  ;;  %6074 = vst [vmem:[#allocation38_spill] sm:$0xff] %v5126_v8  ;;  %6075 = vst [vmem:[#allocation39_spill] sm:$0xff] %v5128_v56 }
 0x243   :  { %6076 = vst [vmem:[#allocation40_spill] sm:$0xff] %v5133_v35  ;;  %6077 = vst [vmem:[#allocation41_spill] sm:$0xff] %v5136_v32 }
 0x244   :  { %v1935_v55 = vcombine.low %v1927_v62, %v1934_v28  ;;  %v6086_v28 = vld [vmem:[#allocation7_spill] sm:$0xff] }
 0x246   :  { %v5130_v10 = vmul.f32 %v1935_v55, %v1858_v37 }
 0x248   :  { %v5143_v18 = vrot.slane %v5130_v10, %v1986_v11  ;;  %v1963_v13 = vrot.slane %v5130_v10, %v3875_v43  ;;  %v1959_v44 = vrot.slane %v5130_v10, %v3882_v49  ;;  %v6090_v49 = vld [vmem:[#allocation9_spill] sm:$0xff] }
 0x24a   :  { %v5153_v5 = vmul.f32 %v5143_v18, %v5062_v40  ;;  %v2002_v41 = vmul.f32 %v1963_v13, %v6079_v20  ;;  %v2001_v0 = vmul.f32 %v1959_v44, %v6080_v39  ;;  %v2011_v52 = vmul.f32 %v1963_v13, %v6081_v45 }
 0x24b   :  { %v2010_v12 = vmul.f32 %v1959_v44, %v6082_v42  ;;  %v2020_v43 = vmul.f32 %v1963_v13, %v6083_v4  ;;  %v2019_v3 = vmul.f32 %v1959_v44, %v6084_v6  ;;  %v2029_v16 = vmul.f32 %v1963_v13, %v6085_v57  ;;  %v6087_v42 = vld [vmem:[#allocation22_spill] sm:$0xff]  ;;  %v6088_v4 = vld [vmem:[#allocation8_spill] sm:$0xff] }
 0x24c   :  { %6078 = vst [vmem:[#allocation42_spill] sm:$0xff] %v5153_v5  ;;  %v2114_v14 = vadd.f32 %v2075_v30, %v2002_v41  ;;  %v2113_v62 = vadd.f32 %v2071_v22, %v2001_v0  ;;  %v2028_v37 = vmul.f32 %v1959_v44, %v6086_v28  ;;  %v1978_v40 = vsub.s32 5, %v3837_v51 }
 0x24d   :  { %v2123_v33 = vadd.f32 %v2075_v30, %v2011_v52  ;;  %v2122_v55 = vadd.f32 %v2071_v22, %v2010_v12  ;;  %v1974_v20 = vsub.s32 4, %v3837_v51  ;;  %v6024_v39 = vsub.s32 6, %v3837_v51 }
 0x24e   :  { %2208 = vxpose.xlu1.b32.start [1/7] (short) %v2114_v14, 128  ;;  %2176 = vxpose.xlu0.b32.start [1/7] (short) %v2113_v62, 128  ;;  %v5167_v45 = vrot.slane %v5118_v53, %v1978_v40  ;;  %v5173_v0 = vrot.slane %v5118_v53, %v1986_v11  ;;  %v2038_v12 = vmul.f32 %v1963_v13, %v6087_v42  ;;  %v6092_v42 = vld [vmem:[#allocation10_spill] sm:$0xff] }
 0x24f   :  { %v5170_v41 = vrot.slane %v5118_v53, %v1974_v20  ;;  %v5178_v52 = vrot.slane %v5118_v53, %v6024_v39  ;;  %v2037_v6 = vmul.f32 %v1959_v44, %v6088_v4  ;;  %v1677_v57 = vmul.f32 %v5121_v47, %v5121_v47  ;;  %v6091_v53 = vld [vmem:[#allocation24_spill] sm:$0xff] }
 0x250   :  { %v1686_v14 = vmul.f32 %v5124_v7, %v5124_v7  ;;  %v2132_v62 = vadd.f32 %v2075_v30, %v2020_v43  ;;  %v2131_v28 = vadd.f32 %v2071_v22, %v2019_v3  ;;  %v2046_v39 = vmul.f32 %v1959_v44, %v6090_v49 }
 0x251   :  { %v2056_v21 = vmul.f32 %v1963_v13, %v6091_v53  ;;  %v2055_v5 = vmul.f32 %v1959_v44, %v6092_v42  ;;  %v1704_v4 = vmul.f32 %v5128_v56, %v5128_v56  ;;  %v1713_v43 = vmul.f32 %v5133_v35, %v5133_v35 }
 0x252   :  { %2209 = vxpose.xlu1.b32.cont [2/7] (short) %v2123_v33, 128  ;;  %2177 = vxpose.xlu0.b32.cont [2/7] (short) %v2122_v55, 128  ;;  %v6089_v33 = vld [vmem:[#allocation23_spill] sm:$0xff]  ;;  %v1695_v55 = vmul.f32 %v5126_v8, %v5126_v8  ;;  %v1722_v3 = vmul.f32 %v5136_v32, %v5136_v32  ;;  %v2141_v8 = vadd.f32 %v2075_v30, %v2029_v16 }
 0x253   :  { %v2047_v11 = vmul.f32 %v1963_v13, %v6089_v33  ;;  %v1731_v33 = vmul.f32 %v5138_v27, %v5138_v27  ;;  %v2140_v49 = vadd.f32 %v2071_v22, %v2028_v37  ;;  %v2150_v7 = vadd.f32 %v2075_v30, %v2038_v12 }
 0x254   :  { %v2149_v53 = vadd.f32 %v2071_v22, %v2037_v6  ;;  %v1836_v44 = vadd.f32 %v1686_v14, %v1677_v57  ;;  %v1979_v42 = vrot.slane %v5130_v10, %v1978_v40  ;;  %v2168_v56 = vadd.f32 %v2075_v30, %v2056_v21 }
 0x255   :  { %v2159_v13 = vadd.f32 %v2075_v30, %v2047_v11  ;;  %v2167_v47 = vadd.f32 %v2071_v22, %v2055_v5  ;;  %v2008_v35 = vmul.f32 %v5143_v18, %v5042_v58 }
 0x256   :  { %2210 = vxpose.xlu1.b32.cont [3/7] (short) %v2132_v62, 128  ;;  %2178 = vxpose.xlu0.b32.cont [3/7] (short) %v2131_v28, 128  ;;  %v1975_v62 = vrot.slane %v5130_v10, %v1974_v20  ;;  %v2158_v28 = vadd.f32 %v2071_v22, %v2046_v39  ;;  %v1837_v32 = vadd.f32 %v1836_v44, %v1695_v55 }
 0x257   :  { %v2006_v16 = vmul.f32 %v1979_v42, %v5006_v26  ;;  %v2015_v12 = vmul.f32 %v1979_v42, %v5009_v25  ;;  %v2024_v40 = vmul.f32 %v1979_v42, %v5012_v24  ;;  %v1841_v24 = vsel %vm42_vm2, %v1731_v33, 0.0 }
 0x258   :  { %v2005_v37 = vmul.f32 %v1975_v62, %v4943_v59  ;;  %v2014_v6 = vmul.f32 %v1975_v62, %v4946_v1  ;;  %v2023_v20 = vmul.f32 %v1975_v62, %v4949_v63  ;;  %v1838_v21 = vadd.f32 %v1837_v32, %v1704_v4 }
 0x259   :  { %v5211_v30 = vadd.f32 %v5167_v45, %v2006_v16  ;;  %v5218_v26 = vadd.f32 %v5167_v45, %v2015_v12  ;;  %v5224_v1 = vadd.f32 %v5167_v45, %v2024_v40  ;;  %v2042_v22 = vmul.f32 %v1979_v42, %v5020_v60  ;;  %v6097_v40 = vld [vmem:[#allocation34_spill] sm:$0xff] }
 0x25a   :  { %2211 = vxpose.xlu1.b32.cont [4/7] (short) %v2141_v8, 128  ;;  %2179 = vxpose.xlu0.b32.cont [4/7] (short) %v2140_v49, 128  ;;  %v5214_v58 = vadd.f32 %v5170_v41, %v2005_v37  ;;  %v2033_v8 = vmul.f32 %v1979_v42, %v5017_v15  ;;  %v5221_v59 = vadd.f32 %v5170_v41, %v2014_v6  ;;  %v6095_v37 = vld [vmem:[#allocation33_spill] sm:$0xff]  ;;  %v6096_v6 = vld [vmem:[#allocation42_spill] sm:$0xff] }
 0x25b   :  { %v5227_v63 = vadd.f32 %v5170_v41, %v2023_v20  ;;  %v1839_v25 = vadd.f32 %v1838_v21, %v1713_v43  ;;  %v2032_v15 = vmul.f32 %v1975_v62, %v4952_v19  ;;  %v2041_v5 = vmul.f32 %v1975_v62, %v4955_v61 }
 0x25c   :  { %v5231_v32 = vadd.f32 %v5167_v45, %v2033_v8  ;;  %v2051_v39 = vmul.f32 %v1979_v42, %v5023_v48  ;;  %v2050_v57 = vmul.f32 %v1975_v62, %v4958_v38  ;;  %v2060_v11 = vmul.f32 %v1979_v42, %v5026_v29 }
 0x25d   :  { %v1840_v14 = vadd.f32 %v1839_v25, %v1722_v3  ;;  %v2059_v55 = vmul.f32 %v1975_v62, %v4960_v54  ;;  %v5244_v4 = vadd.f32 %v5167_v45, %v2042_v22  ;;  %v5247_v19 = vadd.f32 %v5170_v41, %v2041_v5 }
 0x25e   :  { %2212 = vxpose.xlu1.b32.cont [5/7] (short) %v2150_v7, 128  ;;  %2180 = vxpose.xlu0.b32.cont [5/7] (short) %v2149_v53, 128  ;;  %v5239_v7 = vadd.f32 %v5170_v41, %v2032_v15  ;;  %v5250_v61 = vadd.f32 %v5167_v45, %v2051_v39  ;;  %v5253_v60 = vadd.f32 %v5170_v41, %v2050_v57  ;;  %v6093_v43 = vsub.s32 6, %v3837_v51 }
 0x25f   :  { %v1842_v38 = vadd.f32 %v1841_v24, %v1840_v14  ;;  %v5256_v48 = vadd.f32 %v5167_v45, %v2060_v11  ;;  %v5259_v54 = vadd.f32 %v5170_v41, %v2059_v55  ;;  %v5262_v29 = vadd.f32 %v5173_v0, %v2008_v35  ;;  %v6098_v11 = vld [vmem:[#allocation2_spill] sm:$0xff] }
 0x260   :  { %v1983_v3 = vrot.slane %v5130_v10, %v6093_v43  ;;  %v2017_v33 = vmul.f32 %v5143_v18, %v5045_v23  ;;  %v2026_v49 = vmul.f32 %v5143_v18, %v5048_v9  ;;  %v2035_v45 = vmul.f32 %v5143_v18, %v5053_v17 }
 0x261   :  { %v1843_v53 = vrot.slane %v1842_v38, 4  ;;  %v2044_v41 = vmul.f32 %v5143_v18, %v5056_v46  ;;  %v2053_v35 = vmul.f32 %v5143_v18, %v5059_v50  ;;  %v1966_v57 = vsub.s32 2, %v3837_v51 }
 0x262   :  { %2213 = vxpose.xlu1.b32.cont [6/7] (short) %v2159_v13, 128  ;;  %2181 = vxpose.xlu0.b32.cont [6/7] (short) %v2158_v28, 128  ;;  %v2007_v13 = vmul.f32 %v1983_v3, %v4963_v34  ;;  %v5279_v44 = vadd.f32 %v5173_v0, %v2017_v33  ;;  %v2016_v23 = vmul.f32 %v1983_v3, %v4974_v31 }
 0x263   :  { %v5283_v42 = vadd.f32 %v5173_v0, %v2026_v49  ;;  %v1844_v9 = vadd.f32 %v1843_v53, %v1842_v38  ;;  %v2025_v17 = vmul.f32 %v1983_v3, %v4977_v36  ;;  %v5287_v46 = vadd.f32 %v5173_v0, %v2035_v45  ;;  %v1859_v38 = vld [vmem:[%s5989_s4 + $0x8] sm:$0x1]  ;;  %v6100_v45 = vld [vmem:[#allocation25_spill] sm:$0xff] }
 0x264   :  { %v5290_v50 = vadd.f32 %v5178_v52, %v2007_v13  ;;  %v5293_v34 = vadd.f32 %v5178_v52, %v2016_v23  ;;  %v2034_v18 = vmul.f32 %v1983_v3, %v4980_v2  ;;  %v5297_v31 = vadd.f32 %v5173_v0, %v2044_v41  ;;  %v6099_v49 = vld [vmem:[#allocation35_spill] sm:$0xff] }
 0x265   :  { %v1845_v62 = vrot.slane %v1844_v9, 2  ;;  %v5304_v28 = vadd.f32 %v5173_v0, %v2053_v35  ;;  %v2052_v12 = vmul.f32 %v1983_v3, %v6095_v37  ;;  %v5312_v2 = vadd.f32 %v5173_v0, %v6096_v6  ;;  %v6101_v35 = vld [vmem:[#allocation11_spill] sm:$0xff] }
 0x266   :  { %2214 = vxpose.xlu1.b32.end [7/7] (short) %v2168_v56, 128  ;;  %2182 = vxpose.xlu0.b32.end [7/7] (short) %v2167_v47, 128  ;;  %v5300_v47 = vadd.f32 %v5178_v52, %v2025_v17  ;;  %v6094_v56 = vld [vmem:[#allocation32_spill] sm:$0xff]  ;;  %v5307_v16 = vadd.f32 %v5178_v52, %v2034_v18  ;;  %v2061_v20 = vmul.f32 %v1983_v3, %v6097_v40  ;;  %v1970_v0 = vsub.s32 3, %v3837_v51  ;;  %v6102_v23 = vld [vmem:[#allocation3_spill] sm:$0xff] }
 0x267   :  { %v2043_v36 = vmul.f32 %v1983_v3, %v6094_v56  ;;  %v1846_v21 = vadd.f32 %v1845_v62, %v1844_v9  ;;  %v5319_v25 = vadd.f32 %v5178_v52, %v2052_v12  ;;  %v2079_v13 = vrot.slane %v6099_v49, %v1966_v57  ;;  %v6103_v56 = vld [vmem:[#allocation26_spill] sm:$0xff]  ;;  %v6105_v40 = vld [vmem:[#allocation27_spill] sm:$0xff] }
 0x268   :  { %v5322_v24 = vadd.f32 %v5178_v52, %v2061_v20  ;;  %v1971_v43 = vrot.slane %v5130_v10, %v1970_v0  ;;  %v2083_v53 = vrot.slane %v6099_v49, %v1970_v0  ;;  %v6108_v0 = vld [vmem:[#allocation14_spill] sm:$0xff]  ;;  %v6111_v49 = vld [vmem:[#allocation36_spill] sm:$0xff] }
 0x269   :  { %v5316_v8 = vadd.f32 %v5178_v52, %v2043_v36  ;;  %v1847_v15 = vrot.slane %v1846_v21, 1  ;;  %v1967_v52 = vrot.slane %v5130_v10, %v1966_v57  ;;  %v6104_v36 = vld [vmem:[#allocation12_spill] sm:$0xff] }
 0x26a   :  { %v2004_v41 = vmul.f32 %v1971_v43, %v6100_v45  ;;  %v2013_v10 = vmul.f32 %v1971_v43, %v6103_v56  ;;  %v2022_v20 = vmul.f32 %v1971_v43, %v6105_v40  ;;  %v6114_v56 = vld [vmem:[#allocation37_spill] sm:$0xff] }
 0x26b   :  { %v1848_v22 = vadd.f32 %v1847_v15, %v1846_v21  ;;  %v2003_v51 = vmul.f32 %v1967_v52, %v6101_v35  ;;  %v2012_v37 = vmul.f32 %v1967_v52, %v6104_v36  ;;  %v6106_v21 = vld [vmem:[#allocation13_spill] sm:$0xff]  ;;  %v2030_v57 = vmul.f32 %v1967_v52, %v6108_v0  ;;  %v6119_v0 = vld [vmem:[#allocation39_spill] sm:$0xff] }
 0x26c   :  { %v2116_v18 = vadd.f32 %v2083_v53, %v2004_v41  ;;  %v2125_v12 = vadd.f32 %v2083_v53, %v2013_v10  ;;  %v2021_v15 = vmul.f32 %v1967_v52, %v6106_v21  ;;  %v6116_v40 = vld [vmem:[#allocation17_spill] sm:$0xff]  ;;  %v6117_v21 = vld [vmem:[#allocation38_spill] sm:$0xff] }
 0x26d   :  { %v1857_v5 = vmul.f32 0.020408163, %v1848_v22  ;;  %v2115_v62 = vadd.f32 %v2079_v13, %v2003_v51  ;;  %v2124_v6 = vadd.f32 %v2079_v13, %v2012_v37  ;;  %v2134_v22 = vadd.f32 %v2083_v53, %v2022_v20  ;;  %v6112_v51 = vld [vmem:[#allocation30_spill] sm:$0xff] }
 0x26e   :  { %v2057_v20 = vmul.f32 %v1967_v52, %v6116_v40 }
 0x26f   :  { %v1868_v39 = vadd.f32 1e-05, %v1857_v5  ;;  %v2133_v5 = vadd.f32 %v2079_v13, %v2021_v15 }
 0x271   :  { %3191 = vrsqrt.f32 %v1868_v39 }
 0x27b   :  { %v3192_v14 = vpop.eup %3191 }
 0x27c   :  { %v1942_v55 = vrot.slane %v3192_v14, %v6098_v11 }
 0x27e   :  { %v1949_v3 = vrot.slane %v1942_v55, %v6098_v11  ;;  %v2142_v11 = vadd.f32 %v2079_v13, %v2030_v57  ;;  %v6109_v55 = vld [vmem:[#allocation29_spill] sm:$0xff] }
 0x280   :  { %v1953_v33 = vmul.f32 %v1949_v3, %v1859_v38  ;;  %v2040_v38 = vmul.f32 %v1971_v43, %v6109_v55  ;;  %v6110_v3 = vld [vmem:[#allocation15_spill] sm:$0xff] }
 0x282   :  { %v1991_v9 = vrot.slane %v1953_v33, %v6102_v23  ;;  %v2039_v33 = vmul.f32 %v1967_v52, %v6110_v3  ;;  %v2152_v41 = vadd.f32 %v2083_v53, %v2040_v38  ;;  %v2049_v23 = vmul.f32 %v1971_v43, %v6112_v51 }
 0x284   :  { %v5339_v17 = vmul.f32 %v1991_v9, %v5138_v27  ;;  %v6107_v27 = vld [vmem:[#allocation28_spill] sm:$0xff]  ;;  %v5350_v45 = vmul.f32 %v1991_v9, %v6111_v49  ;;  %v2151_v35 = vadd.f32 %v2079_v13, %v2039_v33  ;;  %v5355_v10 = vmul.f32 %v1991_v9, %v6114_v56 }
 0x285   :  { %v2031_v39 = vmul.f32 %v1971_v43, %v6107_v27  ;;  %v2161_v36 = vadd.f32 %v2083_v53, %v2049_v23  ;;  %v5360_v15 = vmul.f32 %v1991_v9, %v6117_v21  ;;  %v5366_v57 = vmul.f32 %v1991_v9, %v6119_v0 }
 0x287   :  { %v2143_v14 = vadd.f32 %v2083_v53, %v2031_v39  ;;  %v2169_v39 = vadd.f32 %v2079_v13, %v2057_v20 }
 0x28b   :  { %2272 = vxpose.xlu1.b32.start [1/7] (short) %v2116_v18, 128  ;;  %2240 = vxpose.xlu0.b32.start [1/7] (short) %v2115_v62, 128  ;;  %v6113_v18 = vld [vmem:[#allocation16_spill] sm:$0xff] }
 0x28c   :  { %v2048_v62 = vmul.f32 %v1967_v52, %v6113_v18 }
 0x28e   :  { %v2160_v37 = vadd.f32 %v2079_v13, %v2048_v62 }
 0x28f   :  { %2273 = vxpose.xlu1.b32.cont [2/7] (short) %v2125_v12, 128  ;;  %2241 = vxpose.xlu0.b32.cont [2/7] (short) %v2124_v6, 128  ;;  %v6115_v12 = vld [vmem:[#allocation31_spill] sm:$0xff] }
 0x290   :  { %v2058_v6 = vmul.f32 %v1971_v43, %v6115_v12 }
 0x292   :  { %v2170_v27 = vadd.f32 %v2083_v53, %v2058_v6 }
 0x293   :  { %2274 = vxpose.xlu1.b32.cont [3/7] (short) %v2134_v22, 128  ;;  %2242 = vxpose.xlu0.b32.cont [3/7] (short) %v2133_v5, 128  ;;  %v6118_v22 = vld [vmem:[#allocation40_spill] sm:$0xff] }
 0x294   :  { %v5363_v5 = vmul.f32 %v1991_v9, %v6118_v22 }
 0x297   :  { %2275 = vxpose.xlu1.b32.cont [4/7] (short) %v2143_v14, 128  ;;  %2243 = vxpose.xlu0.b32.cont [4/7] (short) %v2142_v11, 128  ;;  %v6120_v14 = vld [vmem:[#allocation41_spill] sm:$0xff] }
 0x298   :  { %v5369_v11 = vmul.f32 %v1991_v9, %v6120_v14 }
 0x29b   :  { %2276 = vxpose.xlu1.b32.cont [5/7] (short) %v2152_v41, 128  ;;  %2244 = vxpose.xlu0.b32.cont [5/7] (short) %v2151_v35, 128 }
 0x29f   :  { %2277 = vxpose.xlu1.b32.cont [6/7] (short) %v2161_v36, 128  ;;  %2245 = vxpose.xlu0.b32.cont [6/7] (short) %v2160_v37, 128 }
 0x2a3   :  { %2278 = vxpose.xlu1.b32.end [7/7] (short) %v2170_v27, 128  ;;  %2246 = vxpose.xlu0.b32.end [7/7] (short) %v2169_v39, 128 }
 0x2c8   :  { %2336 = vxpose.xlu1.b32.start [1/7] (short) %v5211_v30, 128  ;;  %2304 = vxpose.xlu0.b32.start [1/7] (short) %v5214_v58, 128 }
 0x2cc   :  { %2337 = vxpose.xlu1.b32.cont [2/7] (short) %v5218_v26, 128  ;;  %2305 = vxpose.xlu0.b32.cont [2/7] (short) %v5221_v59, 128 }
 0x2ce   :  { %v2224_v43 = vpop.trf.xlu1  ;;  %v2192_v52 = vpop.trf.xlu0 }
 0x2cf   :  { %2481 = vst.msk [vmem:[%s5991_s6 + $0x80] sm:$0xff] %vm2464_vm4, %v2224_v43  ;;  %2465 = vst.msk [vmem:[%s5991_s6] sm:$0xff] %vm2464_vm4, %v2192_v52  ;;  %v2792_v52 = vld [vmem:[%s5990_s5 + $0x8] ss:$0 sm:$0xff] }
 0x2d0   :  { %2338 = vxpose.xlu1.b32.cont [3/7] (short) %v5224_v1, 128  ;;  %2306 = vxpose.xlu0.b32.cont [3/7] (short) %v5227_v63, 128 }
 0x2d2   :  { %v2225_v30 = vpop.trf.xlu1  ;;  %v2193_v58 = vpop.trf.xlu0 }
 0x2d3   :  { %2482 = vst.msk [vmem:[%s5991_s6 + $0x88] sm:$0xff] %vm2464_vm4, %v2225_v30  ;;  %2466 = vst.msk [vmem:[%s5991_s6 + $0x8] sm:$0xff] %vm2464_vm4, %v2193_v58 }
 0x2d4   :  { %2339 = vxpose.xlu1.b32.cont [4/7] (short) %v5231_v32, 128  ;;  %2307 = vxpose.xlu0.b32.cont [4/7] (short) %v5239_v7, 128 }
 0x2d6   :  { %v2226_v26 = vpop.trf.xlu1  ;;  %v2194_v59 = vpop.trf.xlu0 }
 0x2d7   :  { %2483 = vst.msk [vmem:[%s5991_s6 + $0x90] sm:$0xff] %vm2464_vm4, %v2226_v26  ;;  %2467 = vst.msk [vmem:[%s5991_s6 + $0x10] sm:$0xff] %vm2464_vm4, %v2194_v59  ;;  %v2121_v26 = vadd.f32 %v2792_v52, %v5350_v45  ;;  %v2139_v45 = vadd.f32 %v2792_v52, %v5360_v15  ;;  %v2157_v15 = vadd.f32 %v2792_v52, %v5363_v5 }
 0x2d8   :  { %2340 = vxpose.xlu1.b32.cont [5/7] (short) %v5244_v4, 128  ;;  %2308 = vxpose.xlu0.b32.cont [5/7] (short) %v5247_v19, 128  ;;  %v2175_v5 = vadd.f32 %v2792_v52, %v5339_v17 }
 0x2da   :  { %v2227_v1 = vpop.trf.xlu1  ;;  %v2195_v63 = vpop.trf.xlu0 }
 0x2db   :  { %2484 = vst.msk [vmem:[%s5991_s6 + $0x98] sm:$0xff] %vm2464_vm4, %v2227_v1  ;;  %2468 = vst.msk [vmem:[%s5991_s6 + $0x18] sm:$0xff] %vm2464_vm4, %v2195_v63  ;;  %v2130_v63 = vadd.f32 %v2792_v52, %v5355_v10  ;;  %v2148_v10 = vadd.f32 %v2792_v52, %v5366_v57  ;;  %v2166_v57 = vadd.f32 %v2792_v52, %v5369_v11 }
 0x2dc   :  { %2341 = vxpose.xlu1.b32.cont [6/7] (short) %v5250_v61, 128  ;;  %2309 = vxpose.xlu0.b32.cont [6/7] (short) %v5253_v60, 128 }
 0x2de   :  { %v2228_v32 = vpop.trf.xlu1  ;;  %v2196_v7 = vpop.trf.xlu0 }
 0x2df   :  { %2485 = vst.msk [vmem:[%s5991_s6 + $0xa0] sm:$0xff] %vm2464_vm4, %v2228_v32  ;;  %2469 = vst.msk [vmem:[%s5991_s6 + $0x20] sm:$0xff] %vm2464_vm4, %v2196_v7 }
 0x2e0   :  { %2342 = vxpose.xlu1.b32.end [7/7] (short) %v5256_v48, 128  ;;  %2310 = vxpose.xlu0.b32.end [7/7] (short) %v5259_v54, 128 }
 0x2e2   :  { %v2229_v4 = vpop.trf.xlu1  ;;  %v2197_v19 = vpop.trf.xlu0 }
 0x2e3   :  { %2486 = vst.msk [vmem:[%s5991_s6 + $0xa8] sm:$0xff] %vm2464_vm4, %v2229_v4  ;;  %2470 = vst.msk [vmem:[%s5991_s6 + $0x28] sm:$0xff] %vm2464_vm4, %v2197_v19 }
 0x2e6   :  { %v2230_v61 = vpop.trf.xlu1  ;;  %v2198_v60 = vpop.trf.xlu0 }
 0x2e7   :  { %2487 = vst.msk [vmem:[%s5991_s6 + $0xb0] sm:$0xff] %vm2464_vm4, %v2230_v61  ;;  %2471 = vst.msk [vmem:[%s5991_s6 + $0x30] sm:$0xff] %vm2464_vm4, %v2198_v60 }
 0x2ea   :  { %v2231_v48 = vpop.trf.xlu1  ;;  %v2199_v54 = vpop.trf.xlu0 }
 0x2eb   :  { %2488 = vst.msk [vmem:[%s5991_s6 + $0xb8] sm:$0xff] %vm2464_vm4, %v2231_v48  ;;  %2472 = vst.msk [vmem:[%s5991_s6 + $0x38] sm:$0xff] %vm2464_vm4, %v2199_v54 }
 0x2ee   :  { %v2232_v53 = vpop.trf.xlu1  ;;  %v2200_v13 = vpop.trf.xlu0 }
 0x2ef   :  { %2489 = vst.msk [vmem:[%s5991_s6 + $0xc0] sm:$0xff] %vm2464_vm4, %v2232_v53  ;;  %2473 = vst.msk [vmem:[%s5991_s6 + $0x40] sm:$0xff] %vm2464_vm4, %v2200_v13 }
 0x2f2   :  { %v2233_v9 = vpop.trf.xlu1  ;;  %v2201_v55 = vpop.trf.xlu0 }
 0x2f3   :  { %2490 = vst.msk [vmem:[%s5991_s6 + $0xc8] sm:$0xff] %vm2464_vm4, %v2233_v9  ;;  %2474 = vst.msk [vmem:[%s5991_s6 + $0x48] sm:$0xff] %vm2464_vm4, %v2201_v55 }
 0x2f6   :  { %v2234_v38 = vpop.trf.xlu1  ;;  %v2202_v3 = vpop.trf.xlu0 }
 0x2f7   :  { %2491 = vst.msk [vmem:[%s5991_s6 + $0xd0] sm:$0xff] %vm2464_vm4, %v2234_v38  ;;  %2475 = vst.msk [vmem:[%s5991_s6 + $0x50] sm:$0xff] %vm2464_vm4, %v2202_v3 }
 0x2fa   :  { %v2235_v33 = vpop.trf.xlu1  ;;  %v2203_v49 = vpop.trf.xlu0 }
 0x2fb   :  { %2492 = vst.msk [vmem:[%s5991_s6 + $0xd8] sm:$0xff] %vm2464_vm4, %v2235_v33  ;;  %2476 = vst.msk [vmem:[%s5991_s6 + $0x58] sm:$0xff] %vm2464_vm4, %v2203_v49 }
 0x2fe   :  { %v2236_v41 = vpop.trf.xlu1  ;;  %v2204_v35 = vpop.trf.xlu0 }
 0x2ff   :  { %2493 = vst.msk [vmem:[%s5991_s6 + $0xe0] sm:$0xff] %vm2464_vm4, %v2236_v41  ;;  %2477 = vst.msk [vmem:[%s5991_s6 + $0x60] sm:$0xff] %vm2464_vm4, %v2204_v35 }
 0x302   :  { %v2237_v51 = vpop.trf.xlu1  ;;  %v2205_v23 = vpop.trf.xlu0 }
 0x303   :  { %2494 = vst.msk [vmem:[%s5991_s6 + $0xe8] sm:$0xff] %vm2464_vm4, %v2237_v51  ;;  %2478 = vst.msk [vmem:[%s5991_s6 + $0x68] sm:$0xff] %vm2464_vm4, %v2205_v23 }
 0x306   :  { %v2238_v18 = vpop.trf.xlu1  ;;  %2400 = vxpose.xlu1.b32.start [1/7] (short) %v5262_v29, 128  ;;  %v2206_v62 = vpop.trf.xlu0  ;;  %2368 = vxpose.xlu0.b32.start [1/7] (short) %v5290_v50, 128 }
 0x307   :  { %2495 = vst.msk [vmem:[%s5991_s6 + $0xf0] sm:$0xff] %vm2464_vm4, %v2238_v18  ;;  %2479 = vst.msk [vmem:[%s5991_s6 + $0x70] sm:$0xff] %vm2464_vm4, %v2206_v62 }
 0x30a   :  { %2401 = vxpose.xlu1.b32.cont [2/7] (short) %v5279_v44, 128  ;;  %2369 = vxpose.xlu0.b32.cont [2/7] (short) %v5293_v34, 128  ;;  %v2207_v56 = vpop.trf.xlu0  ;;  %v2239_v36 = vpop.trf.xlu1 }
 0x30b   :  { %2480 = vst.msk [vmem:[%s5991_s6 + $0x78] sm:$0xff] %vm2464_vm4, %v2207_v56  ;;  %2496 = vst.msk [vmem:[%s5991_s6 + $0xf8] sm:$0xff] %vm2464_vm4, %v2239_v36 }
 0x30e   :  { %2402 = vxpose.xlu1.b32.cont [3/7] (short) %v5283_v42, 128  ;;  %2370 = vxpose.xlu0.b32.cont [3/7] (short) %v5300_v47, 128  ;;  %v2256_v29 = vpop.trf.xlu0  ;;  %v2288_v44 = vpop.trf.xlu1 }
 0x30f   :  { %2497 = vst.msk [vmem:[%s5991_s6 + $0x100] sm:$0xff] %vm2464_vm4, %v2256_v29  ;;  %2513 = vst.msk [vmem:[%s5991_s6 + $0x180] sm:$0xff] %vm2464_vm4, %v2288_v44 }
 0x312   :  { %2403 = vxpose.xlu1.b32.cont [4/7] (short) %v5287_v46, 128  ;;  %2371 = vxpose.xlu0.b32.cont [4/7] (short) %v5307_v16, 128  ;;  %v2257_v50 = vpop.trf.xlu0  ;;  %v2289_v42 = vpop.trf.xlu1 }
 0x313   :  { %2498 = vst.msk [vmem:[%s5991_s6 + $0x108] sm:$0xff] %vm2464_vm4, %v2257_v50  ;;  %2514 = vst.msk [vmem:[%s5991_s6 + $0x188] sm:$0xff] %vm2464_vm4, %v2289_v42 }
 0x316   :  { %2404 = vxpose.xlu1.b32.cont [5/7] (short) %v5297_v31, 128  ;;  %2372 = vxpose.xlu0.b32.cont [5/7] (short) %v5316_v8, 128  ;;  %v2258_v34 = vpop.trf.xlu0  ;;  %v2290_v46 = vpop.trf.xlu1 }
 0x317   :  { %2499 = vst.msk [vmem:[%s5991_s6 + $0x110] sm:$0xff] %vm2464_vm4, %v2258_v34  ;;  %2515 = vst.msk [vmem:[%s5991_s6 + $0x190] sm:$0xff] %vm2464_vm4, %v2290_v46 }
 0x31a   :  { %2405 = vxpose.xlu1.b32.cont [6/7] (short) %v5304_v28, 128  ;;  %2373 = vxpose.xlu0.b32.cont [6/7] (short) %v5319_v25, 128  ;;  %v2259_v47 = vpop.trf.xlu0  ;;  %v2291_v31 = vpop.trf.xlu1 }
 0x31b   :  { %2500 = vst.msk [vmem:[%s5991_s6 + $0x118] sm:$0xff] %vm2464_vm4, %v2259_v47  ;;  %2516 = vst.msk [vmem:[%s5991_s6 + $0x198] sm:$0xff] %vm2464_vm4, %v2291_v31 }
 0x31e   :  { %2406 = vxpose.xlu1.b32.end [7/7] (short) %v5312_v2, 128  ;;  %2374 = vxpose.xlu0.b32.end [7/7] (short) %v5322_v24, 128  ;;  %v2260_v16 = vpop.trf.xlu0  ;;  %v2292_v28 = vpop.trf.xlu1 }
 0x31f   :  { %2501 = vst.msk [vmem:[%s5991_s6 + $0x120] sm:$0xff] %vm2464_vm4, %v2260_v16  ;;  %2517 = vst.msk [vmem:[%s5991_s6 + $0x1a0] sm:$0xff] %vm2464_vm4, %v2292_v28 }
 0x322   :  { %v2261_v8 = vpop.trf.xlu0  ;;  %v2293_v25 = vpop.trf.xlu1 }
 0x323   :  { %2502 = vst.msk [vmem:[%s5991_s6 + $0x128] sm:$0xff] %vm2464_vm4, %v2261_v8  ;;  %2518 = vst.msk [vmem:[%s5991_s6 + $0x1a8] sm:$0xff] %vm2464_vm4, %v2293_v25 }
 0x326   :  { %v2262_v2 = vpop.trf.xlu0  ;;  %v2294_v24 = vpop.trf.xlu1 }
 0x327   :  { %2503 = vst.msk [vmem:[%s5991_s6 + $0x130] sm:$0xff] %vm2464_vm4, %v2262_v2  ;;  %2519 = vst.msk [vmem:[%s5991_s6 + $0x1b0] sm:$0xff] %vm2464_vm4, %v2294_v24 }
 0x32a   :  { %v2263_v37 = vpop.trf.xlu0  ;;  %v2295_v12 = vpop.trf.xlu1 }
 0x32b   :  { %2504 = vst.msk [vmem:[%s5991_s6 + $0x138] sm:$0xff] %vm2464_vm4, %v2263_v37  ;;  %2520 = vst.msk [vmem:[%s5991_s6 + $0x1b8] sm:$0xff] %vm2464_vm4, %v2295_v12 }
 0x32e   :  { %v2264_v6 = vpop.trf.xlu0  ;;  %v2296_v40 = vpop.trf.xlu1 }
 0x32f   :  { %2505 = vst.msk [vmem:[%s5991_s6 + $0x140] sm:$0xff] %vm2464_vm4, %v2264_v6  ;;  %2521 = vst.msk [vmem:[%s5991_s6 + $0x1c0] sm:$0xff] %vm2464_vm4, %v2296_v40 }
 0x332   :  { %v2265_v20 = vpop.trf.xlu0  ;;  %v2297_v21 = vpop.trf.xlu1 }
 0x333   :  { %2506 = vst.msk [vmem:[%s5991_s6 + $0x148] sm:$0xff] %vm2464_vm4, %v2265_v20  ;;  %2522 = vst.msk [vmem:[%s5991_s6 + $0x1c8] sm:$0xff] %vm2464_vm4, %v2297_v21 }
 0x336   :  { %v2266_v22 = vpop.trf.xlu0  ;;  %v2298_v27 = vpop.trf.xlu1 }
 0x337   :  { %2507 = vst.msk [vmem:[%s5991_s6 + $0x150] sm:$0xff] %vm2464_vm4, %v2266_v22  ;;  %2523 = vst.msk [vmem:[%s5991_s6 + $0x1d0] sm:$0xff] %vm2464_vm4, %v2298_v27 }
 0x33a   :  { %v2267_v39 = vpop.trf.xlu0  ;;  %v2299_v0 = vpop.trf.xlu1 }
 0x33b   :  { %2508 = vst.msk [vmem:[%s5991_s6 + $0x158] sm:$0xff] %vm2464_vm4, %v2267_v39  ;;  %2524 = vst.msk [vmem:[%s5991_s6 + $0x1d8] sm:$0xff] %vm2464_vm4, %v2299_v0 }
 0x33e   :  { %v2268_v14 = vpop.trf.xlu0  ;;  %v2300_v43 = vpop.trf.xlu1 }
 0x33f   :  { %2509 = vst.msk [vmem:[%s5991_s6 + $0x160] sm:$0xff] %vm2464_vm4, %v2268_v14  ;;  %2525 = vst.msk [vmem:[%s5991_s6 + $0x1e0] sm:$0xff] %vm2464_vm4, %v2300_v43 }
 0x342   :  { %v2269_v30 = vpop.trf.xlu0  ;;  %v2301_v58 = vpop.trf.xlu1 }
 0x343   :  { %2510 = vst.msk [vmem:[%s5991_s6 + $0x168] sm:$0xff] %vm2464_vm4, %v2269_v30  ;;  %2526 = vst.msk [vmem:[%s5991_s6 + $0x1e8] sm:$0xff] %vm2464_vm4, %v2301_v58 }
 0x346   :  { %v2270_v59 = vpop.trf.xlu0  ;;  %2432 = vxpose.xlu0.b32.start [1/7] (short) %v2121_v26, 128  ;;  %v2302_v1 = vpop.trf.xlu1 }
 0x347   :  { %2511 = vst.msk [vmem:[%s5991_s6 + $0x170] sm:$0xff] %vm2464_vm4, %v2270_v59  ;;  %2527 = vst.msk [vmem:[%s5991_s6 + $0x1f0] sm:$0xff] %vm2464_vm4, %v2302_v1 }
 0x34a   :  { %v2271_v32 = vpop.trf.xlu0  ;;  %2433 = vxpose.xlu0.b32.cont [2/7] (short) %v2130_v63, 128  ;;  %v2303_v7 = vpop.trf.xlu1 }
 0x34b   :  { %2512 = vst.msk [vmem:[%s5991_s6 + $0x178] sm:$0xff] %vm2464_vm4, %v2271_v32  ;;  %2528 = vst.msk [vmem:[%s5991_s6 + $0x1f8] sm:$0xff] %vm2464_vm4, %v2303_v7 }
 0x34e   :  { %v2320_v4 = vpop.trf.xlu0  ;;  %2434 = vxpose.xlu0.b32.cont [3/7] (short) %v2139_v45, 128  ;;  %v2352_v19 = vpop.trf.xlu1 }
 0x34f   :  { %2529 = vst.msk [vmem:[%s5991_s6 + $0x200] sm:$0xff] %vm2464_vm4, %v2320_v4  ;;  %2545 = vst.msk [vmem:[%s5991_s6 + $0x280] sm:$0xff] %vm2464_vm4, %v2352_v19 }
 0x352   :  { %v2321_v61 = vpop.trf.xlu0  ;;  %2435 = vxpose.xlu0.b32.cont [4/7] (short) %v2148_v10, 128  ;;  %v2353_v60 = vpop.trf.xlu1 }
 0x353   :  { %2530 = vst.msk [vmem:[%s5991_s6 + $0x208] sm:$0xff] %vm2464_vm4, %v2321_v61  ;;  %2546 = vst.msk [vmem:[%s5991_s6 + $0x288] sm:$0xff] %vm2464_vm4, %v2353_v60 }
 0x356   :  { %v2322_v48 = vpop.trf.xlu0  ;;  %2436 = vxpose.xlu0.b32.cont [5/7] (short) %v2157_v15, 128  ;;  %v2354_v54 = vpop.trf.xlu1 }
 0x357   :  { %2531 = vst.msk [vmem:[%s5991_s6 + $0x210] sm:$0xff] %vm2464_vm4, %v2322_v48  ;;  %2547 = vst.msk [vmem:[%s5991_s6 + $0x290] sm:$0xff] %vm2464_vm4, %v2354_v54 }
 0x35a   :  { %v2323_v53 = vpop.trf.xlu0  ;;  %2437 = vxpose.xlu0.b32.cont [6/7] (short) %v2166_v57, 128  ;;  %v2355_v13 = vpop.trf.xlu1 }
 0x35b   :  { %2532 = vst.msk [vmem:[%s5991_s6 + $0x218] sm:$0xff] %vm2464_vm4, %v2323_v53  ;;  %2548 = vst.msk [vmem:[%s5991_s6 + $0x298] sm:$0xff] %vm2464_vm4, %v2355_v13 }
 0x35e   :  { %v2324_v9 = vpop.trf.xlu0  ;;  %2438 = vxpose.xlu0.b32.end [7/7] (short) %v2175_v5, 128  ;;  %v2356_v55 = vpop.trf.xlu1 }
 0x35f   :  { %2533 = vst.msk [vmem:[%s5991_s6 + $0x220] sm:$0xff] %vm2464_vm4, %v2324_v9  ;;  %2549 = vst.msk [vmem:[%s5991_s6 + $0x2a0] sm:$0xff] %vm2464_vm4, %v2356_v55 }
 0x362   :  { %v2325_v11 = vpop.trf.xlu0  ;;  %v2357_v38 = vpop.trf.xlu1 }
 0x363   :  { %2534 = vst.msk [vmem:[%s5991_s6 + $0x228] sm:$0xff] %vm2464_vm4, %v2325_v11  ;;  %2550 = vst.msk [vmem:[%s5991_s6 + $0x2a8] sm:$0xff] %vm2464_vm4, %v2357_v38 }
 0x366   :  { %v2326_v17 = vpop.trf.xlu0  ;;  %v2358_v3 = vpop.trf.xlu1 }
 0x367   :  { %2535 = vst.msk [vmem:[%s5991_s6 + $0x230] sm:$0xff] %vm2464_vm4, %v2326_v17  ;;  %2551 = vst.msk [vmem:[%s5991_s6 + $0x2b0] sm:$0xff] %vm2464_vm4, %v2358_v3 }
 0x36a   :  { %v2327_v33 = vpop.trf.xlu0  ;;  %v2359_v49 = vpop.trf.xlu1 }
 0x36b   :  { %2536 = vst.msk [vmem:[%s5991_s6 + $0x238] sm:$0xff] %vm2464_vm4, %v2327_v33  ;;  %2552 = vst.msk [vmem:[%s5991_s6 + $0x2b8] sm:$0xff] %vm2464_vm4, %v2359_v49 }
 0x36e   :  { %v2328_v41 = vpop.trf.xlu0  ;;  %v2360_v35 = vpop.trf.xlu1 }
 0x36f   :  { %2537 = vst.msk [vmem:[%s5991_s6 + $0x240] sm:$0xff] %vm2464_vm4, %v2328_v41  ;;  %2553 = vst.msk [vmem:[%s5991_s6 + $0x2c0] sm:$0xff] %vm2464_vm4, %v2360_v35 }
 0x372   :  { %v2329_v51 = vpop.trf.xlu0  ;;  %v2361_v23 = vpop.trf.xlu1 }
 0x373   :  { %2538 = vst.msk [vmem:[%s5991_s6 + $0x248] sm:$0xff] %vm2464_vm4, %v2329_v51  ;;  %2554 = vst.msk [vmem:[%s5991_s6 + $0x2c8] sm:$0xff] %vm2464_vm4, %v2361_v23 }
 0x376   :  { %v2330_v18 = vpop.trf.xlu0  ;;  %v2362_v62 = vpop.trf.xlu1 }
 0x377   :  { %2539 = vst.msk [vmem:[%s5991_s6 + $0x250] sm:$0xff] %vm2464_vm4, %v2330_v18  ;;  %2555 = vst.msk [vmem:[%s5991_s6 + $0x2d0] sm:$0xff] %vm2464_vm4, %v2362_v62 }
 0x37a   :  { %v2331_v56 = vpop.trf.xlu0  ;;  %v2363_v36 = vpop.trf.xlu1 }
 0x37b   :  { %2540 = vst.msk [vmem:[%s5991_s6 + $0x258] sm:$0xff] %vm2464_vm4, %v2331_v56  ;;  %2556 = vst.msk [vmem:[%s5991_s6 + $0x2d8] sm:$0xff] %vm2464_vm4, %v2363_v36 }
 0x37e   :  { %v2332_v29 = vpop.trf.xlu0  ;;  %v2364_v44 = vpop.trf.xlu1 }
 0x37f   :  { %2541 = vst.msk [vmem:[%s5991_s6 + $0x260] sm:$0xff] %vm2464_vm4, %v2332_v29  ;;  %2557 = vst.msk [vmem:[%s5991_s6 + $0x2e0] sm:$0xff] %vm2464_vm4, %v2364_v44 }
 0x382   :  { %v2333_v50 = vpop.trf.xlu0  ;;  %v2365_v42 = vpop.trf.xlu1 }
 0x383   :  { %2542 = vst.msk [vmem:[%s5991_s6 + $0x268] sm:$0xff] %vm2464_vm4, %v2333_v50  ;;  %2558 = vst.msk [vmem:[%s5991_s6 + $0x2e8] sm:$0xff] %vm2464_vm4, %v2365_v42 }
 0x386   :  { %v2334_v34 = vpop.trf.xlu0  ;;  %v2366_v46 = vpop.trf.xlu1 }
 0x387   :  { %2543 = vst.msk [vmem:[%s5991_s6 + $0x270] sm:$0xff] %vm2464_vm4, %v2334_v34  ;;  %2559 = vst.msk [vmem:[%s5991_s6 + $0x2f0] sm:$0xff] %vm2464_vm4, %v2366_v46 }
 0x38a   :  { %v2335_v47 = vpop.trf.xlu0  ;;  %v2367_v31 = vpop.trf.xlu1 }
 0x38b   :  { %2544 = vst.msk [vmem:[%s5991_s6 + $0x278] sm:$0xff] %vm2464_vm4, %v2335_v47  ;;  %2560 = vst.msk [vmem:[%s5991_s6 + $0x2f8] sm:$0xff] %vm2464_vm4, %v2367_v31 }
 0x38e   :  { %v2384_v16 = vpop.trf.xlu0  ;;  %v2416_v28 = vpop.trf.xlu1 }
 0x38f   :  { %2561 = vst.msk [vmem:[%s5991_s6 + $0x300] sm:$0xff] %vm2464_vm4, %v2384_v16  ;;  %2577 = vst.msk [vmem:[%s5991_s6 + $0x380] sm:$0xff] %vm2464_vm4, %v2416_v28 }
 0x392   :  { %v2385_v8 = vpop.trf.xlu0  ;;  %v2417_v25 = vpop.trf.xlu1 }
 0x393   :  { %2562 = vst.msk [vmem:[%s5991_s6 + $0x308] sm:$0xff] %vm2464_vm4, %v2385_v8  ;;  %2578 = vst.msk [vmem:[%s5991_s6 + $0x388] sm:$0xff] %vm2464_vm4, %v2417_v25 }
 0x396   :  { %v2386_v2 = vpop.trf.xlu0  ;;  %v2418_v24 = vpop.trf.xlu1 }
 0x397   :  { %2563 = vst.msk [vmem:[%s5991_s6 + $0x310] sm:$0xff] %vm2464_vm4, %v2386_v2  ;;  %2579 = vst.msk [vmem:[%s5991_s6 + $0x390] sm:$0xff] %vm2464_vm4, %v2418_v24 }
 0x39a   :  { %v2387_v37 = vpop.trf.xlu0  ;;  %v2419_v12 = vpop.trf.xlu1 }
 0x39b   :  { %2564 = vst.msk [vmem:[%s5991_s6 + $0x318] sm:$0xff] %vm2464_vm4, %v2387_v37  ;;  %2580 = vst.msk [vmem:[%s5991_s6 + $0x398] sm:$0xff] %vm2464_vm4, %v2419_v12 }
 0x39e   :  { %v2388_v6 = vpop.trf.xlu0  ;;  %v2420_v40 = vpop.trf.xlu1 }
 0x39f   :  { %2565 = vst.msk [vmem:[%s5991_s6 + $0x320] sm:$0xff] %vm2464_vm4, %v2388_v6  ;;  %2581 = vst.msk [vmem:[%s5991_s6 + $0x3a0] sm:$0xff] %vm2464_vm4, %v2420_v40 }
 0x3a2   :  { %v2389_v20 = vpop.trf.xlu0  ;;  %v2421_v21 = vpop.trf.xlu1 }
 0x3a3   :  { %2566 = vst.msk [vmem:[%s5991_s6 + $0x328] sm:$0xff] %vm2464_vm4, %v2389_v20  ;;  %2582 = vst.msk [vmem:[%s5991_s6 + $0x3a8] sm:$0xff] %vm2464_vm4, %v2421_v21 }
 0x3a6   :  { %v2390_v22 = vpop.trf.xlu0  ;;  %v2422_v27 = vpop.trf.xlu1 }
 0x3a7   :  { %2567 = vst.msk [vmem:[%s5991_s6 + $0x330] sm:$0xff] %vm2464_vm4, %v2390_v22  ;;  %2583 = vst.msk [vmem:[%s5991_s6 + $0x3b0] sm:$0xff] %vm2464_vm4, %v2422_v27 }
 0x3aa   :  { %v2391_v39 = vpop.trf.xlu0  ;;  %v2423_v0 = vpop.trf.xlu1 }
 0x3ab   :  { %2568 = vst.msk [vmem:[%s5991_s6 + $0x338] sm:$0xff] %vm2464_vm4, %v2391_v39  ;;  %2584 = vst.msk [vmem:[%s5991_s6 + $0x3b8] sm:$0xff] %vm2464_vm4, %v2423_v0 }
 0x3ae   :  { %v2392_v14 = vpop.trf.xlu0  ;;  %v2424_v43 = vpop.trf.xlu1 }
 0x3af   :  { %2569 = vst.msk [vmem:[%s5991_s6 + $0x340] sm:$0xff] %vm2464_vm4, %v2392_v14  ;;  %2585 = vst.msk [vmem:[%s5991_s6 + $0x3c0] sm:$0xff] %vm2464_vm4, %v2424_v43 }
 0x3b2   :  { %v2393_v52 = vpop.trf.xlu0  ;;  %v2425_v30 = vpop.trf.xlu1 }
 0x3b3   :  { %2570 = vst.msk [vmem:[%s5991_s6 + $0x348] sm:$0xff] %vm2464_vm4, %v2393_v52  ;;  %2586 = vst.msk [vmem:[%s5991_s6 + $0x3c8] sm:$0xff] %vm2464_vm4, %v2425_v30 }
 0x3b6   :  { %v2394_v58 = vpop.trf.xlu0  ;;  %v2426_v26 = vpop.trf.xlu1 }
 0x3b7   :  { %2571 = vst.msk [vmem:[%s5991_s6 + $0x350] sm:$0xff] %vm2464_vm4, %v2394_v58  ;;  %2587 = vst.msk [vmem:[%s5991_s6 + $0x3d0] sm:$0xff] %vm2464_vm4, %v2426_v26 }
 0x3ba   :  { %v2395_v59 = vpop.trf.xlu0  ;;  %v2427_v1 = vpop.trf.xlu1 }
 0x3bb   :  { %2572 = vst.msk [vmem:[%s5991_s6 + $0x358] sm:$0xff] %vm2464_vm4, %v2395_v59  ;;  %2588 = vst.msk [vmem:[%s5991_s6 + $0x3d8] sm:$0xff] %vm2464_vm4, %v2427_v1 }
 0x3be   :  { %v2396_v63 = vpop.trf.xlu0  ;;  %v2428_v32 = vpop.trf.xlu1 }
 0x3bf   :  { %2573 = vst.msk [vmem:[%s5991_s6 + $0x360] sm:$0xff] %vm2464_vm4, %v2396_v63  ;;  %2589 = vst.msk [vmem:[%s5991_s6 + $0x3e0] sm:$0xff] %vm2464_vm4, %v2428_v32 }
 0x3c2   :  { %v2397_v7 = vpop.trf.xlu0  ;;  %v2429_v45 = vpop.trf.xlu1 }
 0x3c3   :  { %2574 = vst.msk [vmem:[%s5991_s6 + $0x368] sm:$0xff] %vm2464_vm4, %v2397_v7  ;;  %2590 = vst.msk [vmem:[%s5991_s6 + $0x3e8] sm:$0xff] %vm2464_vm4, %v2429_v45 }
 0x3c6   :  { %v2398_v4 = vpop.trf.xlu0  ;;  %v2430_v19 = vpop.trf.xlu1 }
 0x3c7   :  { %2575 = vst.msk [vmem:[%s5991_s6 + $0x370] sm:$0xff] %vm2464_vm4, %v2398_v4  ;;  %2591 = vst.msk [vmem:[%s5991_s6 + $0x3f0] sm:$0xff] %vm2464_vm4, %v2430_v19 }
 0x3ca   :  { %v2399_v10 = vpop.trf.xlu0  ;;  %v2431_v61 = vpop.trf.xlu1 }
 0x3cb   :  { %2576 = vst.msk [vmem:[%s5991_s6 + $0x378] sm:$0xff] %vm2464_vm4, %v2399_v10  ;;  %2592 = vst.msk [vmem:[%s5991_s6 + $0x3f8] sm:$0xff] %vm2464_vm4, %v2431_v61 }
 0x3ce   :  { %v2448_v60 = vpop.trf.xlu0 }
 0x3cf   :  { %2593 = vst.msk [vmem:[%s5991_s6 + $0x400] sm:$0xff] %vm2464_vm4, %v2448_v60 }
 0x3d2   :  { %v2449_v15 = vpop.trf.xlu0 }
 0x3d3   :  { %2594 = vst.msk [vmem:[%s5991_s6 + $0x408] sm:$0xff] %vm2464_vm4, %v2449_v15 }
 0x3d6   :  { %v2450_v48 = vpop.trf.xlu0 }
 0x3d7   :  { %2595 = vst.msk [vmem:[%s5991_s6 + $0x410] sm:$0xff] %vm2464_vm4, %v2450_v48 }
 0x3da   :  { %v2451_v54 = vpop.trf.xlu0 }
 0x3db   :  { %2596 = vst.msk [vmem:[%s5991_s6 + $0x418] sm:$0xff] %vm2464_vm4, %v2451_v54 }
 0x3de   :  { %v2452_v57 = vpop.trf.xlu0 }
 0x3df   :  { %2597 = vst.msk [vmem:[%s5991_s6 + $0x420] sm:$0xff] %vm2464_vm4, %v2452_v57 }
 0x3e2   :  { %v2453_v53 = vpop.trf.xlu0 }
 0x3e3   :  { %2598 = vst.msk [vmem:[%s5991_s6 + $0x428] sm:$0xff] %vm2464_vm4, %v2453_v53 }
 0x3e6   :  { %v2454_v13 = vpop.trf.xlu0 }
 0x3e7   :  { %2599 = vst.msk [vmem:[%s5991_s6 + $0x430] sm:$0xff] %vm2464_vm4, %v2454_v13 }
 0x3ea   :  { %v2455_v5 = vpop.trf.xlu0 }
 0x3eb   :  { %2600 = vst.msk [vmem:[%s5991_s6 + $0x438] sm:$0xff] %vm2464_vm4, %v2455_v5 }
 0x3ee   :  { %v2456_v9 = vpop.trf.xlu0 }
 0x3ef   :  { %2601 = vst.msk [vmem:[%s5991_s6 + $0x440] sm:$0xff] %vm2464_vm4, %v2456_v9 }
 0x3f2   :  { %v2457_v55 = vpop.trf.xlu0 }
 0x3f3   :  { %2602 = vst.msk [vmem:[%s5991_s6 + $0x448] sm:$0xff] %vm2464_vm4, %v2457_v55 }
 0x3f6   :  { %v2458_v11 = vpop.trf.xlu0 }
 0x3f7   :  { %2603 = vst.msk [vmem:[%s5991_s6 + $0x450] sm:$0xff] %vm2464_vm4, %v2458_v11 }
 0x3fa   :  { %v2459_v38 = vpop.trf.xlu0 }
 0x3fb   :  { %2604 = vst.msk [vmem:[%s5991_s6 + $0x458] sm:$0xff] %vm2464_vm4, %v2459_v38 }
 0x3fe   :  { %v2460_v17 = vpop.trf.xlu0 }
 0x3ff   :  { %2605 = vst.msk [vmem:[%s5991_s6 + $0x460] sm:$0xff] %vm2464_vm4, %v2460_v17 }
 0x402   :  { %v2461_v3 = vpop.trf.xlu0 }
 0x403   :  { %2606 = vst.msk [vmem:[%s5991_s6 + $0x468] sm:$0xff] %vm2464_vm4, %v2461_v3 }
 0x406   :  { %v2462_v33 = vpop.trf.xlu0 }
 0x407   :  { %2607 = vst.msk [vmem:[%s5991_s6 + $0x470] sm:$0xff] %vm2464_vm4, %v2462_v33 }
 0x40a   :  { %v2463_v49 = vpop.trf.xlu0 }
 0x40b   :  { %2608 = vst.msk [vmem:[%s5991_s6 + $0x478] sm:$0xff] %vm2464_vm4, %v2463_v49 }

// kernel: tpu_custom_call.1
= control target key start
LH: loop header
LB: loop body
LE: loop exit
PB: predicated region body
PF: predicated region fallthrough
CT: control target
= control target key end

     0   :  { %vm52_vm0 = vcmask 523264   ;;  %vm43_vm2 = vcmask 1040384   ;;  %vm64_vm3 = vcmask 516096   ;;  %s5082_s0 = inlined_call_operand.vmem [shape: f32[49,192], index: 0, kind: input, shape index: {}]   ;;  %s5083_s1 = inlined_call_operand.vmem [shape: f32[1152,192], index: 1, kind: input, shape index: {}]   ;;  %s5084_s2 = inlined_call_operand.vmem [shape: f32[1,192], index: 2, kind: input, shape index: {}]   ;;  %s5085_s3 = inlined_call_operand.vmem [shape: f32[1,192], index: 3, kind: input, shape index: {}]   ;;  %s5086_s4 = inlined_call_operand.vmem [shape: f32[1,1152], index: 4, kind: input, shape index: {}]   ;;  %s5087_s5 = inlined_call_operand.vmem [shape: f32[1,1152], index: 5, kind: input, shape index: {}]   ;;  %s5088_s6 = inlined_call_operand.hbm [shape: f32[49,1152], index: 6, kind: output, shape index: {}]  }
   0x1   :  { %v213_v0 = vld [vmem:[%s5083_s1 + $0x8] sm:$0xff]  ;;  %v215_v1 = vld [vmem:[%s5083_s1 + $0x18] sm:$0xff]  ;;  %vm2912_vm1 = vmpackc.low %vm52_vm0, %vm52_vm0 }
   0x2   :  { %v277_v2 = vld [vmem:[%s5083_s1 + $0x208] sm:$0xff]  ;;  %v2436_v3 = vpack.c.bf16 %v215_v1, %v213_v0  ;;  %v279_v5 = vld [vmem:[%s5083_s1 + $0x218] sm:$0xff]  ;;  %v212_v6 = vld [vmem:[%s5083_s1] sm:$0xff] }
   0x3   :  { %v2516_v7 = vpack.c.bf16 %v279_v5, %v277_v2  ;;  %v214_v8 = vld [vmem:[%s5083_s1 + $0x10] sm:$0xff]  ;;  %v276_v9 = vld [vmem:[%s5083_s1 + $0x200] sm:$0xff]  ;;  %v217_v13 = vld [vmem:[%s5083_s1 + $0x28] sm:$0xff] }
   0x4   :  { %v278_v10 = vld [vmem:[%s5083_s1 + $0x210] sm:$0xff]  ;;  %2438 = vmatprep.subr.msk.bf16.mxu0 %vm2912_vm1, %v2436_v3  ;;  %v2439_v11 = vpack.c.bf16 %v214_v8, %v212_v6  ;;  %v219_v14 = vld [vmem:[%s5083_s1 + $0x38] sm:$0xff]  ;;  %v281_v15 = vld [vmem:[%s5083_s1 + $0x228] sm:$0xff] }
   0x5   :  { %v2519_v12 = vpack.c.bf16 %v278_v10, %v276_v9  ;;  %2518 = vmatprep.subr.msk.bf16.mxu1 %vm2912_vm1, %v2516_v7  ;;  %v2441_v16 = vpack.c.bf16 %v219_v14, %v217_v13  ;;  %v283_v17 = vld [vmem:[%s5083_s1 + $0x238] sm:$0xff]  ;;  %v216_v19 = vld [vmem:[%s5083_s1 + $0x20] sm:$0xff]  ;;  %v218_v20 = vld [vmem:[%s5083_s1 + $0x30] sm:$0xff] }
   0x6   :  { %2440 = vmatpush1.bf16.xpose.msra.mxu0 %v2439_v11  ;;  %v2521_v18 = vpack.c.bf16 %v283_v17, %v281_v15  ;;  %v280_v21 = vld [vmem:[%s5083_s1 + $0x220] sm:$0xff]  ;;  %v282_v22 = vld [vmem:[%s5083_s1 + $0x230] sm:$0xff]  ;;  %v221_v23 = vld [vmem:[%s5083_s1 + $0x48] sm:$0xff]  ;;  %v2444_v27 = vpack.c.bf16 %v218_v20, %v216_v19 }
   0x7   :  { %2520 = vmatpush1.bf16.xpose.msra.mxu1 %v2519_v12  ;;  %2443 = vmatprep.subr.msk.bf16.mxu0 %vm2912_vm1, %v2441_v16  ;;  %v223_v24 = vld [vmem:[%s5083_s1 + $0x58] sm:$0xff]  ;;  %v285_v25 = vld [vmem:[%s5083_s1 + $0x248] sm:$0xff]  ;;  %v2524_v28 = vpack.c.bf16 %v282_v22, %v280_v21  ;;  %v220_v31 = vld [vmem:[%s5083_s1 + $0x40] sm:$0xff] }
   0x8   :  { %2523 = vmatprep.subr.msk.bf16.mxu1 %vm2912_vm1, %v2521_v18  ;;  %v287_v26 = vld [vmem:[%s5083_s1 + $0x258] sm:$0xff]  ;;  %v2446_v29 = vpack.c.bf16 %v223_v24, %v221_v23  ;;  %v222_v32 = vld [vmem:[%s5083_s1 + $0x50] sm:$0xff]  ;;  %v284_v33 = vld [vmem:[%s5083_s1 + $0x240] sm:$0xff] }
   0x9   :  { %v2526_v30 = vpack.c.bf16 %v287_v26, %v285_v25  ;;  %v286_v34 = vld [vmem:[%s5083_s1 + $0x250] sm:$0xff]  ;;  %v225_v35 = vld [vmem:[%s5083_s1 + $0x68] sm:$0xff]  ;;  %v227_v36 = vld [vmem:[%s5083_s1 + $0x78] sm:$0xff]  ;;  %v2449_v39 = vpack.c.bf16 %v222_v32, %v220_v31 }
   0xa   :  { %v289_v37 = vld [vmem:[%s5083_s1 + $0x268] sm:$0xff]  ;;  %v291_v38 = vld [vmem:[%s5083_s1 + $0x278] sm:$0xff]  ;;  %v2529_v40 = vpack.c.bf16 %v286_v34, %v284_v33  ;;  %v2451_v41 = vpack.c.bf16 %v227_v36, %v225_v35  ;;  %v224_v43 = vld [vmem:[%s5083_s1 + $0x60] sm:$0xff] }
   0xb   :  { %v2531_v42 = vpack.c.bf16 %v291_v38, %v289_v37  ;;  %v226_v44 = vld [vmem:[%s5083_s1 + $0x70] sm:$0xff]  ;;  %v288_v45 = vld [vmem:[%s5083_s1 + $0x260] sm:$0xff]  ;;  %v229_v47 = vld [vmem:[%s5083_s1 + $0x88] sm:$0xff] }
   0xc   :  { %v290_v46 = vld [vmem:[%s5083_s1 + $0x270] sm:$0xff]  ;;  %v231_v48 = vld [vmem:[%s5083_s1 + $0x98] sm:$0xff]  ;;  %v293_v49 = vld [vmem:[%s5083_s1 + $0x288] sm:$0xff]  ;;  %v2454_v51 = vpack.c.bf16 %v226_v44, %v224_v43 }
   0xd   :  { %v295_v50 = vld [vmem:[%s5083_s1 + $0x298] sm:$0xff]  ;;  %v2534_v52 = vpack.c.bf16 %v290_v46, %v288_v45  ;;  %v2456_v53 = vpack.c.bf16 %v231_v48, %v229_v47  ;;  %v228_v55 = vld [vmem:[%s5083_s1 + $0x80] sm:$0xff]  ;;  %v230_v56 = vld [vmem:[%s5083_s1 + $0x90] sm:$0xff] }
   0xe   :  { %2445 = vmatpush1.bf16.xpose.msra.mxu0 %v2444_v27  ;;  %v2536_v54 = vpack.c.bf16 %v295_v50, %v293_v49  ;;  %v292_v57 = vld [vmem:[%s5083_s1 + $0x280] sm:$0xff]  ;;  %v294_v58 = vld [vmem:[%s5083_s1 + $0x290] sm:$0xff]  ;;  %v233_v59 = vld [vmem:[%s5083_s1 + $0xa8] sm:$0xff]  ;;  %v2459_v63 = vpack.c.bf16 %v230_v56, %v228_v55 }
   0xf   :  { %2525 = vmatpush1.bf16.xpose.msra.mxu1 %v2524_v28  ;;  %2448 = vmatprep.subr.msk.bf16.mxu0 %vm2912_vm1, %v2446_v29  ;;  %v235_v60 = vld [vmem:[%s5083_s1 + $0xb8] sm:$0xff]  ;;  %v297_v61 = vld [vmem:[%s5083_s1 + $0x2a8] sm:$0xff]  ;;  %v2539_v0 = vpack.c.bf16 %v294_v58, %v292_v57  ;;  %v232_v3 = vld [vmem:[%s5083_s1 + $0xa0] sm:$0xff] }
  0x10   :  { %2528 = vmatprep.subr.msk.bf16.mxu1 %vm2912_vm1, %v2526_v30  ;;  %v299_v62 = vld [vmem:[%s5083_s1 + $0x2b8] sm:$0xff]  ;;  %v2461_v1 = vpack.c.bf16 %v235_v60, %v233_v59  ;;  %v234_v5 = vld [vmem:[%s5083_s1 + $0xb0] sm:$0xff]  ;;  %v296_v6 = vld [vmem:[%s5083_s1 + $0x2a0] sm:$0xff] }
  0x11   :  { %v2541_v2 = vpack.c.bf16 %v299_v62, %v297_v61  ;;  %v298_v7 = vld [vmem:[%s5083_s1 + $0x2b0] sm:$0xff]  ;;  %v237_v8 = vld [vmem:[%s5083_s1 + $0xc8] sm:$0xff]  ;;  %v239_v9 = vld [vmem:[%s5083_s1 + $0xd8] sm:$0xff]  ;;  %v2464_v12 = vpack.c.bf16 %v234_v5, %v232_v3 }
  0x12   :  { %v301_v10 = vld [vmem:[%s5083_s1 + $0x2c8] sm:$0xff]  ;;  %v303_v11 = vld [vmem:[%s5083_s1 + $0x2d8] sm:$0xff]  ;;  %v2544_v13 = vpack.c.bf16 %v298_v7, %v296_v6  ;;  %v2466_v14 = vpack.c.bf16 %v239_v9, %v237_v8  ;;  %v3090_v16 = vld [vmem:[%s5082_s0] sm:$0xff] }
  0x13   :  { %v2546_v15 = vpack.c.bf16 %v303_v11, %v301_v10  ;;  %v3095_v17 = vld [vmem:[%s5082_s0 + $0x8] sm:$0xff]  ;;  %v3100_v18 = vld [vmem:[%s5082_s0 + $0x10] sm:$0xff]  ;;  %v236_v19 = vld [vmem:[%s5083_s1 + $0xc0] sm:$0xff] }
  0x14   :  { %v238_v20 = vld [vmem:[%s5083_s1 + $0xd0] sm:$0xff]  ;;  %v300_v21 = vld [vmem:[%s5083_s1 + $0x2c0] sm:$0xff]  ;;  %v3114_v22 = vld [vmem:[%s5082_s0 + $0x18] sm:$0xff]  ;;  %v38_v25 = vadd.f32 %v3100_v18, %v3090_v16  ;;  %v53_v26 = vsel %vm52_vm0, %v3095_v17, 0.0 }
  0x15   :  { %v3119_v23 = vld [vmem:[%s5082_s0 + $0x20] sm:$0xff]  ;;  %v3124_v24 = vld [vmem:[%s5082_s0 + $0x28] sm:$0xff]  ;;  %v302_v27 = vld [vmem:[%s5083_s1 + $0x2d0] sm:$0xff]  ;;  %v54_v30 = vsel %vm52_vm0, %v3114_v22, 0.0  ;;  %v2469_v45 = vpack.c.bf16 %v238_v20, %v236_v19 }
  0x16   :  { %2450 = vmatpush1.bf16.xpose.msra.mxu0 %v2449_v39  ;;  %v3136_v28 = vld [vmem:[%s5082_s0 + $0x30] sm:$0xff]  ;;  %v3141_v29 = vld [vmem:[%s5082_s0 + $0x38] sm:$0xff]  ;;  %v56_v31 = vsel %vm52_vm0, %v3124_v24, 0.0  ;;  %v241_v32 = vld [vmem:[%s5083_s1 + $0xe8] sm:$0xff]  ;;  %v39_v35 = vadd.f32 %v38_v25, %v3119_v23  ;;  %v55_v36 = vadd.f32 %v54_v30, %v53_v26  ;;  %v2549_v46 = vpack.c.bf16 %v302_v27, %v300_v21 }
  0x17   :  { %2530 = vmatpush1.bf16.xpose.msra.mxu1 %v2529_v40  ;;  %2453 = vmatprep.subr.msk.bf16.mxu0 %vm2912_vm1, %v2451_v41  ;;  %v243_v33 = vld [vmem:[%s5083_s1 + $0xf8] sm:$0xff]  ;;  %v3160_v34 = vld [vmem:[%s5082_s0 + $0x48] sm:$0xff]  ;;  %v3172_v39 = vld [vmem:[%s5082_s0 + $0x40] sm:$0xff]  ;;  %v58_v40 = vsel %vm52_vm0, %v3141_v29, 0.0 }
  0x18   :  { %2533 = vmatprep.subr.msk.bf16.mxu1 %vm2912_vm1, %v2531_v42  ;;  %v305_v37 = vld [vmem:[%s5083_s1 + $0x2e8] sm:$0xff]  ;;  %v307_v38 = vld [vmem:[%s5083_s1 + $0x2f8] sm:$0xff]  ;;  %v3184_v42 = vld [vmem:[%s5082_s0 + $0x60] sm:$0x1]  ;;  %v40_v43 = vadd.f32 %v39_v35, %v3136_v28  ;;  %v57_v44 = vadd.f32 %v56_v31, %v55_v36  ;;  %v60_v48 = vsel %vm52_vm0, %v3160_v34, 0.0  ;;  %v2471_v49 = vpack.c.bf16 %v243_v33, %v241_v32 }
  0x19   :  { %v3179_v41 = vld [vmem:[%s5082_s0 + $0x58] sm:$0xff]  ;;  %v3190_v47 = vld [vmem:[%s5082_s0 + $0x50] sm:$0xff]  ;;  %v2551_v50 = vpack.c.bf16 %v307_v38, %v305_v37  ;;  %v240_v58 = vld [vmem:[%s5083_s1 + $0xe0] sm:$0xff] }
  0x1a   :  { %v62_v55 = vsel %vm52_vm0, %v3179_v41, 0.0  ;;  %v242_v59 = vld [vmem:[%s5083_s1 + $0xf0] sm:$0xff]  ;;  %v304_v61 = vld [vmem:[%s5083_s1 + $0x2e0] sm:$0xff]  ;;  %v309_v3 = vld [vmem:[%s5083_s1 + $0x308] sm:$0xff] }
  0x1b   :  { %v306_v62 = vld [vmem:[%s5083_s1 + $0x2f0] sm:$0xff]  ;;  %v311_v5 = vld [vmem:[%s5083_s1 + $0x318] sm:$0xff]  ;;  %v2474_v8 = vpack.c.bf16 %v242_v59, %v240_v58  ;;  %v244_v19 = vld [vmem:[%s5083_s1 + $0x100] sm:$0xff] }
  0x1c   :  { %v2554_v9 = vpack.c.bf16 %v306_v62, %v304_v61  ;;  %v2556_v11 = vpack.c.bf16 %v311_v5, %v309_v3  ;;  %v246_v20 = vld [vmem:[%s5083_s1 + $0x110] sm:$0xff]  ;;  %v308_v21 = vld [vmem:[%s5083_s1 + $0x300] sm:$0xff]  ;;  %v249_v26 = vld [vmem:[%s5083_s1 + $0x128] sm:$0xff] }
  0x1d   :  { %v310_v25 = vld [vmem:[%s5083_s1 + $0x310] sm:$0xff]  ;;  %v251_v31 = vld [vmem:[%s5083_s1 + $0x138] sm:$0xff]  ;;  %v313_v32 = vld [vmem:[%s5083_s1 + $0x328] sm:$0xff]  ;;  %v2479_v37 = vpack.c.bf16 %v246_v20, %v244_v19 }
  0x1e   :  { %2455 = vmatpush1.bf16.xpose.msra.mxu0 %v2454_v51  ;;  %v3197_v51 = vld [vmem:[%s5082_s0 + $0x68] sm:$0x1]  ;;  %v315_v33 = vld [vmem:[%s5083_s1 + $0x338] sm:$0xff]  ;;  %v2559_v38 = vpack.c.bf16 %v310_v25, %v308_v21 }
  0x1f   :  { %2535 = vmatpush1.bf16.xpose.msra.mxu1 %v2534_v52  ;;  %2458 = vmatprep.subr.msk.bf16.mxu0 %vm2912_vm1, %v2456_v53  ;;  %v41_v52 = vadd.f32 %v40_v43, %v3172_v39  ;;  %v59_v53 = vadd.f32 %v58_v40, %v57_v44  ;;  %v65_v60 = vsel %vm64_vm3, %v3197_v51, 0.0  ;;  %v2481_v40 = vpack.c.bf16 %v251_v31, %v249_v26 }
  0x20   :  { %2538 = vmatprep.subr.msk.bf16.mxu1 %vm2912_vm1, %v2536_v54  ;;  %v44_v54 = vsel %vm43_vm2, %v3184_v42, 0.0  ;;  %v2561_v43 = vpack.c.bf16 %v315_v33, %v313_v32 }
  0x21   :  { %v42_v56 = vadd.f32 %v41_v52, %v3190_v47  ;;  %v61_v57 = vadd.f32 %v60_v48, %v59_v53  ;;  %v250_v48 = vld [vmem:[%s5083_s1 + $0x130] sm:$0xff] }
  0x26   :  { %2460 = vmatpush1.bf16.xpose.msra.mxu0 %v2459_v63  ;;  %v245_v63 = vld [vmem:[%s5083_s1 + $0x108] sm:$0xff] }
  0x27   :  { %2540 = vmatpush1.bf16.xpose.msra.mxu1 %v2539_v0  ;;  %2463 = vmatprep.subr.msk.bf16.mxu0 %vm2912_vm1, %v2461_v1  ;;  %v45_v0 = vadd.f32 %v44_v54, %v42_v56  ;;  %v63_v1 = vadd.f32 %v62_v55, %v61_v57  ;;  %v253_v54 = vld [vmem:[%s5083_s1 + $0x148] sm:$0xff]  ;;  %v255_v55 = vld [vmem:[%s5083_s1 + $0x158] sm:$0xff] }
  0x28   :  { %2543 = vmatprep.subr.msk.bf16.mxu1 %vm2912_vm1, %v2541_v2  ;;  %v247_v2 = vld [vmem:[%s5083_s1 + $0x118] sm:$0xff]  ;;  %v317_v56 = vld [vmem:[%s5083_s1 + $0x348] sm:$0xff]  ;;  %v2486_v3 = vpack.c.bf16 %v255_v55, %v253_v54 }
  0x29   :  { %v46_v6 = vrot.slane %v45_v0, 4  ;;  %v66_v7 = vadd.f32 %v65_v60, %v63_v1  ;;  %v2476_v10 = vpack.c.bf16 %v247_v2, %v245_v63  ;;  %v319_v57 = vld [vmem:[%s5083_s1 + $0x358] sm:$0xff] }
  0x2a   :  { %v2566_v5 = vpack.c.bf16 %v319_v57, %v317_v56 }
  0x2e   :  { %2465 = vmatpush1.bf16.xpose.msra.mxu0 %v2464_v12  ;;  %v47_v12 = vadd.f32 %v46_v6, %v45_v0 }
  0x2f   :  { %2545 = vmatpush1.bf16.xpose.msra.mxu1 %v2544_v13  ;;  %2468 = vmatprep.subr.msk.bf16.mxu0 %vm2912_vm1, %v2466_v14  ;;  %v67_v13 = vrot.slane %v66_v7, 4 }
  0x30   :  { %2548 = vmatprep.subr.msk.bf16.mxu1 %vm2912_vm1, %v2546_v15  ;;  %v48_v14 = vrot.slane %v47_v12, 2 }
  0x31   :  { %v68_v15 = vadd.f32 %v67_v13, %v66_v7 }
  0x32   :  { %v49_v27 = vadd.f32 %v48_v14, %v47_v12 }
  0x33   :  { %v69_v30 = vrot.slane %v68_v15, 2 }
  0x34   :  { %v50_v35 = vrot.slane %v49_v27, 1 }
  0x35   :  { %v70_v36 = vadd.f32 %v69_v30, %v68_v15 }
  0x36   :  { %2470 = vmatpush1.bf16.xpose.msra.mxu0 %v2469_v45  ;;  %v51_v44 = vadd.f32 %v50_v35, %v49_v27 }
  0x37   :  { %2550 = vmatpush1.bf16.xpose.msra.mxu1 %v2549_v46  ;;  %2473 = vmatprep.subr.msk.bf16.mxu0 %vm2912_vm1, %v2471_v49  ;;  %v71_v45 = vrot.slane %v70_v36, 1  ;;  %v248_v46 = vld [vmem:[%s5083_s1 + $0x120] sm:$0xff] }
  0x38   :  { %2553 = vmatprep.subr.msk.bf16.mxu1 %vm2912_vm1, %v2551_v50  ;;  %v312_v49 = vld [vmem:[%s5083_s1 + $0x320] sm:$0xff]  ;;  %v314_v50 = vld [vmem:[%s5083_s1 + $0x330] sm:$0xff]  ;;  %v73_v53 = vmul.f32 0.020408163, %v51_v44  ;;  %v2484_v61 = vpack.c.bf16 %v250_v48, %v248_v46 }
  0x39   :  { %v72_v52 = vadd.f32 %v71_v45, %v70_v36  ;;  %v2564_v62 = vpack.c.bf16 %v314_v50, %v312_v49 }
  0x3a   :  { %v3292_v59 = vsub.f32 %v3090_v16, %v73_v53  ;;  %v3295_v60 = vsub.f32 %v3100_v18, %v73_v53  ;;  %v3298_v63 = vsub.f32 %v3119_v23, %v73_v53  ;;  %v3301_v0 = vsub.f32 %v3136_v28, %v73_v53 }
  0x3b   :  { %v74_v58 = vmul.f32 0.020408163, %v72_v52 }
  0x3c   :  { %v89_v28 = vmul.f32 %v3292_v59, %v3292_v59 }
  0x3d   :  { %v3304_v1 = vsub.f32 %v3095_v17, %v74_v58  ;;  %v3307_v2 = vsub.f32 %v3114_v22, %v74_v58  ;;  %v3310_v16 = vsub.f32 %v3124_v24, %v74_v58  ;;  %v3313_v18 = vsub.f32 %v3141_v29, %v74_v58 }
  0x3e   :  { %2475 = vmatpush1.bf16.xpose.msra.mxu0 %v2474_v8  ;;  %v3316_v23 = vsub.f32 %v3160_v34, %v74_v58  ;;  %v3321_v17 = vsub.f32 %v3172_v39, %v73_v53  ;;  %v91_v24 = vmul.f32 %v3295_v60, %v3295_v60  ;;  %v3330_v6 = vsub.f32 %v3179_v41, %v74_v58 }
  0x3f   :  { %2555 = vmatpush1.bf16.xpose.msra.mxu1 %v2554_v9  ;;  %2478 = vmatprep.subr.msk.bf16.mxu0 %vm2912_vm1, %v2476_v10  ;;  %v90_v22 = vmul.f32 %v3304_v1, %v3304_v1  ;;  %v92_v29 = vmul.f32 %v3307_v2, %v3307_v2  ;;  %v93_v34 = vmul.f32 %v3298_v63, %v3298_v63 }
  0x40   :  { %2558 = vmatprep.subr.msk.bf16.mxu1 %vm2912_vm1, %v2556_v11  ;;  %v94_v7 = vmul.f32 %v3310_v16, %v3310_v16  ;;  %v96_v39 = vmul.f32 %v3313_v18, %v3313_v18 }
  0x46   :  { %2480 = vmatpush1.bf16.xpose.msra.mxu0 %v2479_v37 }
  0x47   :  { %2560 = vmatpush1.bf16.xpose.msra.mxu1 %v2559_v38  ;;  %2483 = vmatprep.subr.msk.bf16.mxu0 %vm2912_vm1, %v2481_v40 }
  0x48   :  { %2563 = vmatprep.subr.msk.bf16.mxu1 %vm2912_vm1, %v2561_v43 }
  0x49   :  { %11 = vsyncpa [#allocation3], 0  ;;  %v252_v8 = vld [vmem:[%s5083_s1 + $0x140] sm:$0xff]  ;;  %v3342_v9 = vsub.f32 %v3190_v47, %v73_v53  ;;  %v3345_v41 = vsub.f32 %v3184_v42, %v73_v53  ;;  %v3348_v10 = vsub.f32 %v3197_v51, %v74_v58  ;;  %v95_v11 = vmul.f32 %v3301_v0, %v3301_v0  ;;  %v254_v12 = vld [vmem:[%s5083_s1 + $0x150] sm:$0xff]  ;;  %s2863_s18 = smov [#allocation2]  }
  0x4a   :  { %v316_v47 = vld [vmem:[%s5083_s1 + $0x340] sm:$0xff]  ;;  %v318_v42 = vld [vmem:[%s5083_s1 + $0x350] sm:$0xff]  ;;  %v98_v51 = vmul.f32 %v3316_v23, %v3316_v23  ;;  %v103_v13 = vadd.f32 %v91_v24, %v89_v28  ;;  %v116_v14 = vsel %vm52_vm0, %v90_v22, 0.0  ;;  %v117_v15 = vsel %vm52_vm0, %v92_v29, 0.0  ;;  %v257_v19 = vld [vmem:[%s5083_s1 + $0x168] sm:$0xff]  ;;  %s2245_s19 = sshll.u32 %s2863_s18, 4  ;;  %s2246_s19 = int_to_ptr.vmem [resolvable:$true] %s2245_s19 }
  0x4b   :  { %v118_v20 = vadd.f32 %v117_v15, %v116_v14  ;;  %v119_v21 = vsel %vm52_vm0, %v94_v7, 0.0  ;;  %v259_v25 = vld [vmem:[%s5083_s1 + $0x178] sm:$0xff]  ;;  %v321_v26 = vld [vmem:[%s5083_s1 + $0x368] sm:$0xff]  ;;  %v97_v30 = vmul.f32 %v3321_v17, %v3321_v17  ;;  %v100_v31 = vmul.f32 %v3330_v6, %v3330_v6  ;;  %v256_v55 = vld [vmem:[%s5083_s1 + $0x160] sm:$0xff]  ;;  %p2843_p1 = scmp.lt.s32.totalorder %s2246_s19, %s2246_s19 }
  0x4c   :  { %v323_v27 = vld [vmem:[%s5083_s1 + $0x378] sm:$0xff]  ;;  %v104_v32 = vadd.f32 %v103_v13, %v93_v34  ;;  %v121_v33 = vsel %vm52_vm0, %v96_v39, 0.0  ;;  %v2489_v35 = vpack.c.bf16 %v254_v12, %v252_v8  ;;  %v2569_v36 = vpack.c.bf16 %v318_v42, %v316_v47  ;;  %v258_v56 = vld [vmem:[%s5083_s1 + $0x170] sm:$0xff]  ;;  %v325_v22 = vld [vmem:[%s5083_s1 + $0x388] sm:$0xff] }
  0x4d   :  { %v101_v37 = vmul.f32 %v3345_v41, %v3345_v41  ;;  %v120_v38 = vadd.f32 %v119_v21, %v118_v20  ;;  %v99_v40 = vmul.f32 %v3342_v9, %v3342_v9  ;;  %v102_v43 = vmul.f32 %v3348_v10, %v3348_v10  ;;  %v263_v28 = vld [vmem:[%s5083_s1 + $0x198] sm:$0xff]  ;;  %v260_v13 = vld [vmem:[%s5083_s1 + $0x180] sm:$0xff]  ;;  %v262_v14 = vld [vmem:[%s5083_s1 + $0x190] sm:$0xff] }
  0x4e   :  { %2485 = vmatpush1.bf16.xpose.msra.mxu0 %v2484_v61  ;;  %v105_v44 = vadd.f32 %v104_v32, %v95_v11  ;;  %v123_v45 = vsel %vm52_vm0, %v98_v51, 0.0  ;;  %v2491_v46 = vpack.c.bf16 %v259_v25, %v257_v19  ;;  %v2571_v48 = vpack.c.bf16 %v323_v27, %v321_v26  ;;  %v320_v61 = vld [vmem:[%s5083_s1 + $0x360] sm:$0xff]  ;;  %v327_v24 = vld [vmem:[%s5083_s1 + $0x398] sm:$0xff]  ;;  %v326_v20 = vld [vmem:[%s5083_s1 + $0x390] sm:$0xff] }
  0x4f   :  { %2565 = vmatpush1.bf16.xpose.msra.mxu1 %v2564_v62  ;;  %2488 = vmatprep.subr.msk.bf16.mxu0 %vm2912_vm1, %v2486_v3  ;;  %v122_v49 = vadd.f32 %v121_v33, %v120_v38  ;;  %v125_v52 = vsel %vm52_vm0, %v100_v31, 0.0  ;;  %v108_v53 = vsel %vm43_vm2, %v101_v37, 0.0  ;;  %v127_v58 = vsel %vm64_vm3, %v102_v43, 0.0  ;;  %v322_v62 = vld [vmem:[%s5083_s1 + $0x370] sm:$0xff]  ;;  %v261_v3 = vld [vmem:[%s5083_s1 + $0x188] sm:$0xff]  ;;  %v324_v19 = vld [vmem:[%s5083_s1 + $0x380] sm:$0xff] }
  0x50   :  { %2568 = vmatprep.subr.msk.bf16.mxu1 %vm2912_vm1, %v2566_v5  ;;  %v106_v50 = vadd.f32 %v105_v44, %v97_v30  ;;  %v2494_v7 = vpack.c.bf16 %v258_v56, %v256_v55  ;;  %v2574_v39 = vpack.c.bf16 %v322_v62, %v320_v61  ;;  %v2496_v11 = vpack.c.bf16 %v263_v28, %v261_v3  ;;  %v265_v21 = vld [vmem:[%s5083_s1 + $0x1a8] sm:$0xff]  ;;  %v267_v26 = vld [vmem:[%s5083_s1 + $0x1b8] sm:$0xff] }
  0x51   :  { %v124_v54 = vadd.f32 %v123_v45, %v122_v49  ;;  %v2576_v12 = vpack.c.bf16 %v327_v24, %v325_v22  ;;  %v329_v27 = vld [vmem:[%s5083_s1 + $0x3a8] sm:$0xff]  ;;  %v331_v30 = vld [vmem:[%s5083_s1 + $0x3b8] sm:$0xff]  ;;  %v2499_v33 = vpack.c.bf16 %v262_v14, %v260_v13  ;;  %v2501_v37 = vpack.c.bf16 %v267_v26, %v265_v21  ;;  %v264_v45 = vld [vmem:[%s5083_s1 + $0x1a0] sm:$0xff] }
  0x52   :  { %v107_v57 = vadd.f32 %v106_v50, %v99_v40  ;;  %v2581_v38 = vpack.c.bf16 %v331_v30, %v329_v27  ;;  %v328_v49 = vld [vmem:[%s5083_s1 + $0x3a0] sm:$0xff]  ;;  %v330_v50 = vld [vmem:[%s5083_s1 + $0x3b0] sm:$0xff]  ;;  %v333_v55 = vld [vmem:[%s5083_s1 + $0x3c8] sm:$0xff]  ;;  %v2862_v28 = vmov 1966171168   ;;  %v148_v24 = vlaneseq }
  0x53   :  { %v126_v5 = vadd.f32 %v125_v52, %v124_v54  ;;  %v269_v52 = vld [vmem:[%s5083_s1 + $0x1c8] sm:$0xff]  ;;  %v271_v54 = vld [vmem:[%s5083_s1 + $0x1d8] sm:$0xff]  ;;  %v2584_v62 = vpack.c.bf16 %v330_v50, %v328_v49  ;;  %v146_v22 = vunpack.c.l.s4 %v2862_v28  ;;  %v272_v26 = vld [vmem:[%s5083_s1 + $0x1e0] sm:$0xff] }
  0x54   :  { %v109_v29 = vadd.f32 %v108_v53, %v107_v57  ;;  %v335_v56 = vld [vmem:[%s5083_s1 + $0x3d8] sm:$0xff]  ;;  %v2506_v3 = vpack.c.bf16 %v271_v54, %v269_v52  ;;  %v274_v27 = vld [vmem:[%s5083_s1 + $0x1f0] sm:$0xff] }
  0x55   :  { %v128_v34 = vadd.f32 %v127_v58, %v126_v5  ;;  %v2586_v5 = vpack.c.bf16 %v335_v56, %v333_v55 }
  0x56   :  { %2490 = vmatpush1.bf16.xpose.msra.mxu0 %v2489_v35  ;;  %v110_v8 = vrot.slane %v109_v29, 4  ;;  %v2579_v35 = vpack.c.bf16 %v326_v20, %v324_v19 }
  0x57   :  { %2570 = vmatpush1.bf16.xpose.msra.mxu1 %v2569_v36  ;;  %2493 = vmatprep.subr.msk.bf16.mxu0 %vm2912_vm1, %v2491_v46  ;;  %v129_v47 = vrot.slane %v128_v34, 4  ;;  %v266_v46 = vld [vmem:[%s5083_s1 + $0x1b0] sm:$0xff] }
  0x58   :  { %2573 = vmatprep.subr.msk.bf16.mxu1 %vm2912_vm1, %v2571_v48  ;;  %v111_v42 = vadd.f32 %v110_v8, %v109_v29  ;;  %v2504_v61 = vpack.c.bf16 %v266_v46, %v264_v45  ;;  %v268_v29 = vld [vmem:[%s5083_s1 + $0x1c0] sm:$0xff]  ;;  %v273_v8 = vld [vmem:[%s5083_s1 + $0x1e8] sm:$0xff] }
  0x59   :  { %v130_v51 = vadd.f32 %v129_v47, %v128_v34  ;;  %v270_v34 = vld [vmem:[%s5083_s1 + $0x1d0] sm:$0xff]  ;;  %v339_v47 = vld [vmem:[%s5083_s1 + $0x3f8] sm:$0xff] }
  0x5a   :  { %v112_v15 = vrot.slane %v111_v42, 2  ;;  %v2509_v13 = vpack.c.bf16 %v270_v34, %v268_v29 }
  0x5b   :  { %v131_v25 = vrot.slane %v130_v51, 2 }
  0x5c   :  { %v113_v31 = vadd.f32 %v112_v15, %v111_v42  ;;  %v147_v42 = vunpack.c.0.s8 %v146_v22 }
  0x5d   :  { %v132_v32 = vadd.f32 %v131_v25, %v130_v51  ;;  %v3509_v51 = vshrl.u32 %v148_v24, 7  ;;  %v345_v24 = vld [vmem:[%s5083_s1 + $0x428] sm:$0xff] }
  0x5e   :  { %2495 = vmatpush1.bf16.xpose.msra.mxu0 %v2494_v7  ;;  %v114_v36 = vrot.slane %v113_v31, 1  ;;  %v332_v7 = vld [vmem:[%s5083_s1 + $0x3c0] sm:$0xff] }
  0x5f   :  { %2575 = vmatpush1.bf16.xpose.msra.mxu1 %v2574_v39  ;;  %2498 = vmatprep.subr.msk.bf16.mxu0 %vm2912_vm1, %v2496_v11  ;;  %v133_v40 = vrot.slane %v132_v32, 1  ;;  %v334_v39 = vld [vmem:[%s5083_s1 + $0x3d0] sm:$0xff]  ;;  %v275_v11 = vld [vmem:[%s5083_s1 + $0x1f8] sm:$0xff]  ;;  %v3512_v21 = vsub.s32 %v147_v42, %v3509_v51  ;;  %v3554_v49 = vsub.s32 0, %v3509_v51 }
  0x60   :  { %2578 = vmatprep.subr.msk.bf16.mxu1 %vm2912_vm1, %v2576_v12  ;;  %v115_v43 = vadd.f32 %v114_v36, %v113_v31  ;;  %v337_v12 = vld [vmem:[%s5083_s1 + $0x3e8] sm:$0xff]  ;;  %v2589_v14 = vpack.c.bf16 %v334_v39, %v332_v7  ;;  %v2511_v15 = vpack.c.bf16 %v275_v11, %v273_v8  ;;  %v336_v31 = vld [vmem:[%s5083_s1 + $0x3e0] sm:$0xff]  ;;  %v343_v36 = vld [vmem:[%s5083_s1 + $0x418] sm:$0xff] }
  0x61   :  { %v134_v44 = vadd.f32 %v133_v40, %v132_v32  ;;  %v2591_v19 = vpack.c.bf16 %v339_v47, %v337_v12  ;;  %5131 = vst [vmem:[#allocation5_spill] sm:$0xff] %v3512_v21  ;;  %v338_v32 = vld [vmem:[%s5083_s1 + $0x3f0] sm:$0xff]  ;;  %v137_v40 = vld [vmem:[%s5084_s2] sm:$0x3]  ;;  %5132 = vst [vmem:[#allocation6_spill] sm:$0xff] %v3554_v49 }
  0x62   :  { %v135_v48 = vmul.f32 0.020408163, %v115_v43  ;;  %v3547_v43 = vsub.s32 1, %v3509_v51  ;;  %v2594_v45 = vpack.c.bf16 %v338_v32, %v336_v31  ;;  %v347_v7 = vld [vmem:[%s5083_s1 + $0x438] sm:$0xff] }
  0x63   :  { %v136_v53 = vmul.f32 0.020408163, %v134_v44  ;;  %v2514_v44 = vpack.c.bf16 %v274_v27, %v272_v26  ;;  %v2601_v12 = vpack.c.bf16 %v347_v7, %v345_v24  ;;  %v351_v27 = vld [vmem:[%s5083_s1 + $0x458] sm:$0xff] }
  0x64   :  { %v138_v57 = vadd.f32 1e-05, %v135_v48  ;;  %v186_v48 = vld [vmem:[%s5085_s3] sm:$0x3]  ;;  %v415_v31 = vld [vmem:[%s5083_s1 + $0x658] sm:$0xff] }
  0x65   :  { %v139_v58 = vadd.f32 1e-05, %v136_v53  ;;  %v3557_v54 = vrot.slane %v186_v48, %v3547_v43  ;;  %v359_v7 = vld [vmem:[%s5083_s1 + $0x498] sm:$0xff] }
  0x66   :  { %2500 = vmatpush1.bf16.xpose.msra.mxu0 %v2499_v33  ;;  %2816 = vrsqrt.f32 %v138_v57  ;;  %v341_v33 = vld [vmem:[%s5083_s1 + $0x408] sm:$0xff]  ;;  %v3566_v57 = vrot.slane %v186_v48, %v3554_v49 }
  0x67   :  { %2580 = vmatpush1.bf16.xpose.msra.mxu1 %v2579_v35  ;;  %2503 = vmatprep.subr.msk.bf16.mxu0 %vm2912_vm1, %v2501_v37  ;;  %2818 = vrsqrt.f32 %v139_v58  ;;  %v405_v37 = vld [vmem:[%s5083_s1 + $0x608] sm:$0xff]  ;;  %v2596_v50 = vpack.c.bf16 %v343_v36, %v341_v33  ;;  %v340_v58 = vld [vmem:[%s5083_s1 + $0x400] sm:$0xff] }
  0x68   :  { %2583 = vmatprep.subr.msk.bf16.mxu1 %vm2912_vm1, %v2581_v38  ;;  %v407_v38 = vld [vmem:[%s5083_s1 + $0x618] sm:$0xff] }
  0x69   :  { %v2676_v52 = vpack.c.bf16 %v407_v38, %v405_v37 }
  0x6e   :  { %2505 = vmatpush1.bf16.xpose.msra.mxu0 %v2504_v61  ;;  %v342_v61 = vld [vmem:[%s5083_s1 + $0x410] sm:$0xff] }
  0x6f   :  { %2585 = vmatpush1.bf16.xpose.msra.mxu1 %v2584_v62  ;;  %2508 = vmatprep.subr.msk.bf16.mxu0 %vm2912_vm1, %v2506_v3  ;;  %v404_v62 = vld [vmem:[%s5083_s1 + $0x600] sm:$0xff]  ;;  %v406_v3 = vld [vmem:[%s5083_s1 + $0x610] sm:$0xff]  ;;  %v2599_v29 = vpack.c.bf16 %v342_v61, %v340_v58  ;;  %v417_v58 = vld [vmem:[%s5083_s1 + $0x668] sm:$0xff] }
  0x70   :  { %2588 = vmatprep.subr.msk.bf16.mxu1 %vm2912_vm1, %v2586_v5  ;;  %v2817_v20 = vpop.eup %2816  ;;  %v2679_v8 = vpack.c.bf16 %v406_v3, %v404_v62  ;;  %v419_v61 = vld [vmem:[%s5083_s1 + $0x678] sm:$0xff] }
  0x71   :  { %v2819_v25 = vpop.eup %2818 }
  0x72   :  { %v144_v30 = vcombine.low %v2817_v20, %v2819_v25  ;;  %v349_v25 = vld [vmem:[%s5083_s1 + $0x448] sm:$0xff] }
  0x73   :  { %v2606_v36 = vpack.c.bf16 %v351_v27, %v349_v25  ;;  %v425_v25 = vld [vmem:[%s5083_s1 + $0x6a8] sm:$0xff] }
  0x74   :  { %v151_v35 = vrot.slane %v144_v30, %v3512_v21  ;;  %v413_v30 = vld [vmem:[%s5083_s1 + $0x648] sm:$0xff] }
  0x75   :  { %v2686_v37 = vpack.c.bf16 %v415_v31, %v413_v30 }
  0x76   :  { %2510 = vmatpush1.bf16.xpose.msra.mxu0 %v2509_v13  ;;  %v158_v46 = vrot.slane %v151_v35, %v3512_v21 }
  0x77   :  { %2590 = vmatpush1.bf16.xpose.msra.mxu1 %v2589_v14  ;;  %2513 = vmatprep.subr.msk.bf16.mxu0 %vm2912_vm1, %v2511_v15  ;;  %v344_v14 = vld [vmem:[%s5083_s1 + $0x420] sm:$0xff]  ;;  %v346_v15 = vld [vmem:[%s5083_s1 + $0x430] sm:$0xff] }
  0x78   :  { %2593 = vmatprep.subr.msk.bf16.mxu1 %vm2912_vm1, %v2591_v19  ;;  %v160_v53 = vmul.f32 %v158_v46, %v137_v40  ;;  %v410_v19 = vld [vmem:[%s5083_s1 + $0x630] sm:$0xff]  ;;  %v2604_v32 = vpack.c.bf16 %v346_v15, %v344_v14  ;;  %v420_v15 = vld [vmem:[%s5083_s1 + $0x680] sm:$0xff] }
  0x79   :  { %v414_v46 = vld [vmem:[%s5083_s1 + $0x650] sm:$0xff] }
  0x7a   :  { %v3560_v55 = vrot.slane %v160_v53, %v3547_v43  ;;  %v3563_v56 = vrot.slane %v160_v53, %v3554_v49  ;;  %v355_v53 = vld [vmem:[%s5083_s1 + $0x478] sm:$0xff]  ;;  %v358_v14 = vld [vmem:[%s5083_s1 + $0x490] sm:$0xff] }
  0x7c   :  { %v173_v5 = vmul.f32 %v3560_v55, %v3304_v1  ;;  %v172_v28 = vmul.f32 %v3563_v56, %v3292_v59  ;;  %v175_v22 = vmul.f32 %v3560_v55, %v3307_v2  ;;  %v174_v34 = vmul.f32 %v3563_v56, %v3295_v60  ;;  %v409_v1 = vld [vmem:[%s5083_s1 + $0x628] sm:$0xff]  ;;  %v411_v59 = vld [vmem:[%s5083_s1 + $0x638] sm:$0xff] }
  0x7d   :  { %v177_v60 = vmul.f32 %v3560_v55, %v3310_v16  ;;  %v2681_v47 = vpack.c.bf16 %v411_v59, %v409_v1  ;;  %v176_v16 = vmul.f32 %v3563_v56, %v3298_v63  ;;  %v408_v63 = vld [vmem:[%s5083_s1 + $0x620] sm:$0xff]  ;;  %v179_v20 = vmul.f32 %v3560_v55, %v3313_v18  ;;  %v421_v1 = vld [vmem:[%s5083_s1 + $0x688] sm:$0xff]  ;;  %v423_v59 = vld [vmem:[%s5083_s1 + $0x698] sm:$0xff] }
  0x7e   :  { %2515 = vmatpush1.bf16.xpose.msra.mxu0 %v2514_v44  ;;  %v3605_v2 = vadd.f32 %v3557_v54, %v173_v5  ;;  %v3608_v39 = vadd.f32 %v3566_v57, %v172_v28  ;;  %v3613_v11 = vadd.f32 %v3557_v54, %v175_v22  ;;  %v3622_v42 = vadd.f32 %v3566_v57, %v174_v34 }
  0x7f   :  { %2595 = vmatpush1.bf16.xpose.msra.mxu1 %v2594_v45  ;;  %2598 = vmatprep.subr.msk.bf16.mxu0 %vm2912_vm1, %v2596_v50  ;;  %v3627_v13 = vadd.f32 %v3557_v54, %v177_v60  ;;  %v3657_v26 = vadd.f32 %v3566_v57, %v176_v16  ;;  %v178_v18 = vmul.f32 %v3563_v56, %v3301_v0  ;;  %v350_v45 = vld [vmem:[%s5083_s1 + $0x450] sm:$0xff]  ;;  %v353_v50 = vld [vmem:[%s5083_s1 + $0x468] sm:$0xff] }
  0x80   :  { %2678 = vmatprep.subr.msk.bf16.mxu1 %vm2912_vm1, %v2676_v52  ;;  %2288 = vmatprep.mubr.msk.f32.mxu0 %vm52_vm0, %v3605_v2  ;;  %v2684_v0 = vpack.c.bf16 %v410_v19, %v408_v63  ;;  %v181_v33 = vmul.f32 %v3560_v55, %v3316_v23  ;;  %v3677_v35 = vadd.f32 %v3557_v54, %v179_v20  ;;  %v348_v23 = vld [vmem:[%s5083_s1 + $0x440] sm:$0xff]  ;;  %v422_v63 = vld [vmem:[%s5083_s1 + $0x690] sm:$0xff]  ;;  %v361_v19 = vld [vmem:[%s5083_s1 + $0x4a8] sm:$0xff] }
  0x81   :  { %2327 = vmatprep.mubr.msk.f32.mxu1 %vm52_vm0, %v3605_v2  ;;  %v3682_v38 = vadd.f32 %v3566_v57, %v178_v18  ;;  %v180_v40 = vmul.f32 %v3563_v56, %v3321_v17  ;;  %v412_v17 = vld [vmem:[%s5083_s1 + $0x640] sm:$0xff]  ;;  %v183_v48 = vmul.f32 %v3560_v55, %v3330_v6  ;;  %v182_v6 = vmul.f32 %v3563_v56, %v3342_v9  ;;  %v363_v20 = vld [vmem:[%s5083_s1 + $0x4b8] sm:$0xff] }
  0x82   :  { %v3687_v44 = vadd.f32 %v3557_v54, %v181_v33  ;;  %v2609_v62 = vpack.c.bf16 %v350_v45, %v348_v23  ;;  %v2689_v9 = vpack.c.bf16 %v414_v46, %v412_v17  ;;  %v185_v3 = vmul.f32 %v3560_v55, %v3348_v10  ;;  %v352_v10 = vld [vmem:[%s5083_s1 + $0x460] sm:$0xff]  ;;  %v354_v55 = vld [vmem:[%s5083_s1 + $0x470] sm:$0xff]  ;;  %v427_v18 = vld [vmem:[%s5083_s1 + $0x6b8] sm:$0xff] }
  0x83   :  { %v3717_v52 = vadd.f32 %v3566_v57, %v180_v40  ;;  %v3737_v5 = vadd.f32 %v3557_v54, %v183_v48  ;;  %v2611_v28 = vpack.c.bf16 %v355_v53, %v353_v50  ;;  %v2691_v22 = vpack.c.bf16 %v419_v61, %v417_v58  ;;  %v362_v33 = vld [vmem:[%s5083_s1 + $0x4b0] sm:$0xff]  ;;  %v365_v40 = vld [vmem:[%s5083_s1 + $0x4c8] sm:$0xff]  ;;  %v367_v23 = vld [vmem:[%s5083_s1 + $0x4d8] sm:$0xff] }
  0x84   :  { %v3742_v24 = vadd.f32 %v3566_v57, %v182_v6  ;;  %v3747_v34 = vadd.f32 %v3557_v54, %v185_v3  ;;  %v418_v54 = vld [vmem:[%s5083_s1 + $0x670] sm:$0xff]  ;;  %v2614_v60 = vpack.c.bf16 %v354_v55, %v352_v10  ;;  %v2696_v16 = vpack.c.bf16 %v423_v59, %v421_v1  ;;  %v429_v45 = vld [vmem:[%s5083_s1 + $0x6c8] sm:$0xff]  ;;  %v431_v17 = vld [vmem:[%s5083_s1 + $0x6d8] sm:$0xff] }
  0x85   :  { %1018 = vmatmul.mubr.f32.vlgmr.msra.gmra.mrb[0].mxu0 %v3608_v39  ;;  %v2699_v30 = vpack.c.bf16 %v422_v63, %v420_v15  ;;  %v2621_v31 = vpack.c.bf16 %v363_v20, %v361_v19  ;;  %v2626_v50 = vpack.c.bf16 %v367_v23, %v365_v40  ;;  %v2706_v6 = vpack.c.bf16 %v431_v17, %v429_v45  ;;  %v364_v53 = vld [vmem:[%s5083_s1 + $0x4c0] sm:$0xff]  ;;  %v366_v58 = vld [vmem:[%s5083_s1 + $0x4d0] sm:$0xff]  ;;  %v371_v3 = vld [vmem:[%s5083_s1 + $0x4f8] sm:$0xff] }
  0x86   :  { %1125 = vmatmul.mubr.f32.vlgmr.msra.gmra.mrb[0].mxu1 %v3608_v39  ;;  %2600 = vmatpush1.bf16.xpose.msra.mxu0 %v2599_v29  ;;  %v184_v29 = vmul.f32 %v3563_v56, %v3345_v41  ;;  %v416_v41 = vld [vmem:[%s5083_s1 + $0x660] sm:$0xff]  ;;  %v357_v56 = vld [vmem:[%s5083_s1 + $0x488] sm:$0xff]  ;;  %v434_v1 = vld [vmem:[%s5083_s1 + $0x6f0] sm:$0xff] }
  0x87   :  { %2680 = vmatpush1.bf16.xpose.msra.mxu1 %v2679_v8  ;;  %2289 = vmatprep.mubr.msk.f32.mxu0 %vm52_vm0, %v3613_v11  ;;  %v428_v61 = vld [vmem:[%s5083_s1 + $0x6c0] sm:$0xff]  ;;  %v373_v59 = vld [vmem:[%s5083_s1 + $0x508] sm:$0xff]  ;;  %v374_v19 = vld [vmem:[%s5083_s1 + $0x510] sm:$0xff] }
  0x88   :  { %2328 = vmatprep.mubr.msk.f32.mxu1 %vm52_vm0, %v3613_v11  ;;  %2603 = vmatprep.subr.msk.bf16.mxu0 %vm2912_vm1, %v2601_v12  ;;  %v3784_v8 = vadd.f32 %v3566_v57, %v184_v29  ;;  %v2694_v12 = vpack.c.bf16 %v418_v54, %v416_v41  ;;  %v356_v57 = vld [vmem:[%s5083_s1 + $0x480] sm:$0xff]  ;;  %v2629_v29 = vpack.c.bf16 %v366_v58, %v364_v53  ;;  %v378_v40 = vld [vmem:[%s5083_s1 + $0x530] sm:$0xff]  ;;  %v381_v17 = vld [vmem:[%s5083_s1 + $0x548] sm:$0xff] }
  0x89   :  { %2683 = vmatprep.subr.msk.bf16.mxu1 %vm2912_vm1, %v2681_v47  ;;  %1024 = vmatmul.mubr.f32.gmra.mrb[2].mxu0 %v3622_v42  ;;  %v2616_v47 = vpack.c.bf16 %v359_v7, %v357_v56  ;;  %v2619_v27 = vpack.c.bf16 %v358_v14, %v356_v57  ;;  %v368_v54 = vld [vmem:[%s5083_s1 + $0x4e0] sm:$0xff]  ;;  %v370_v56 = vld [vmem:[%s5083_s1 + $0x4f0] sm:$0xff] }
  0x8a   :  { %1131 = vmatmul.mubr.f32.gmra.mrb[2].mxu1 %v3622_v42  ;;  %2290 = vmatprep.mubr.msk.f32.mxu0 %vm52_vm0, %v3627_v13  ;;  %v432_v7 = vld [vmem:[%s5083_s1 + $0x6e0] sm:$0xff]  ;;  %v442_v45 = vld [vmem:[%s5083_s1 + $0x730] sm:$0xff] }
  0x8b   :  { %2329 = vmatprep.mubr.msk.f32.mxu1 %vm52_vm0, %v3627_v13  ;;  %v2714_v57 = vpack.c.bf16 %v434_v1, %v432_v7  ;;  %v372_v63 = vld [vmem:[%s5083_s1 + $0x500] sm:$0xff] }
  0x8c   :  { %v436_v20 = vld [vmem:[%s5083_s1 + $0x700] sm:$0xff] }
  0x8d   :  { %1030 = vmatmul.mubr.f32.gmra.mrb[4].mxu0 %v3657_v26  ;;  %v440_v23 = vld [vmem:[%s5083_s1 + $0x720] sm:$0xff] }
  0x8e   :  { %1137 = vmatmul.mubr.f32.gmra.mrb[4].mxu1 %v3657_v26  ;;  %2605 = vmatpush1.bf16.xpose.msra.mxu0 %v2604_v32  ;;  %v2701_v32 = vpack.c.bf16 %v427_v18, %v425_v25  ;;  %v438_v25 = vld [vmem:[%s5083_s1 + $0x710] sm:$0xff]  ;;  %v377_v18 = vld [vmem:[%s5083_s1 + $0x528] sm:$0xff]  ;;  %v2724_v53 = vpack.c.bf16 %v442_v45, %v440_v23  ;;  %v384_v1 = vld [vmem:[%s5083_s1 + $0x560] sm:$0xff] }
  0x8f   :  { %2685 = vmatpush1.bf16.xpose.msra.mxu1 %v2684_v0  ;;  %2291 = vmatprep.mubr.msk.f32.mxu0 %vm52_vm0, %v3677_v35  ;;  %v360_v0 = vld [vmem:[%s5083_s1 + $0x4a0] sm:$0xff] }
  0x90   :  { %2330 = vmatprep.mubr.msk.f32.mxu1 %vm52_vm0, %v3677_v35  ;;  %2608 = vmatprep.subr.msk.bf16.mxu0 %vm2912_vm1, %v2606_v36  ;;  %v424_v36 = vld [vmem:[%s5083_s1 + $0x6a0] sm:$0xff]  ;;  %v2624_v46 = vpack.c.bf16 %v362_v33, %v360_v0  ;;  %v2719_v0 = vpack.c.bf16 %v438_v25, %v436_v20 }
  0x91   :  { %2688 = vmatprep.subr.msk.bf16.mxu1 %vm2912_vm1, %v2686_v37  ;;  %1036 = vmatmul.mubr.f32.gmra.mrb[6].mxu0 %v3682_v38  ;;  %v426_v37 = vld [vmem:[%s5083_s1 + $0x6b0] sm:$0xff]  ;;  %v388_v25 = vld [vmem:[%s5083_s1 + $0x580] sm:$0xff] }
  0x92   :  { %1143 = vmatmul.mubr.f32.gmra.mrb[6].mxu1 %v3682_v38  ;;  %2292 = vmatprep.mubr.msk.f32.mxu0 %vm52_vm0, %v3687_v44  ;;  %v2704_v48 = vpack.c.bf16 %v426_v37, %v424_v36  ;;  %v376_v37 = vld [vmem:[%s5083_s1 + $0x520] sm:$0xff] }
  0x93   :  { %2331 = vmatprep.mubr.msk.f32.mxu1 %vm52_vm0, %v3687_v44  ;;  %v392_v45 = vld [vmem:[%s5083_s1 + $0x5a0] sm:$0xff] }
  0x95   :  { %1042 = vmatmul.mubr.f32.gmra.mrb[8].mxu0 %v3717_v52 }
  0x96   :  { %1149 = vmatmul.mubr.f32.gmra.mrb[8].mxu1 %v3717_v52  ;;  %2610 = vmatpush1.bf16.xpose.msra.mxu0 %v2609_v62  ;;  %v430_v62 = vld [vmem:[%s5083_s1 + $0x6d0] sm:$0xff] }
  0x97   :  { %2690 = vmatpush1.bf16.xpose.msra.mxu1 %v2689_v9  ;;  %2293 = vmatprep.mubr.msk.f32.mxu0 %vm52_vm0, %v3737_v5  ;;  %v369_v9 = vld [vmem:[%s5083_s1 + $0x4e8] sm:$0xff]  ;;  %v2709_v10 = vpack.c.bf16 %v430_v62, %v428_v61  ;;  %v380_v62 = vld [vmem:[%s5083_s1 + $0x540] sm:$0xff] }
  0x98   :  { %2332 = vmatprep.mubr.msk.f32.mxu1 %vm52_vm0, %v3737_v5  ;;  %2613 = vmatprep.subr.msk.bf16.mxu0 %vm2912_vm1, %v2611_v28  ;;  %v433_v28 = vld [vmem:[%s5083_s1 + $0x6e8] sm:$0xff]  ;;  %v2631_v55 = vpack.c.bf16 %v371_v3, %v369_v9  ;;  %v382_v9 = vld [vmem:[%s5083_s1 + $0x550] sm:$0xff]  ;;  %v444_v3 = vld [vmem:[%s5083_s1 + $0x740] sm:$0xff] }
  0x99   :  { %2693 = vmatprep.subr.msk.bf16.mxu1 %vm2912_vm1, %v2691_v22  ;;  %1048 = vmatmul.mubr.f32.gmra.mrb[10].mxu0 %v3742_v24  ;;  %v435_v22 = vld [vmem:[%s5083_s1 + $0x6f8] sm:$0xff] }
  0x9a   :  { %1155 = vmatmul.mubr.f32.gmra.mrb[10].mxu1 %v3742_v24  ;;  %2294 = vmatprep.mubr.msk.f32.mxu0 %vm52_vm0, %v3747_v34  ;;  %v2711_v41 = vpack.c.bf16 %v435_v22, %v433_v28  ;;  %v446_v28 = vld [vmem:[%s5083_s1 + $0x750] sm:$0xff]  ;;  %v385_v22 = vld [vmem:[%s5083_s1 + $0x568] sm:$0xff] }
  0x9b   :  { %2333 = vmatprep.mubr.msk.f32.mxu1 %vm52_vm0, %v3747_v34 }
  0x9d   :  { %1054 = vmatmul.mubr.f32.gmra.mrb[12].mxu0 %v3784_v8 }
  0x9e   :  { %1161 = vmatmul.mubr.f32.gmra.mrb[12].mxu1 %v3784_v8  ;;  %2615 = vmatpush1.bf16.xpose.msra.mxu0 %v2614_v60  ;;  %v375_v60 = vld [vmem:[%s5083_s1 + $0x518] sm:$0xff] }
  0x9f   :  { %2695 = vmatpush1.bf16.xpose.msra.mxu1 %v2694_v12  ;;  %2618 = vmatprep.subr.msk.bf16.mxu0 %vm2912_vm1, %v2616_v47  ;;  %v437_v12 = vld [vmem:[%s5083_s1 + $0x708] sm:$0xff]  ;;  %v439_v47 = vld [vmem:[%s5083_s1 + $0x718] sm:$0xff]  ;;  %v2636_v14 = vpack.c.bf16 %v375_v60, %v373_v59  ;;  %v386_v59 = vld [vmem:[%s5083_s1 + $0x570] sm:$0xff] }
  0xa0   :  { %2698 = vmatprep.subr.msk.bf16.mxu1 %vm2912_vm1, %v2696_v16  ;;  %2366 = vmatprep.mubr.msk.f32.mxu0 %vm52_vm0, %v3605_v2  ;;  %v2634_v16 = vpack.c.bf16 %v370_v56, %v368_v54  ;;  %v2716_v15 = vpack.c.bf16 %v439_v47, %v437_v12  ;;  %v2729_v54 = vpack.c.bf16 %v446_v28, %v444_v3  ;;  %v448_v60 = vld [vmem:[%s5083_s1 + $0x760] sm:$0xff]  ;;  %v450_v12 = vld [vmem:[%s5083_s1 + $0x770] sm:$0xff]  ;;  %v389_v47 = vld [vmem:[%s5083_s1 + $0x588] sm:$0xff] }
  0xa1   :  { %2405 = vmatprep.mubr.msk.f32.mxu1 %vm52_vm0, %v3605_v2  ;;  %v396_v28 = vld [vmem:[%s5083_s1 + $0x5c0] sm:$0xff] }
  0xa6   :  { %2620 = vmatpush1.bf16.xpose.msra.mxu0 %v2619_v27  ;;  %v379_v27 = vld [vmem:[%s5083_s1 + $0x538] sm:$0xff] }
  0xa7   :  { %2700 = vmatpush1.bf16.xpose.msra.mxu1 %v2699_v30  ;;  %2623 = vmatprep.subr.msk.bf16.mxu0 %vm2912_vm1, %v2621_v31  ;;  %v441_v30 = vld [vmem:[%s5083_s1 + $0x728] sm:$0xff]  ;;  %v443_v31 = vld [vmem:[%s5083_s1 + $0x738] sm:$0xff]  ;;  %v2641_v33 = vpack.c.bf16 %v379_v27, %v377_v18  ;;  %v390_v18 = vld [vmem:[%s5083_s1 + $0x590] sm:$0xff] }
  0xa8   :  { %2703 = vmatprep.subr.msk.bf16.mxu1 %vm2912_vm1, %v2701_v32  ;;  %v2639_v32 = vpack.c.bf16 %v374_v19, %v372_v63  ;;  %v2721_v36 = vpack.c.bf16 %v443_v31, %v441_v30  ;;  %v2734_v63 = vpack.c.bf16 %v450_v12, %v448_v60  ;;  %v452_v27 = vld [vmem:[%s5083_s1 + $0x780] sm:$0xff]  ;;  %v454_v30 = vld [vmem:[%s5083_s1 + $0x790] sm:$0xff]  ;;  %v393_v31 = vld [vmem:[%s5083_s1 + $0x5a8] sm:$0xff] }
  0xa9   :  { %v400_v12 = vld [vmem:[%s5083_s1 + $0x5e0] sm:$0xff] }
  0xae   :  { %2625 = vmatpush1.bf16.xpose.msra.mxu0 %v2624_v46  ;;  %v383_v46 = vld [vmem:[%s5083_s1 + $0x558] sm:$0xff] }
  0xaf   :  { %2705 = vmatpush1.bf16.xpose.msra.mxu1 %v2704_v48  ;;  %2628 = vmatprep.subr.msk.bf16.mxu0 %vm2912_vm1, %v2626_v50  ;;  %v445_v48 = vld [vmem:[%s5083_s1 + $0x748] sm:$0xff]  ;;  %v447_v50 = vld [vmem:[%s5083_s1 + $0x758] sm:$0xff]  ;;  %v2646_v58 = vpack.c.bf16 %v383_v46, %v381_v17  ;;  %v394_v17 = vld [vmem:[%s5083_s1 + $0x5b0] sm:$0xff] }
  0xb0   :  { %2708 = vmatprep.subr.msk.bf16.mxu1 %vm2912_vm1, %v2706_v6  ;;  %v2644_v6 = vpack.c.bf16 %v378_v40, %v376_v37  ;;  %v2726_v61 = vpack.c.bf16 %v447_v50, %v445_v48  ;;  %v2739_v37 = vpack.c.bf16 %v454_v30, %v452_v27  ;;  %v456_v46 = vld [vmem:[%s5083_s1 + $0x7a0] sm:$0xff]  ;;  %v458_v48 = vld [vmem:[%s5083_s1 + $0x7b0] sm:$0xff]  ;;  %v397_v50 = vld [vmem:[%s5083_s1 + $0x5c8] sm:$0xff] }
  0xb1   :  { %v473_v27 = vld [vmem:[%s5083_s1 + $0x828] sm:$0xff]  ;;  %v475_v30 = vld [vmem:[%s5083_s1 + $0x838] sm:$0xff] }
  0xb6   :  { %2630 = vmatpush1.bf16.xpose.msra.mxu0 %v2629_v29  ;;  %v387_v29 = vld [vmem:[%s5083_s1 + $0x578] sm:$0xff] }
  0xb7   :  { %2710 = vmatpush1.bf16.xpose.msra.mxu1 %v2709_v10  ;;  %2633 = vmatprep.subr.msk.bf16.mxu0 %vm2912_vm1, %v2631_v55  ;;  %v449_v10 = vld [vmem:[%s5083_s1 + $0x768] sm:$0xff]  ;;  %v451_v55 = vld [vmem:[%s5083_s1 + $0x778] sm:$0xff]  ;;  %v2651_v56 = vpack.c.bf16 %v387_v29, %v385_v22  ;;  %v398_v22 = vld [vmem:[%s5083_s1 + $0x5d0] sm:$0xff] }
  0xb8   :  { %2713 = vmatprep.subr.msk.bf16.mxu1 %vm2912_vm1, %v2711_v41  ;;  %v2649_v41 = vpack.c.bf16 %v382_v9, %v380_v62  ;;  %v2731_v7 = vpack.c.bf16 %v451_v55, %v449_v10  ;;  %v2744_v62 = vpack.c.bf16 %v458_v48, %v456_v46  ;;  %v460_v29 = vld [vmem:[%s5083_s1 + $0x7c0] sm:$0xff]  ;;  %v462_v10 = vld [vmem:[%s5083_s1 + $0x7d0] sm:$0xff]  ;;  %v401_v55 = vld [vmem:[%s5083_s1 + $0x5e8] sm:$0xff] }
  0xb9   :  { %v481_v46 = vld [vmem:[%s5083_s1 + $0x868] sm:$0xff]  ;;  %v483_v48 = vld [vmem:[%s5083_s1 + $0x878] sm:$0xff] }
  0xbe   :  { %2635 = vmatpush1.bf16.xpose.msra.mxu0 %v2634_v16  ;;  %v391_v16 = vld [vmem:[%s5083_s1 + $0x598] sm:$0xff] }
  0xbf   :  { %2715 = vmatpush1.bf16.xpose.msra.mxu1 %v2714_v57  ;;  %2638 = vmatprep.subr.msk.bf16.mxu0 %vm2912_vm1, %v2636_v14  ;;  %v453_v57 = vld [vmem:[%s5083_s1 + $0x788] sm:$0xff]  ;;  %v455_v14 = vld [vmem:[%s5083_s1 + $0x798] sm:$0xff]  ;;  %v2656_v19 = vpack.c.bf16 %v391_v16, %v389_v47  ;;  %v402_v47 = vld [vmem:[%s5083_s1 + $0x5f0] sm:$0xff] }
  0xc0   :  { %2718 = vmatprep.subr.msk.bf16.mxu1 %vm2912_vm1, %v2716_v15  ;;  %v2654_v15 = vpack.c.bf16 %v386_v59, %v384_v1  ;;  %v2736_v20 = vpack.c.bf16 %v455_v14, %v453_v57  ;;  %v2749_v1 = vpack.c.bf16 %v462_v10, %v460_v29  ;;  %v464_v16 = vld [vmem:[%s5083_s1 + $0x7e0] sm:$0xff]  ;;  %v466_v57 = vld [vmem:[%s5083_s1 + $0x7f0] sm:$0xff]  ;;  %v469_v14 = vld [vmem:[%s5083_s1 + $0x808] sm:$0xff] }
  0xc1   :  { %v489_v29 = vld [vmem:[%s5083_s1 + $0x8a8] sm:$0xff] }
  0xc6   :  { %2640 = vmatpush1.bf16.xpose.msra.mxu0 %v2639_v32  ;;  %v395_v32 = vld [vmem:[%s5083_s1 + $0x5b8] sm:$0xff] }
  0xc7   :  { %2720 = vmatpush1.bf16.xpose.msra.mxu1 %v2719_v0  ;;  %2643 = vmatprep.subr.msk.bf16.mxu0 %vm2912_vm1, %v2641_v33  ;;  %v457_v0 = vld [vmem:[%s5083_s1 + $0x7a8] sm:$0xff]  ;;  %v459_v33 = vld [vmem:[%s5083_s1 + $0x7b8] sm:$0xff]  ;;  %v2661_v40 = vpack.c.bf16 %v395_v32, %v393_v31  ;;  %v2761_v32 = vpack.c.bf16 %v475_v30, %v473_v27 }
  0xc8   :  { %2723 = vmatprep.subr.msk.bf16.mxu1 %vm2912_vm1, %v2721_v36  ;;  %v2659_v36 = vpack.c.bf16 %v390_v18, %v388_v25  ;;  %v2741_v23 = vpack.c.bf16 %v459_v33, %v457_v0  ;;  %v468_v25 = vld [vmem:[%s5083_s1 + $0x800] sm:$0xff]  ;;  %v470_v18 = vld [vmem:[%s5083_s1 + $0x810] sm:$0xff] }
  0xc9   :  { %v2759_v31 = vpack.c.bf16 %v470_v18, %v468_v25  ;;  %v472_v0 = vld [vmem:[%s5083_s1 + $0x820] sm:$0xff]  ;;  %v474_v33 = vld [vmem:[%s5083_s1 + $0x830] sm:$0xff] }
  0xce   :  { %2645 = vmatpush1.bf16.xpose.msra.mxu0 %v2644_v6  ;;  %v399_v6 = vld [vmem:[%s5083_s1 + $0x5d8] sm:$0xff] }
  0xcf   :  { %2725 = vmatpush1.bf16.xpose.msra.mxu1 %v2724_v53  ;;  %2648 = vmatprep.subr.msk.bf16.mxu0 %vm2912_vm1, %v2646_v58  ;;  %v461_v53 = vld [vmem:[%s5083_s1 + $0x7c8] sm:$0xff]  ;;  %v463_v58 = vld [vmem:[%s5083_s1 + $0x7d8] sm:$0xff]  ;;  %v2666_v9 = vpack.c.bf16 %v399_v6, %v397_v50  ;;  %v2771_v6 = vpack.c.bf16 %v483_v48, %v481_v46 }
  0xd0   :  { %2728 = vmatprep.subr.msk.bf16.mxu1 %vm2912_vm1, %v2726_v61  ;;  %v2664_v61 = vpack.c.bf16 %v394_v17, %v392_v45  ;;  %v2746_v3 = vpack.c.bf16 %v463_v58, %v461_v53  ;;  %v476_v45 = vld [vmem:[%s5083_s1 + $0x840] sm:$0xff]  ;;  %v478_v17 = vld [vmem:[%s5083_s1 + $0x850] sm:$0xff] }
  0xd1   :  { %v2769_v50 = vpack.c.bf16 %v478_v17, %v476_v45  ;;  %v480_v53 = vld [vmem:[%s5083_s1 + $0x860] sm:$0xff]  ;;  %v482_v58 = vld [vmem:[%s5083_s1 + $0x870] sm:$0xff] }
  0xd6   :  { %2650 = vmatpush1.bf16.xpose.msra.mxu0 %v2649_v41  ;;  %v403_v41 = vld [vmem:[%s5083_s1 + $0x5f8] sm:$0xff] }
  0xd7   :  { %2730 = vmatpush1.bf16.xpose.msra.mxu1 %v2729_v54  ;;  %2653 = vmatprep.subr.msk.bf16.mxu0 %vm2912_vm1, %v2651_v56  ;;  %v465_v54 = vld [vmem:[%s5083_s1 + $0x7e8] sm:$0xff]  ;;  %v467_v56 = vld [vmem:[%s5083_s1 + $0x7f8] sm:$0xff]  ;;  %v2671_v59 = vpack.c.bf16 %v403_v41, %v401_v55  ;;  %v490_v41 = vld [vmem:[%s5083_s1 + $0x8b0] sm:$0xff] }
  0xd8   :  { %2733 = vmatprep.subr.msk.bf16.mxu1 %vm2912_vm1, %v2731_v7  ;;  %v2669_v7 = vpack.c.bf16 %v398_v22, %v396_v28  ;;  %v2751_v60 = vpack.c.bf16 %v467_v56, %v465_v54  ;;  %v484_v28 = vld [vmem:[%s5083_s1 + $0x880] sm:$0xff]  ;;  %v486_v22 = vld [vmem:[%s5083_s1 + $0x890] sm:$0xff]  ;;  %v493_v54 = vld [vmem:[%s5083_s1 + $0x8c8] sm:$0xff] }
  0xd9   :  { %v2779_v10 = vpack.c.bf16 %v486_v22, %v484_v28  ;;  %v495_v56 = vld [vmem:[%s5083_s1 + $0x8d8] sm:$0xff] }
  0xde   :  { %2655 = vmatpush1.bf16.xpose.msra.mxu0 %v2654_v15  ;;  %v471_v15 = vld [vmem:[%s5083_s1 + $0x818] sm:$0xff] }
  0xdf   :  { %2735 = vmatpush1.bf16.xpose.msra.mxu1 %v2734_v63  ;;  %2658 = vmatprep.subr.msk.bf16.mxu0 %vm2912_vm1, %v2656_v19  ;;  %v2674_v63 = vpack.c.bf16 %v402_v47, %v400_v12  ;;  %v2754_v19 = vpack.c.bf16 %v466_v57, %v464_v16  ;;  %v497_v12 = vld [vmem:[%s5083_s1 + $0x8e8] sm:$0xff]  ;;  %v499_v47 = vld [vmem:[%s5083_s1 + $0x8f8] sm:$0xff] }
  0xe0   :  { %2738 = vmatprep.subr.msk.bf16.mxu1 %vm2912_vm1, %v2736_v20  ;;  %v2756_v20 = vpack.c.bf16 %v471_v15, %v469_v14  ;;  %v2791_v57 = vpack.c.bf16 %v499_v47, %v497_v12  ;;  %v496_v14 = vld [vmem:[%s5083_s1 + $0x8e0] sm:$0xff]  ;;  %v498_v15 = vld [vmem:[%s5083_s1 + $0x8f0] sm:$0xff] }
  0xe6   :  { %2660 = vmatpush1.bf16.xpose.msra.mxu0 %v2659_v36  ;;  %v477_v36 = vld [vmem:[%s5083_s1 + $0x848] sm:$0xff] }
  0xe7   :  { %2740 = vmatpush1.bf16.xpose.msra.mxu1 %v2739_v37  ;;  %2663 = vmatprep.subr.msk.bf16.mxu0 %vm2912_vm1, %v2661_v40  ;;  %v479_v37 = vld [vmem:[%s5083_s1 + $0x858] sm:$0xff]  ;;  %v2764_v40 = vpack.c.bf16 %v474_v33, %v472_v0 }
  0xe8   :  { %2743 = vmatprep.subr.msk.bf16.mxu1 %vm2912_vm1, %v2741_v23  ;;  %v2766_v23 = vpack.c.bf16 %v479_v37, %v477_v36 }
  0xee   :  { %2665 = vmatpush1.bf16.xpose.msra.mxu0 %v2664_v61  ;;  %v485_v61 = vld [vmem:[%s5083_s1 + $0x888] sm:$0xff] }
  0xef   :  { %2745 = vmatpush1.bf16.xpose.msra.mxu1 %v2744_v62  ;;  %2668 = vmatprep.subr.msk.bf16.mxu0 %vm2912_vm1, %v2666_v9  ;;  %v487_v62 = vld [vmem:[%s5083_s1 + $0x898] sm:$0xff]  ;;  %v2774_v9 = vpack.c.bf16 %v482_v58, %v480_v53 }
  0xf0   :  { %2748 = vmatprep.subr.msk.bf16.mxu1 %vm2912_vm1, %v2746_v3  ;;  %v2776_v3 = vpack.c.bf16 %v487_v62, %v485_v61 }
  0xf6   :  { %2670 = vmatpush1.bf16.xpose.msra.mxu0 %v2669_v7 }
  0xf7   :  { %2750 = vmatpush1.bf16.xpose.msra.mxu1 %v2749_v1  ;;  %2673 = vmatprep.subr.msk.bf16.mxu0 %vm2912_vm1, %v2671_v59  ;;  %v2786_v1 = vpack.c.bf16 %v495_v56, %v493_v54  ;;  %v492_v59 = vld [vmem:[%s5083_s1 + $0x8c0] sm:$0xff] }
  0xf8   :  { %2753 = vmatprep.subr.msk.bf16.mxu1 %vm2912_vm1, %v2751_v60  ;;  %v494_v60 = vld [vmem:[%s5083_s1 + $0x8d0] sm:$0xff] }
  0xf9   :  { %v2789_v16 = vpack.c.bf16 %v494_v60, %v492_v59 }
  0xfe   :  { %2675 = vmatpush1.bf16.xpose.msra.mxu0 %v2674_v63  ;;  %v2794_v63 = vpack.c.bf16 %v498_v15, %v496_v14 }
  0xff   :  { %2755 = vmatpush1.bf16.xpose.msra.mxu1 %v2754_v19  ;;  %2758 = vmatprep.subr.msk.bf16.mxu0 %vm2912_vm1, %v2756_v20 }
 0x100   :  { %2796 = vmatprep.subr.msk.bf16.mxu1 %vm2912_vm1, %v2756_v20 }
 0x105   :  { %1232 = vmatmul.mubr.f32.vlgmr.msra.gmra.mrb[14].mxu0 %v3608_v39 }
 0x106   :  { %1339 = vmatmul.mubr.f32.vlgmr.msra.gmra.mrb[14].mxu1 %v3608_v39  ;;  %2760 = vmatpush1.bf16.xpose.msra.mxu0 %v2759_v31 }
 0x107   :  { %2367 = vmatprep.mubr.msk.f32.mxu0 %vm52_vm0, %v3613_v11  ;;  %2406 = vmatprep.mubr.msk.f32.mxu1 %vm52_vm0, %v3613_v11 }
 0x108   :  { %2763 = vmatprep.subr.msk.bf16.mxu0 %vm2912_vm1, %v2761_v32  ;;  %2804 = vmatpush1.bf16.xpose.msra.mxu1 %v2759_v31 }
 0x109   :  { %1238 = vmatmul.mubr.f32.gmra.mrb[16].mxu0 %v3622_v42  ;;  %2797 = vmatprep.subr.msk.bf16.mxu1 %vm2912_vm1, %v2761_v32 }
 0x10a   :  { %1345 = vmatmul.mubr.f32.gmra.mrb[16].mxu1 %v3622_v42  ;;  %2368 = vmatprep.mubr.msk.f32.mxu0 %vm52_vm0, %v3627_v13 }
 0x10b   :  { %2407 = vmatprep.mubr.msk.f32.mxu1 %vm52_vm0, %v3627_v13 }
 0x10d   :  { %1244 = vmatmul.mubr.f32.gmra.mrb[18].mxu0 %v3657_v26 }
 0x10e   :  { %1351 = vmatmul.mubr.f32.gmra.mrb[18].mxu1 %v3657_v26  ;;  %2765 = vmatpush1.bf16.xpose.msra.mxu0 %v2764_v40 }
 0x10f   :  { %2369 = vmatprep.mubr.msk.f32.mxu0 %vm52_vm0, %v3677_v35  ;;  %2408 = vmatprep.mubr.msk.f32.mxu1 %vm52_vm0, %v3677_v35 }
 0x110   :  { %2768 = vmatprep.subr.msk.bf16.mxu0 %vm2912_vm1, %v2766_v23  ;;  %2805 = vmatpush1.bf16.xpose.msra.mxu1 %v2764_v40 }
 0x111   :  { %1250 = vmatmul.mubr.f32.gmra.mrb[20].mxu0 %v3682_v38  ;;  %2798 = vmatprep.subr.msk.bf16.mxu1 %vm2912_vm1, %v2766_v23 }
 0x112   :  { %1357 = vmatmul.mubr.f32.gmra.mrb[20].mxu1 %v3682_v38  ;;  %2370 = vmatprep.mubr.msk.f32.mxu0 %vm52_vm0, %v3687_v44 }
 0x113   :  { %2409 = vmatprep.mubr.msk.f32.mxu1 %vm52_vm0, %v3687_v44 }
 0x115   :  { %1256 = vmatmul.mubr.f32.gmra.mrb[22].mxu0 %v3717_v52 }
 0x116   :  { %1363 = vmatmul.mubr.f32.gmra.mrb[22].mxu1 %v3717_v52  ;;  %2770 = vmatpush1.bf16.xpose.msra.mxu0 %v2769_v50 }
 0x117   :  { %2371 = vmatprep.mubr.msk.f32.mxu0 %vm52_vm0, %v3737_v5  ;;  %2410 = vmatprep.mubr.msk.f32.mxu1 %vm52_vm0, %v3737_v5 }
 0x118   :  { %2773 = vmatprep.subr.msk.bf16.mxu0 %vm2912_vm1, %v2771_v6  ;;  %2806 = vmatpush1.bf16.xpose.msra.mxu1 %v2769_v50 }
 0x119   :  { %1262 = vmatmul.mubr.f32.gmra.mrb[24].mxu0 %v3742_v24  ;;  %2799 = vmatprep.subr.msk.bf16.mxu1 %vm2912_vm1, %v2771_v6 }
 0x11a   :  { %1369 = vmatmul.mubr.f32.gmra.mrb[24].mxu1 %v3742_v24  ;;  %2372 = vmatprep.mubr.msk.f32.mxu0 %vm52_vm0, %v3747_v34 }
 0x11b   :  { %2411 = vmatprep.mubr.msk.f32.mxu1 %vm52_vm0, %v3747_v34 }
 0x11d   :  { %1268 = vmatmul.mubr.f32.gmra.mrb[26].mxu0 %v3784_v8 }
 0x11e   :  { %1375 = vmatmul.mubr.f32.gmra.mrb[26].mxu1 %v3784_v8  ;;  %2775 = vmatpush1.bf16.xpose.msra.mxu0 %v2774_v9 }
 0x11f   :  { %2428 = vmatprep.mubr.msk.f32.mxu0 %vm52_vm0, %v3605_v2  ;;  %2778 = vmatprep.subr.msk.bf16.mxu0 %vm2912_vm1, %v2776_v3  ;;  %v491_v2 = vld [vmem:[%s5083_s1 + $0x8b8] sm:$0xff] }
 0x120   :  { %2432 = vmatprep.mubr.msk.f32.mxu1 %vm52_vm0, %v3687_v44  ;;  %2807 = vmatpush1.bf16.xpose.msra.mxu1 %v2774_v9  ;;  %v2781_v55 = vpack.c.bf16 %v491_v2, %v489_v29  ;;  %v488_v44 = vld [vmem:[%s5083_s1 + $0x8a0] sm:$0xff] }
 0x121   :  { %2800 = vmatprep.subr.msk.bf16.mxu1 %vm2912_vm1, %v2776_v3  ;;  %v2784_v7 = vpack.c.bf16 %v490_v41, %v488_v44 }
 0x126   :  { %2780 = vmatpush1.bf16.xpose.msra.mxu0 %v2779_v10 }
 0x127   :  { %2783 = vmatprep.subr.msk.bf16.mxu0 %vm2912_vm1, %v2781_v55 }
 0x128   :  { %2808 = vmatpush1.bf16.xpose.msra.mxu1 %v2779_v10 }
 0x129   :  { %2801 = vmatprep.subr.msk.bf16.mxu1 %vm2912_vm1, %v2781_v55 }
 0x12e   :  { %2785 = vmatpush1.bf16.xpose.msra.mxu0 %v2784_v7 }
 0x12f   :  { %2788 = vmatprep.subr.msk.bf16.mxu0 %vm2912_vm1, %v2786_v1 }
 0x130   :  { %2809 = vmatpush1.bf16.xpose.msra.mxu1 %v2784_v7 }
 0x131   :  { %2802 = vmatprep.subr.msk.bf16.mxu1 %vm2912_vm1, %v2786_v1 }
 0x136   :  { %2790 = vmatpush1.bf16.xpose.msra.mxu0 %v2789_v16 }
 0x137   :  { %2793 = vmatprep.subr.msk.bf16.mxu0 %vm2912_vm1, %v2791_v57 }
 0x138   :  { %2810 = vmatpush1.bf16.xpose.msra.mxu1 %v2789_v16 }
 0x139   :  { %2803 = vmatprep.subr.msk.bf16.mxu1 %vm2912_vm1, %v2791_v57 }
 0x13e   :  { %2795 = vmatpush1.bf16.xpose.msra.mxu0 %v2794_v63 }
 0x140   :  { %2811 = vmatpush1.bf16.xpose.msra.mxu1 %v2794_v63 }
 0x145   :  { %1446 = vmatmul.mubr.f32.vlgmr.msra.gmra.mrb[28].mxu0 %v3608_v39 }
 0x146   :  { %2429 = vmatprep.mubr.msk.f32.mxu0 %vm52_vm0, %v3613_v11 }
 0x147   :  { %1466 = vmatmul.mubr.f32.vlgmr.msra.gmra.mrb[28].mxu1 %v3717_v52 }
 0x148   :  { %2433 = vmatprep.mubr.msk.f32.mxu1 %vm52_vm0, %v3737_v5 }
 0x149   :  { %1451 = vmatmul.mubr.f32.gmra.mrb[30].mxu0 %v3622_v42 }
 0x14a   :  { %2430 = vmatprep.mubr.msk.f32.mxu0 %vm52_vm0, %v3627_v13 }
 0x14b   :  { %1471 = vmatmul.mubr.f32.gmra.mrb[30].mxu1 %v3742_v24 }
 0x14c   :  { %2434 = vmatprep.mubr.msk.f32.mxu1 %vm52_vm0, %v3747_v34 }
 0x14d   :  { %1456 = vmatmul.mubr.f32.gmra.mrb[32].mxu0 %v3657_v26 }
 0x14e   :  { %2431 = vmatprep.mubr.msk.f32.mxu0 %vm52_vm0, %v3677_v35 }
 0x14f   :  { %1476 = vmatmul.mubr.f32.gmra.mrb[32].mxu1 %v3784_v8 }
 0x151   :  { %1461 = vmatmul.mubr.f32.gmra.mrb[34].mxu0 %v3682_v38 }
 0x158   :  { %v4307_v4 = vpop.f32.mrb[0].mxu0 }
 0x159   :  { %v4309_v39 = vpop.f32.mrb[0].mxu1  ;;  %v4311_v11 = vpop.f32.mrb[1].mxu0 }
 0x15a   :  { %v4313_v42 = vpop.f32.mrb[1].mxu1 }
 0x15c   :  { %v4315_v13 = vpop.f32.mrb[2].mxu0 }
 0x15d   :  { %v4317_v52 = vpop.f32.mrb[2].mxu1  ;;  %v1481_v26 = vadd.f32 %v4315_v13, %v4307_v4  ;;  %v4321_v35 = vpop.f32.mrb[3].mxu0 }
 0x15e   :  { %v1507_v38 = vadd.f32 %v4317_v52, %v4309_v39  ;;  %v4325_v5 = vpop.f32.mrb[3].mxu1  ;;  %v1494_v24 = vadd.f32 %v4321_v35, %v4311_v11 }
 0x15f   :  { %v1520_v34 = vadd.f32 %v4325_v5, %v4313_v42 }
 0x160   :  { %v4331_v8 = vpop.f32.mrb[4].mxu0 }
 0x161   :  { %v4333_v19 = vpop.f32.mrb[4].mxu1  ;;  %v1482_v20 = vadd.f32 %v1481_v26, %v4331_v8  ;;  %v4336_v25 = vpop.f32.mrb[5].mxu0 }
 0x162   :  { %v1508_v18 = vadd.f32 %v1507_v38, %v4333_v19  ;;  %v4339_v27 = vpop.f32.mrb[5].mxu1  ;;  %v1495_v30 = vadd.f32 %v1494_v24, %v4336_v25 }
 0x163   :  { %v1521_v31 = vadd.f32 %v1520_v34, %v4339_v27 }
 0x164   :  { %v4343_v32 = vpop.f32.mrb[6].mxu0 }
 0x165   :  { %v4345_v0 = vpop.f32.mrb[6].mxu1  ;;  %v1483_v33 = vadd.f32 %v1482_v20, %v4343_v32  ;;  %v4348_v36 = vpop.f32.mrb[7].mxu0 }
 0x166   :  { %v1509_v37 = vadd.f32 %v1508_v18, %v4345_v0  ;;  %v4351_v40 = vpop.f32.mrb[7].mxu1  ;;  %v1496_v23 = vadd.f32 %v1495_v30, %v4348_v36 }
 0x167   :  { %v1522_v45 = vadd.f32 %v1521_v31, %v4351_v40 }
 0x168   :  { %v1043_v17 = vpop.f32.mrb[8].mxu0 }
 0x169   :  { %v4355_v46 = vpop.f32.mrb[8].mxu1  ;;  %v1484_v48 = vadd.f32 %v1483_v33, %v1043_v17  ;;  %v4358_v6 = vpop.f32.mrb[9].mxu0 }
 0x16a   :  { %v1510_v50 = vadd.f32 %v1509_v37, %v4355_v46  ;;  %v4360_v53 = vpop.f32.mrb[9].mxu1  ;;  %v1497_v58 = vadd.f32 %v1496_v23, %v4358_v6 }
 0x16b   :  { %v1523_v61 = vadd.f32 %v1522_v45, %v4360_v53 }
 0x16c   :  { %v1049_v62 = vpop.f32.mrb[10].mxu0 }
 0x16d   :  { %v1156_v9 = vpop.f32.mrb[10].mxu1  ;;  %v1485_v3 = vadd.f32 %v1484_v48, %v1049_v62  ;;  %v4364_v22 = vpop.f32.mrb[11].mxu0 }
 0x16e   :  { %v1511_v28 = vadd.f32 %v1510_v50, %v1156_v9  ;;  %v4366_v29 = vpop.f32.mrb[11].mxu1  ;;  %v1498_v2 = vadd.f32 %v1497_v58, %v4364_v22 }
 0x16f   :  { %v1524_v10 = vadd.f32 %v1523_v61, %v4366_v29 }
 0x170   :  { %v1055_v55 = vpop.f32.mrb[12].mxu0 }
 0x171   :  { %v1162_v44 = vpop.f32.mrb[12].mxu1  ;;  %v1486_v41 = vsel %vm43_vm2, %v1055_v55, 0.0  ;;  %v4372_v56 = vpop.f32.mrb[13].mxu0 }
 0x172   :  { %v1512_v54 = vsel %vm43_vm2, %v1162_v44, 0.0  ;;  %v4374_v7 = vpop.f32.mrb[13].mxu1  ;;  %v1487_v1 = vadd.f32 %v1486_v41, %v1485_v3  ;;  %v1499_v60 = vsel %vm43_vm2, %v4372_v56, 0.0 }
 0x173   :  { %v1513_v59 = vadd.f32 %v1512_v54, %v1511_v28  ;;  %v1525_v12 = vsel %vm43_vm2, %v4374_v7, 0.0  ;;  %v1500_v47 = vadd.f32 %v1499_v60, %v1498_v2 }
 0x174   :  { %v1526_v16 = vadd.f32 %v1525_v12, %v1524_v10  ;;  %v1488_v57 = vrot.slane %v1487_v1, 4 }
 0x175   :  { %v1514_v14 = vrot.slane %v1513_v59, 4  ;;  %v1501_v15 = vrot.slane %v1500_v47, 4 }
 0x176   :  { %v1527_v63 = vrot.slane %v1526_v16, 4  ;;  %v1489_v26 = vadd.f32 %v1488_v57, %v1487_v1 }
 0x177   :  { %v1515_v38 = vadd.f32 %v1514_v14, %v1513_v59  ;;  %v1502_v24 = vadd.f32 %v1501_v15, %v1500_v47 }
 0x178   :  { %v1528_v34 = vadd.f32 %v1527_v63, %v1526_v16  ;;  %v1490_v20 = vrot.slane %v1489_v26, 2 }
 0x179   :  { %v1516_v18 = vrot.slane %v1515_v38, 2  ;;  %v1503_v30 = vrot.slane %v1502_v24, 2 }
 0x17a   :  { %v1529_v31 = vrot.slane %v1528_v34, 2  ;;  %v1491_v33 = vadd.f32 %v1490_v20, %v1489_v26 }
 0x17b   :  { %v1517_v37 = vadd.f32 %v1516_v18, %v1515_v38  ;;  %v1504_v23 = vadd.f32 %v1503_v30, %v1502_v24 }
 0x17c   :  { %v1530_v45 = vadd.f32 %v1529_v31, %v1528_v34  ;;  %v1492_v48 = vrot.slane %v1491_v33, 1 }
 0x17d   :  { %v1518_v50 = vrot.slane %v1517_v37, 1  ;;  %v1505_v58 = vrot.slane %v1504_v23, 1 }
 0x17e   :  { %v1531_v61 = vrot.slane %v1530_v45, 1  ;;  %v1493_v3 = vadd.f32 %v1492_v48, %v1491_v33 }
 0x17f   :  { %v1519_v28 = vadd.f32 %v1518_v50, %v1517_v37  ;;  %v1506_v41 = vadd.f32 %v1505_v58, %v1504_v23 }
 0x180   :  { %v1598_v2 = vmul.f32 0.020408163, %v1493_v3  ;;  %v1532_v54 = vadd.f32 %v1531_v61, %v1530_v45 }
 0x181   :  { %v1600_v10 = vmul.f32 0.020408163, %v1519_v28 }
 0x182   :  { %v4381_v1 = vsub.f32 %v4307_v4, %v1598_v2  ;;  %v4384_v59 = vsub.f32 %v4315_v13, %v1598_v2  ;;  %v4387_v60 = vsub.f32 %v4331_v8, %v1598_v2  ;;  %v4390_v12 = vsub.f32 %v4343_v32, %v1598_v2 }
 0x183   :  { %v4392_v47 = vsub.f32 %v1043_v17, %v1598_v2  ;;  %v4394_v16 = vsub.f32 %v1049_v62, %v1598_v2  ;;  %v4396_v57 = vsub.f32 %v1055_v55, %v1598_v2  ;;  %v4399_v14 = vsub.f32 %v4309_v39, %v1600_v10 }
 0x184   :  { %5133 = vst [vmem:[#allocation7_spill] sm:$0xff] %v4384_v59  ;;  %5134 = vst [vmem:[#allocation8_spill] sm:$0xff] %v4387_v60  ;;  %v1670_v4 = vmul.f32 %v4381_v1, %v4381_v1  ;;  %v1679_v13 = vmul.f32 %v4384_v59, %v4384_v59  ;;  %v1688_v8 = vmul.f32 %v4387_v60, %v4387_v60  ;;  %v1599_v17 = vmul.f32 0.020408163, %v1506_v41 }
 0x185   :  { %5135 = vst [vmem:[#allocation9_spill] sm:$0xff] %v4390_v12  ;;  %5136 = vst [vmem:[#allocation10_spill] sm:$0xff] %v4392_v47  ;;  %v4408_v32 = vsub.f32 %v4317_v52, %v1600_v10  ;;  %v4411_v55 = vsub.f32 %v4333_v19, %v1600_v10  ;;  %v4414_v39 = vsub.f32 %v4345_v0, %v1600_v10  ;;  %v1601_v52 = vmul.f32 0.020408163, %v1532_v54 }
 0x186   :  { %5137 = vst [vmem:[#allocation11_spill] sm:$0xff] %v4394_v16  ;;  %5138 = vst [vmem:[#allocation12_spill] sm:$0xff] %v4396_v57  ;;  %v1733_v62 = vadd.f32 %v1679_v13, %v1670_v4  ;;  %v4417_v15 = vsub.f32 %v4355_v46, %v1600_v10  ;;  %v4419_v63 = vsub.f32 %v1156_v9, %v1600_v10 }
 0x187   :  { %5139 = vst [vmem:[#allocation13_spill] sm:$0xff] %v4399_v14  ;;  %5140 = vst [vmem:[#allocation14_spill] sm:$0xff] %v4408_v32  ;;  %v4421_v26 = vsub.f32 %v1162_v44, %v1600_v10  ;;  %v1672_v38 = vmul.f32 %v4399_v14, %v4399_v14  ;;  %v1697_v24 = vmul.f32 %v4390_v12, %v4390_v12 }
 0x188   :  { %5141 = vst [vmem:[#allocation15_spill] sm:$0xff] %v4411_v55  ;;  %5142 = vst [vmem:[#allocation16_spill] sm:$0xff] %v4414_v39  ;;  %v1706_v19 = vmul.f32 %v4392_v47, %v4392_v47  ;;  %v1734_v34 = vadd.f32 %v1733_v62, %v1688_v8  ;;  %v1681_v0 = vmul.f32 %v4408_v32, %v4408_v32 }
 0x189   :  { %5143 = vst [vmem:[#allocation17_spill] sm:$0xff] %v4417_v15  ;;  %5144 = vst [vmem:[#allocation18_spill] sm:$0xff] %v4419_v63  ;;  %v1715_v46 = vmul.f32 %v4394_v16, %v4394_v16  ;;  %v1724_v9 = vmul.f32 %v4396_v57, %v4396_v57  ;;  %v1690_v44 = vmul.f32 %v4411_v55, %v4411_v55 }
 0x18a   :  { %5145 = vst [vmem:[#allocation19_spill] sm:$0xff] %v4421_v26  ;;  %v4438_v20 = vsub.f32 %v4311_v11, %v1599_v17  ;;  %v1735_v18 = vadd.f32 %v1734_v34, %v1697_v24  ;;  %v1759_v30 = vadd.f32 %v1681_v0, %v1672_v38  ;;  %v4441_v31 = vsub.f32 %v4321_v35, %v1599_v17 }
 0x18b   :  { %v4444_v33 = vsub.f32 %v4336_v25, %v1599_v17  ;;  %v1699_v37 = vmul.f32 %v4414_v39, %v4414_v39  ;;  %v4449_v23 = vsub.f32 %v4348_v36, %v1599_v17  ;;  %v4452_v45 = vsub.f32 %v4358_v6, %v1599_v17 }
 0x18c   :  { %5146 = vst [vmem:[#allocation20_spill] sm:$0xff] %v4441_v31  ;;  %v4455_v11 = vsub.f32 %v4364_v22, %v1599_v17  ;;  %v1736_v48 = vadd.f32 %v1735_v18, %v1706_v19  ;;  %v1760_v50 = vadd.f32 %v1759_v30, %v1690_v44  ;;  %v4458_v35 = vsub.f32 %v4372_v56, %v1599_v17 }
 0x18d   :  { %5147 = vst [vmem:[#allocation21_spill] sm:$0xff] %v4444_v33  ;;  %5148 = vst [vmem:[#allocation22_spill] sm:$0xff] %v4449_v23  ;;  %v1671_v25 = vmul.f32 %v4438_v20, %v4438_v20  ;;  %v1738_v58 = vsel %vm43_vm2, %v1724_v9, 0.0  ;;  %v1708_v36 = vmul.f32 %v4417_v15, %v4417_v15  ;;  %v1717_v6 = vmul.f32 %v4419_v63, %v4419_v63 }
 0x18e   :  { %5149 = vst [vmem:[#allocation23_spill] sm:$0xff] %v4452_v45  ;;  %5150 = vst [vmem:[#allocation24_spill] sm:$0xff] %v4455_v11  ;;  %v1680_v22 = vmul.f32 %v4441_v31, %v4441_v31  ;;  %v1737_v61 = vadd.f32 %v1736_v48, %v1715_v46  ;;  %v1726_v3 = vmul.f32 %v4421_v26, %v4421_v26 }
 0x18f   :  { %5151 = vst [vmem:[#allocation25_spill] sm:$0xff] %v4458_v35  ;;  %v1761_v56 = vadd.f32 %v1760_v50, %v1699_v37  ;;  %v1689_v28 = vmul.f32 %v4444_v33, %v4444_v33  ;;  %v4474_v10 = vsub.f32 %v4313_v42, %v1601_v52  ;;  %v4477_v41 = vsub.f32 %v4325_v5, %v1601_v52 }
 0x190   :  { %v1746_v2 = vadd.f32 %v1680_v22, %v1671_v25  ;;  %v4480_v54 = vsub.f32 %v4339_v27, %v1601_v52  ;;  %v1739_v4 = vadd.f32 %v1738_v58, %v1737_v61  ;;  %v1698_v8 = vmul.f32 %v4449_v23, %v4449_v23 }
 0x191   :  { %5152 = vst [vmem:[#allocation26_spill] sm:$0xff] %v4474_v10  ;;  %5153 = vst [vmem:[#allocation27_spill] sm:$0xff] %v4477_v41  ;;  %v1762_v13 = vadd.f32 %v1761_v56, %v1708_v36  ;;  %v4485_v17 = vsub.f32 %v4351_v40, %v1601_v52  ;;  %v4488_v38 = vsub.f32 %v4360_v53, %v1601_v52  ;;  %v1764_v40 = vsel %vm43_vm2, %v1726_v3, 0.0 }
 0x192   :  { %5154 = vst [vmem:[#allocation28_spill] sm:$0xff] %v4480_v54  ;;  %v1747_v62 = vadd.f32 %v1746_v2, %v1689_v28  ;;  %v4491_v42 = vsub.f32 %v4366_v29, %v1601_v52  ;;  %v4494_v5 = vsub.f32 %v4374_v7, %v1601_v52  ;;  %v1740_v27 = vrot.slane %v1739_v4, 4 }
 0x193   :  { %5155 = vst [vmem:[#allocation29_spill] sm:$0xff] %v4485_v17  ;;  %5156 = vst [vmem:[#allocation30_spill] sm:$0xff] %v4488_v38  ;;  %v1763_v24 = vadd.f32 %v1762_v13, %v1717_v6  ;;  %v1673_v19 = vmul.f32 %v4474_v10, %v4474_v10  ;;  %v1682_v34 = vmul.f32 %v4477_v41, %v4477_v41 }
 0x194   :  { %5157 = vst [vmem:[#allocation31_spill] sm:$0xff] %v4491_v42  ;;  %5158 = vst [vmem:[#allocation32_spill] sm:$0xff] %v4494_v5  ;;  %v1707_v53 = vmul.f32 %v4452_v45, %v4452_v45  ;;  %v1748_v0 = vadd.f32 %v1747_v62, %v1698_v8  ;;  %v1741_v46 = vadd.f32 %v1740_v27, %v1739_v4 }
 0x195   :  { %v1765_v29 = vadd.f32 %v1764_v40, %v1763_v24  ;;  %v1725_v7 = vmul.f32 %v4458_v35, %v4458_v35  ;;  %v1716_v52 = vmul.f32 %v4455_v11, %v4455_v11  ;;  %v1691_v44 = vmul.f32 %v4480_v54, %v4480_v54 }
 0x196   :  { %v1749_v9 = vadd.f32 %v1748_v0, %v1707_v53  ;;  %v1772_v18 = vadd.f32 %v1682_v34, %v1673_v19  ;;  %v1742_v30 = vrot.slane %v1741_v46, 2  ;;  %v1700_v50 = vmul.f32 %v4485_v17, %v4485_v17 }
 0x197   :  { %v1766_v37 = vrot.slane %v1765_v29, 4  ;;  %v1751_v6 = vsel %vm43_vm2, %v1725_v7, 0.0  ;;  %v1709_v61 = vmul.f32 %v4488_v38, %v4488_v38  ;;  %v1727_v2 = vmul.f32 %v4494_v5, %v4494_v5 }
 0x198   :  { %v1750_v48 = vadd.f32 %v1749_v9, %v1716_v52  ;;  %v1773_v25 = vadd.f32 %v1772_v18, %v1691_v44  ;;  %v1743_v58 = vadd.f32 %v1742_v30, %v1741_v46  ;;  %v1718_v13 = vmul.f32 %v4491_v42, %v4491_v42 }
 0x199   :  { %v1767_v36 = vadd.f32 %v1766_v37, %v1765_v29  ;;  %v1777_v34 = vsel %vm43_vm2, %v1727_v2, 0.0 }
 0x19a   :  { %v1752_v22 = vadd.f32 %v1751_v6, %v1750_v48  ;;  %v1774_v3 = vadd.f32 %v1773_v25, %v1700_v50  ;;  %v1744_v56 = vrot.slane %v1743_v58, 1 }
 0x19b   :  { %v1768_v28 = vrot.slane %v1767_v36, 2 }
 0x19c   :  { %v1753_v4 = vrot.slane %v1752_v22, 4  ;;  %v1775_v8 = vadd.f32 %v1774_v3, %v1709_v61  ;;  %v1745_v27 = vadd.f32 %v1744_v56, %v1743_v58 }
 0x19d   :  { %v1769_v62 = vadd.f32 %v1768_v28, %v1767_v36 }
 0x19e   :  { %v1754_v24 = vadd.f32 %v1753_v4, %v1752_v22  ;;  %v1776_v19 = vadd.f32 %v1775_v8, %v1718_v13  ;;  %v1850_v46 = vmul.f32 0.020408163, %v1745_v27 }
 0x19f   :  { %v1770_v40 = vrot.slane %v1769_v62, 1 }
 0x1a0   :  { %v1755_v53 = vrot.slane %v1754_v24, 2  ;;  %v1778_v0 = vadd.f32 %v1777_v34, %v1776_v19  ;;  %v1861_v18 = vadd.f32 1e-05, %v1850_v46 }
 0x1a1   :  { %v1771_v52 = vadd.f32 %v1770_v40, %v1769_v62 }
 0x1a2   :  { %v1756_v29 = vadd.f32 %v1755_v53, %v1754_v24  ;;  %v1779_v7 = vrot.slane %v1778_v0, 4  ;;  %2820 = vrsqrt.f32 %v1861_v18 }
 0x1a3   :  { %v1852_v48 = vmul.f32 0.020408163, %v1771_v52 }
 0x1a4   :  { %v1757_v9 = vrot.slane %v1756_v29, 1  ;;  %v1780_v44 = vadd.f32 %v1779_v7, %v1778_v0 }
 0x1a5   :  { %v1863_v6 = vadd.f32 1e-05, %v1852_v48 }
 0x1a6   :  { %v1758_v30 = vadd.f32 %v1757_v9, %v1756_v29  ;;  %v1781_v37 = vrot.slane %v1780_v44, 2 }
 0x1a8   :  { %v1851_v50 = vmul.f32 0.020408163, %v1758_v30  ;;  %v1782_v25 = vadd.f32 %v1781_v37, %v1780_v44 }
 0x1aa   :  { %v1862_v58 = vadd.f32 1e-05, %v1851_v50  ;;  %v1783_v36 = vrot.slane %v1782_v25, 1 }
 0x1ac   :  { %2822 = vrsqrt.f32 %v1862_v58  ;;  %v1784_v22 = vadd.f32 %v1783_v36, %v1782_v25  ;;  %v2821_v56 = vpop.eup %2820 }
 0x1ad   :  { %2824 = vrsqrt.f32 %v1863_v6 }
 0x1ae   :  { %v1853_v61 = vmul.f32 0.020408163, %v1784_v22 }
 0x1b0   :  { %v1864_v3 = vadd.f32 1e-05, %v1853_v61 }
 0x1b2   :  { %2826 = vrsqrt.f32 %v1864_v3 }
 0x1b6   :  { %v2823_v28 = vpop.eup %2822 }
 0x1b7   :  { %v1888_v2 = vcombine.low %v2821_v56, %v2823_v28  ;;  %v2825_v4 = vpop.eup %2824 }
 0x1b9   :  { %v4520_v8 = vrot.slane %v1888_v2, %v3512_v21 }
 0x1bc   :  { %v2827_v13 = vpop.eup %2826 }
 0x1bd   :  { %v1889_v62 = vcombine.low %v2825_v4, %v2827_v13 }
 0x1bf   :  { %v4523_v27 = vrot.slane %v1889_v62, %v3512_v21 }
 0x1d8   :  { %v4527_v19 = vpop.f32.mrb[14].mxu0 }
 0x1d9   :  { %v4529_v34 = vpop.f32.mrb[14].mxu1  ;;  %v4531_v40 = vpop.f32.mrb[15].mxu0 }
 0x1da   :  { %v4533_v53 = vpop.f32.mrb[15].mxu1 }
 0x1dc   :  { %v4535_v0 = vpop.f32.mrb[16].mxu0 }
 0x1dd   :  { %v4537_v46 = vpop.f32.mrb[16].mxu1  ;;  %v1533_v29 = vadd.f32 %v4535_v0, %v4527_v19  ;;  %v4541_v7 = vpop.f32.mrb[17].mxu0 }
 0x1de   :  { %v1559_v52 = vadd.f32 %v4537_v46, %v4529_v34  ;;  %v4545_v9 = vpop.f32.mrb[17].mxu1  ;;  %v1546_v44 = vadd.f32 %v4541_v7, %v4531_v40 }
 0x1df   :  { %v1572_v18 = vadd.f32 %v4545_v9, %v4533_v53 }
 0x1e0   :  { %v4551_v30 = vpop.f32.mrb[18].mxu0 }
 0x1e1   :  { %v4553_v37 = vpop.f32.mrb[18].mxu1  ;;  %v1534_v48 = vadd.f32 %v1533_v29, %v4551_v30  ;;  %v4556_v50 = vpop.f32.mrb[19].mxu0 }
 0x1e2   :  { %v1560_v25 = vadd.f32 %v1559_v52, %v4553_v37  ;;  %v4559_v58 = vpop.f32.mrb[19].mxu1  ;;  %v1547_v36 = vadd.f32 %v1546_v44, %v4556_v50 }
 0x1e3   :  { %v1573_v6 = vadd.f32 %v1572_v18, %v4559_v58 }
 0x1e4   :  { %v4563_v22 = vpop.f32.mrb[20].mxu0 }
 0x1e5   :  { %v4565_v61 = vpop.f32.mrb[20].mxu1  ;;  %v1535_v3 = vadd.f32 %v1534_v48, %v4563_v22  ;;  %v4568_v56 = vpop.f32.mrb[21].mxu0 }
 0x1e6   :  { %v1561_v28 = vadd.f32 %v1560_v25, %v4565_v61  ;;  %v4571_v2 = vpop.f32.mrb[21].mxu1  ;;  %v1548_v4 = vadd.f32 %v1547_v36, %v4568_v56 }
 0x1e7   :  { %v1574_v13 = vadd.f32 %v1573_v6, %v4571_v2 }
 0x1e8   :  { %v1257_v62 = vpop.f32.mrb[22].mxu0 }
 0x1e9   :  { %v4575_v29 = vpop.f32.mrb[22].mxu1  ;;  %v1536_v52 = vadd.f32 %v1535_v3, %v1257_v62  ;;  %v4578_v18 = vpop.f32.mrb[23].mxu0 }
 0x1ea   :  { %v1562_v44 = vadd.f32 %v1561_v28, %v4575_v29  ;;  %v4580_v24 = vpop.f32.mrb[23].mxu1  ;;  %v1549_v48 = vadd.f32 %v1548_v4, %v4578_v18 }
 0x1eb   :  { %v1575_v25 = vadd.f32 %v1574_v13, %v4580_v24 }
 0x1ec   :  { %v1263_v5 = vpop.f32.mrb[24].mxu0 }
 0x1ed   :  { %v1370_v26 = vpop.f32.mrb[24].mxu1  ;;  %v1537_v35 = vadd.f32 %v1536_v52, %v1263_v5  ;;  %v4584_v57 = vpop.f32.mrb[25].mxu0 }
 0x1ee   :  { %v1563_v36 = vadd.f32 %v1562_v44, %v1370_v26  ;;  %v4586_v6 = vpop.f32.mrb[25].mxu1  ;;  %v1550_v3 = vadd.f32 %v1549_v48, %v4584_v57 }
 0x1ef   :  { %v1576_v28 = vadd.f32 %v1575_v25, %v4586_v6 }
 0x1f0   :  { %v1269_v42 = vpop.f32.mrb[26].mxu0 }
 0x1f1   :  { %v1376_v63 = vpop.f32.mrb[26].mxu1  ;;  %v1538_v11 = vsel %vm43_vm2, %v1269_v42, 0.0  ;;  %v4592_v16 = vpop.f32.mrb[27].mxu0 }
 0x1f2   :  { %v1564_v4 = vsel %vm43_vm2, %v1376_v63, 0.0  ;;  %v4594_v13 = vpop.f32.mrb[27].mxu1  ;;  %v1539_v52 = vadd.f32 %v1538_v11, %v1537_v35  ;;  %v1551_v38 = vsel %vm43_vm2, %v4592_v16, 0.0 }
 0x1f3   :  { %v1565_v44 = vadd.f32 %v1564_v4, %v1563_v36  ;;  %v1577_v48 = vsel %vm43_vm2, %v4594_v13, 0.0  ;;  %v1552_v15 = vadd.f32 %v1551_v38, %v1550_v3 }
 0x1f4   :  { %v1578_v25 = vadd.f32 %v1577_v48, %v1576_v28  ;;  %v1540_v45 = vrot.slane %v1539_v52, 4 }
 0x1f5   :  { %v1566_v47 = vrot.slane %v1565_v44, 4  ;;  %v1553_v17 = vrot.slane %v1552_v15, 4 }
 0x1f6   :  { %v1579_v39 = vrot.slane %v1578_v25, 4  ;;  %v1541_v23 = vadd.f32 %v1540_v45, %v1539_v52 }
 0x1f7   :  { %v1567_v12 = vadd.f32 %v1566_v47, %v1565_v44  ;;  %v1554_v54 = vadd.f32 %v1553_v17, %v1552_v15 }
 0x1f8   :  { %v1580_v55 = vadd.f32 %v1579_v39, %v1578_v25  ;;  %v1542_v33 = vrot.slane %v1541_v23, 2 }
 0x1f9   :  { %v1568_v60 = vrot.slane %v1567_v12, 2  ;;  %v1555_v11 = vrot.slane %v1554_v54, 2 }
 0x1fa   :  { %v1581_v35 = vrot.slane %v1580_v55, 2  ;;  %v1543_v36 = vadd.f32 %v1542_v33, %v1541_v23 }
 0x1fb   :  { %v1569_v4 = vadd.f32 %v1568_v60, %v1567_v12  ;;  %v1556_v41 = vadd.f32 %v1555_v11, %v1554_v54 }
 0x1fc   :  { %v1582_v32 = vadd.f32 %v1581_v35, %v1580_v55  ;;  %v1544_v31 = vrot.slane %v1543_v36, 1 }
 0x1fd   :  { %v1570_v59 = vrot.slane %v1569_v4, 1  ;;  %v1557_v38 = vrot.slane %v1556_v41, 1 }
 0x1fe   :  { %v1583_v3 = vrot.slane %v1582_v32, 1  ;;  %v1545_v28 = vadd.f32 %v1544_v31, %v1543_v36 }
 0x1ff   :  { %v1571_v48 = vadd.f32 %v1570_v59, %v1569_v4  ;;  %v1558_v45 = vadd.f32 %v1557_v38, %v1556_v41 }
 0x200   :  { %v1602_v10 = vmul.f32 0.020408163, %v1545_v28  ;;  %v1584_v47 = vadd.f32 %v1583_v3, %v1582_v32 }
 0x201   :  { %v1604_v14 = vmul.f32 0.020408163, %v1571_v48  ;;  %v1603_v17 = vmul.f32 0.020408163, %v1558_v45 }
 0x202   :  { %v4601_v39 = vsub.f32 %v4527_v19, %v1602_v10  ;;  %v4604_v15 = vsub.f32 %v4535_v0, %v1602_v10  ;;  %v4607_v60 = vsub.f32 %v4551_v30, %v1602_v10  ;;  %v4610_v12 = vsub.f32 %v4563_v22, %v1602_v10 }
 0x203   :  { %v4612_v55 = vsub.f32 %v1257_v62, %v1602_v10  ;;  %v4614_v31 = vsub.f32 %v1263_v5, %v1602_v10  ;;  %v4616_v59 = vsub.f32 %v1269_v42, %v1602_v10  ;;  %v4619_v32 = vsub.f32 %v4529_v34, %v1604_v14 }
 0x204   :  { %v1674_v33 = vmul.f32 %v4601_v39, %v4601_v39  ;;  %v1683_v23 = vmul.f32 %v4604_v15, %v4604_v15  ;;  %v1692_v41 = vmul.f32 %v4607_v60, %v4607_v60  ;;  %v4628_v54 = vsub.f32 %v4537_v46, %v1604_v14 }
 0x205   :  { %5159 = vst [vmem:[#allocation33_spill] sm:$0xff] %v4616_v59  ;;  %v4631_v10 = vsub.f32 %v4553_v37, %v1604_v14  ;;  %v4634_v42 = vsub.f32 %v4565_v61, %v1604_v14  ;;  %v4637_v19 = vsub.f32 %v4575_v29, %v1604_v14  ;;  %v4639_v34 = vsub.f32 %v1370_v26, %v1604_v14 }
 0x206   :  { %v1785_v5 = vadd.f32 %v1683_v23, %v1674_v33  ;;  %v4641_v0 = vsub.f32 %v1376_v63, %v1604_v14  ;;  %v1676_v30 = vmul.f32 %v4619_v32, %v4619_v32  ;;  %v1605_v46 = vmul.f32 0.020408163, %v1584_v47 }
 0x207   :  { %v1701_v22 = vmul.f32 %v4610_v12, %v4610_v12  ;;  %v1710_v37 = vmul.f32 %v4612_v55, %v4612_v55  ;;  %v1685_v61 = vmul.f32 %v4628_v54, %v4628_v54  ;;  %v1719_v26 = vmul.f32 %v4614_v31, %v4614_v31 }
 0x208   :  { %5160 = vst [vmem:[#allocation34_spill] sm:$0xff] %v4641_v0  ;;  %v1786_v62 = vadd.f32 %v1785_v5, %v1692_v41  ;;  %v1728_v14 = vmul.f32 %v4616_v59, %v4616_v59  ;;  %v1694_v63 = vmul.f32 %v4631_v10, %v4631_v10  ;;  %v4658_v29 = vsub.f32 %v4531_v40, %v1603_v17 }
 0x209   :  { %v1811_v44 = vadd.f32 %v1685_v61, %v1676_v30  ;;  %v4661_v25 = vsub.f32 %v4541_v7, %v1603_v17  ;;  %v4664_v11 = vsub.f32 %v4556_v50, %v1603_v17  ;;  %v1703_v35 = vmul.f32 %v4634_v42, %v4634_v42 }
 0x20a   :  { %v1787_v52 = vadd.f32 %v1786_v62, %v1701_v22  ;;  %v4669_v36 = vsub.f32 %v4568_v56, %v1603_v17  ;;  %v4672_v4 = vsub.f32 %v4578_v18, %v1603_v17  ;;  %v4675_v40 = vsub.f32 %v4584_v57, %v1603_v17 }
 0x20b   :  { %v1812_v3 = vadd.f32 %v1811_v44, %v1694_v63  ;;  %v4678_v7 = vsub.f32 %v4592_v16, %v1603_v17  ;;  %v1675_v50 = vmul.f32 %v4658_v29, %v4658_v29  ;;  %v1790_v28 = vsel %vm43_vm2, %v1728_v14, 0.0 }
 0x20c   :  { %v1788_v38 = vadd.f32 %v1787_v52, %v1710_v37  ;;  %v1712_v56 = vmul.f32 %v4637_v19, %v4637_v19  ;;  %v1721_v18 = vmul.f32 %v4639_v34, %v4639_v34  ;;  %v1684_v57 = vmul.f32 %v4661_v25, %v4661_v25 }
 0x20d   :  { %5161 = vst [vmem:[#allocation35_spill] sm:$0xff] %v4678_v7  ;;  %v1730_v45 = vmul.f32 %v4641_v0, %v4641_v0  ;;  %v1813_v16 = vadd.f32 %v1812_v3, %v1703_v35  ;;  %v1693_v47 = vmul.f32 %v4664_v11, %v4664_v11  ;;  %v4694_v23 = vsub.f32 %v4533_v53, %v1605_v46 }
 0x20e   :  { %v1789_v48 = vadd.f32 %v1788_v38, %v1719_v26  ;;  %v1798_v33 = vadd.f32 %v1684_v57, %v1675_v50  ;;  %v4697_v41 = vsub.f32 %v4545_v9, %v1605_v46  ;;  %v4700_v17 = vsub.f32 %v4559_v58, %v1605_v46 }
 0x20f   :  { %v1814_v30 = vadd.f32 %v1813_v16, %v1712_v56  ;;  %v1702_v22 = vmul.f32 %v4669_v36, %v4669_v36  ;;  %v4705_v37 = vsub.f32 %v4571_v2, %v1605_v46  ;;  %v4708_v61 = vsub.f32 %v4580_v24, %v1605_v46 }
 0x210   :  { %v1791_v5 = vadd.f32 %v1790_v28, %v1789_v48  ;;  %v1799_v62 = vadd.f32 %v1798_v33, %v1693_v47  ;;  %v4711_v53 = vsub.f32 %v4586_v6, %v1605_v46  ;;  %v4714_v9 = vsub.f32 %v4594_v13, %v1605_v46 }
 0x211   :  { %v1815_v26 = vadd.f32 %v1814_v30, %v1721_v18  ;;  %v1677_v14 = vmul.f32 %v4694_v23, %v4694_v23  ;;  %v1686_v63 = vmul.f32 %v4697_v41, %v4697_v41  ;;  %v1816_v2 = vsel %vm43_vm2, %v1730_v45, 0.0 }
 0x212   :  { %5162 = vst [vmem:[#allocation36_spill] sm:$0xff] %v4714_v9  ;;  %v1792_v58 = vrot.slane %v1791_v5, 4  ;;  %v1711_v24 = vmul.f32 %v4672_v4, %v4672_v4  ;;  %v1800_v52 = vadd.f32 %v1799_v62, %v1702_v22  ;;  %v1729_v13 = vmul.f32 %v4678_v7, %v4678_v7 }
 0x213   :  { %v1817_v6 = vadd.f32 %v1816_v2, %v1815_v26  ;;  %v1720_v46 = vmul.f32 %v4675_v40, %v4675_v40  ;;  %v1695_v38 = vmul.f32 %v4700_v17, %v4700_v17  ;;  %v1824_v3 = vadd.f32 %v1686_v63, %v1677_v14 }
 0x214   :  { %v1793_v44 = vadd.f32 %v1792_v58, %v1791_v5  ;;  %v1801_v35 = vadd.f32 %v1800_v52, %v1711_v24  ;;  %v1704_v18 = vmul.f32 %v4705_v37, %v4705_v37  ;;  %v1803_v16 = vsel %vm43_vm2, %v1729_v13, 0.0 }
 0x215   :  { %v1818_v28 = vrot.slane %v1817_v6, 4  ;;  %v1825_v57 = vadd.f32 %v1824_v3, %v1695_v38  ;;  %v1713_v5 = vmul.f32 %v4708_v61, %v4708_v61  ;;  %v1731_v26 = vmul.f32 %v4714_v9, %v4714_v9 }
 0x216   :  { %v1794_v50 = vrot.slane %v1793_v44, 2  ;;  %v1802_v56 = vadd.f32 %v1801_v35, %v1720_v46  ;;  %v1722_v2 = vmul.f32 %v4711_v53, %v4711_v53 }
 0x217   :  { %v1819_v45 = vadd.f32 %v1818_v28, %v1817_v6  ;;  %v1826_v30 = vadd.f32 %v1825_v57, %v1704_v18 }
 0x218   :  { %v1795_v48 = vadd.f32 %v1794_v50, %v1793_v44  ;;  %v4732_v47 = vpop.f32.mrb[28].mxu0  ;;  %v1804_v33 = vadd.f32 %v1803_v16, %v1802_v56  ;;  %v1829_v50 = vsel %vm43_vm2, %v1731_v26, 0.0 }
 0x219   :  { %v1449_v22 = vpop.f32.mrb[29].mxu0  ;;  %v1820_v58 = vrot.slane %v1819_v45, 2  ;;  %v1827_v24 = vadd.f32 %v1826_v30, %v1713_v5 }
 0x21a   :  { %v1796_v62 = vrot.slane %v1795_v48, 1  ;;  %v4738_v14 = vpop.f32.mrb[28].mxu1  ;;  %v1805_v63 = vrot.slane %v1804_v33, 4 }
 0x21b   :  { %v1469_v52 = vpop.f32.mrb[29].mxu1  ;;  %v1821_v44 = vadd.f32 %v1820_v58, %v1819_v45  ;;  %v1828_v35 = vadd.f32 %v1827_v24, %v1722_v2 }
 0x21c   :  { %v1452_v6 = vpop.f32.mrb[30].mxu0  ;;  %v1797_v13 = vadd.f32 %v1796_v62, %v1795_v48  ;;  %v1806_v46 = vadd.f32 %v1805_v63, %v1804_v33 }
 0x21d   :  { %v1585_v38 = vadd.f32 %v1452_v6, %v4732_v47  ;;  %v1454_v3 = vpop.f32.mrb[31].mxu0  ;;  %v1822_v56 = vrot.slane %v1821_v44, 1  ;;  %v1830_v57 = vadd.f32 %v1829_v50, %v1828_v35 }
 0x21e   :  { %v1472_v28 = vpop.f32.mrb[30].mxu1  ;;  %v1807_v18 = vrot.slane %v1806_v46, 2  ;;  %v1854_v9 = vmul.f32 0.020408163, %v1797_v13 }
 0x21f   :  { %v1474_v16 = vpop.f32.mrb[31].mxu1  ;;  %v1831_v5 = vrot.slane %v1830_v57, 4  ;;  %v1823_v48 = vadd.f32 %v1822_v56, %v1821_v44 }
 0x220   :  { %v1457_v22 = vpop.f32.mrb[32].mxu0  ;;  %v1808_v0 = vadd.f32 %v1807_v18, %v1806_v46  ;;  %v1865_v24 = vadd.f32 1e-05, %v1854_v9 }
 0x221   :  { %v1586_v30 = vadd.f32 %v1585_v38, %v1457_v22  ;;  %v1459_v45 = vpop.f32.mrb[33].mxu0  ;;  %v1832_v62 = vadd.f32 %v1831_v5, %v1830_v57  ;;  %v1856_v59 = vmul.f32 0.020408163, %v1823_v48 }
 0x222   :  { %v1477_v58 = vpop.f32.mrb[32].mxu1  ;;  %v1809_v33 = vrot.slane %v1808_v0, 1  ;;  %2828 = vrsqrt.f32 %v1865_v24 }
 0x223   :  { %v1479_v63 = vpop.f32.mrb[33].mxu1  ;;  %v1833_v26 = vrot.slane %v1832_v62, 2  ;;  %v1590_v46 = vsel %vm43_vm2, %v1477_v58, 0.0  ;;  %v1867_v56 = vadd.f32 1e-05, %v1856_v59 }
 0x224   :  { %v1462_v2 = vpop.f32.mrb[34].mxu0  ;;  %v1810_v52 = vadd.f32 %v1809_v33, %v1808_v0 }
 0x225   :  { %v1587_v3 = vadd.f32 %v1586_v30, %v1462_v2  ;;  %v1464_v7 = vpop.f32.mrb[35].mxu0  ;;  %v1834_v50 = vadd.f32 %v1833_v26, %v1832_v62 }
 0x226   :  { %v1855_v35 = vmul.f32 0.020408163, %v1810_v52 }
 0x227   :  { %v1588_v13 = vadd.f32 %v1587_v3, %v4738_v14  ;;  %v1835_v18 = vrot.slane %v1834_v50, 1 }
 0x228   :  { %v1866_v38 = vadd.f32 1e-05, %v1855_v35 }
 0x229   :  { %v1589_v44 = vadd.f32 %v1588_v13, %v1472_v28  ;;  %v1836_v57 = vadd.f32 %v1835_v18, %v1834_v50 }
 0x22a   :  { %2830 = vrsqrt.f32 %v1866_v38 }
 0x22b   :  { %v1591_v16 = vadd.f32 %v1590_v46, %v1589_v44  ;;  %v1857_v9 = vmul.f32 0.020408163, %v1836_v57  ;;  %2832 = vrsqrt.f32 %v1867_v56 }
 0x22c   :  { %v2829_v45 = vpop.eup %2828 }
 0x22d   :  { %v1592_v0 = vrot.slane %v1591_v16, 4  ;;  %v1868_v5 = vadd.f32 1e-05, %v1857_v9 }
 0x22f   :  { %v1593_v7 = vadd.f32 %v1592_v0, %v1591_v16  ;;  %2834 = vrsqrt.f32 %v1868_v5 }
 0x231   :  { %v1594_v30 = vrot.slane %v1593_v7, 2 }
 0x233   :  { %v1595_v48 = vadd.f32 %v1594_v30, %v1593_v7  ;;  %v1967_v7 = vsub.s32 2, %v3509_v51  ;;  %v1971_v30 = vsub.s32 3, %v3509_v51 }
 0x234   :  { %v2831_v33 = vpop.eup %2830 }
 0x235   :  { %v1596_v62 = vrot.slane %v1595_v48, 1  ;;  %v1890_v63 = vcombine.low %v2829_v45, %v2831_v33  ;;  %v2833_v52 = vpop.eup %2832  ;;  %v1975_v45 = vsub.s32 4, %v3509_v51 }
 0x237   :  { %v1597_v24 = vadd.f32 %v1596_v62, %v1595_v48  ;;  %v1912_v59 = vrot.slane %v1890_v63, %v3512_v21 }
 0x239   :  { %v1606_v26 = vmul.f32 0.020408163, %v1597_v24  ;;  %v2835_v3 = vpop.eup %2834  ;;  %v1983_v24 = vsub.s32 6, %v3509_v51 }
 0x23a   :  { %v1891_v38 = vcombine.low %v2833_v52, %v2835_v3  ;;  %v1987_v52 = vsub.s32 7, %v3509_v51 }
 0x23b   :  { %v4748_v35 = vsub.f32 %v4732_v47, %v1606_v26  ;;  %v4750_v50 = vsub.f32 %v1452_v6, %v1606_v26  ;;  %v4752_v13 = vsub.f32 %v1457_v22, %v1606_v26  ;;  %v4754_v46 = vsub.f32 %v1462_v2, %v1606_v26 }
 0x23c   :  { %v4757_v18 = vsub.f32 %v4738_v14, %v1606_v26  ;;  %v4759_v44 = vsub.f32 %v1472_v28, %v1606_v26  ;;  %v4761_v56 = vsub.f32 %v1477_v58, %v1606_v26  ;;  %v1919_v6 = vrot.slane %v1891_v38, %v3512_v21  ;;  %v2065_v58 = vld [vmem:[%s5087_s5] sm:$0xff] }
 0x23d   :  { %5163 = vst [vmem:[#allocation37_spill] sm:$0xff] %v4748_v35  ;;  %5164 = vst [vmem:[#allocation38_spill] sm:$0xff] %v4750_v50  ;;  %v1678_v57 = vmul.f32 %v4748_v35, %v4748_v35  ;;  %v1687_v47 = vmul.f32 %v4750_v50, %v4750_v50  ;;  %v1696_v22 = vmul.f32 %v4752_v13, %v4752_v13  ;;  %v5179_v50 = vld [vmem:[#allocation8_spill] sm:$0xff] }
 0x23e   :  { %5165 = vst [vmem:[#allocation39_spill] sm:$0xff] %v4752_v13  ;;  %5166 = vst [vmem:[#allocation40_spill] sm:$0xff] %v4754_v46  ;;  %v1921_v16 = vcombine.low %v1912_v59, %v1919_v6  ;;  %v5170_v14 = vcombine.low %v4520_v8, %v4523_v27  ;;  %v1705_v9 = vmul.f32 %v4754_v46, %v4754_v46  ;;  %v1859_v8 = vld [vmem:[%s5086_s4] sm:$0xff]  ;;  %v1979_v27 = vsub.s32 5, %v3509_v51 }
 0x23f   :  { %5167 = vst [vmem:[#allocation41_spill] sm:$0xff] %v4757_v18  ;;  %5168 = vst [vmem:[#allocation42_spill] sm:$0xff] %v4759_v44  ;;  %v1837_v2 = vadd.f32 %v1687_v47, %v1678_v57  ;;  %v1714_v48 = vmul.f32 %v4757_v18, %v4757_v18  ;;  %v1732_v33 = vmul.f32 %v4761_v56, %v4761_v56  ;;  %v5173_v18 = vld [vmem:[#allocation13_spill] sm:$0xff] }
 0x240   :  { %5169 = vst [vmem:[#allocation43_spill] sm:$0xff] %v4761_v56  ;;  %v1928_v28 = vrot.slane %v5170_v14, %v3512_v21  ;;  %v1935_v5 = vrot.slane %v1921_v16, %v3512_v21  ;;  %v4794_v26 = vrot.slane %v2065_v58, %v3554_v49  ;;  %v4797_v59 = vrot.slane %v2065_v58, %v3547_v43 }
 0x241   :  { %v1838_v0 = vadd.f32 %v1837_v2, %v1696_v22  ;;  %v4799_v3 = vrot.slane %v2065_v58, %v1967_v7  ;;  %v1723_v38 = vmul.f32 %v4759_v44, %v4759_v44  ;;  %v4803_v6 = vrot.slane %v2065_v58, %v1971_v30 }
 0x242   :  { %v1936_v63 = vcombine.low %v1928_v28, %v1935_v5  ;;  %v4805_v22 = vrot.slane %v2065_v58, %v1975_v45  ;;  %v4807_v2 = vrot.slane %v2065_v58, %v1979_v27  ;;  %v4809_v51 = vrot.slane %v2065_v58, %v1983_v24 }
 0x243   :  { %v1839_v62 = vadd.f32 %v1838_v0, %v1705_v9  ;;  %v4811_v16 = vrot.slane %v2065_v58, %v1987_v52  ;;  %v4816_v28 = vsel %vm43_vm2, %v1732_v33, 0.0 }
 0x244   :  { %v1953_v47 = vmul.f32 %v1936_v63, %v1859_v8  ;;  %5172 = vst [vmem:[#allocation45_spill] sm:$0xff] %v4816_v28 }
 0x245   :  { %v1840_v57 = vadd.f32 %v1839_v62, %v1714_v48 }
 0x246   :  { %v1960_v9 = vrot.slane %v1953_v47, %v3554_v49  ;;  %v1964_v0 = vrot.slane %v1953_v47, %v3547_v43  ;;  %v1968_v5 = vrot.slane %v1953_v47, %v1967_v7  ;;  %v1972_v8 = vrot.slane %v1953_v47, %v1971_v30  ;;  %v5175_v30 = vld [vmem:[#allocation7_spill] sm:$0xff] }
 0x247   :  { %v4813_v14 = vadd.f32 %v1840_v57, %v1723_v38  ;;  %v1976_v48 = vrot.slane %v1953_v47, %v1975_v45  ;;  %v1980_v62 = vrot.slane %v1953_v47, %v1979_v27  ;;  %v1984_v63 = vrot.slane %v1953_v47, %v1983_v24  ;;  %v5174_v57 = vld [vmem:[#allocation26_spill] sm:$0xff]  ;;  %v5176_v27 = vld [vmem:[#allocation20_spill] sm:$0xff] }
 0x248   :  { %v1988_v56 = vrot.slane %v1953_v47, %v1987_v52  ;;  %v2002_v44 = vmul.f32 %v1960_v9, %v4381_v1  ;;  %v2003_v58 = vmul.f32 %v1964_v0, %v4438_v20  ;;  %v2004_v38 = vmul.f32 %v1968_v5, %v5173_v18  ;;  %v5177_v52 = vld [vmem:[#allocation14_spill] sm:$0xff]  ;;  %v5178_v47 = vld [vmem:[#allocation27_spill] sm:$0xff] }
 0x249   :  { %5171 = vst [vmem:[#allocation44_spill] sm:$0xff] %v4813_v14  ;;  %v2005_v46 = vmul.f32 %v1972_v8, %v5174_v57  ;;  %v2006_v33 = vmul.f32 %v1976_v48, %v4601_v39  ;;  %v2007_v13 = vmul.f32 %v1980_v62, %v4658_v29  ;;  %v2008_v43 = vmul.f32 %v1984_v63, %v4619_v32 }
 0x24a   :  { %v2009_v7 = vmul.f32 %v1988_v56, %v4694_v23  ;;  %v2011_v45 = vmul.f32 %v1960_v9, %v5175_v30  ;;  %v2012_v24 = vmul.f32 %v1964_v0, %v5176_v27  ;;  %v2013_v1 = vmul.f32 %v1968_v5, %v5177_v52  ;;  %v5180_v23 = vld [vmem:[#allocation21_spill] sm:$0xff]  ;;  %v5181_v30 = vld [vmem:[#allocation15_spill] sm:$0xff]  ;;  %v5182_v52 = vld [vmem:[#allocation28_spill] sm:$0xff] }
 0x24b   :  { %v2014_v20 = vmul.f32 %v1972_v8, %v5178_v47  ;;  %v2015_v18 = vmul.f32 %v1976_v48, %v4604_v15  ;;  %v2016_v57 = vmul.f32 %v1980_v62, %v4661_v25  ;;  %v2017_v39 = vmul.f32 %v1984_v63, %v4628_v54 }
 0x24c   :  { %v2018_v29 = vmul.f32 %v1988_v56, %v4697_v41  ;;  %v4837_v32 = vmul.f32 %v1960_v9, %v5179_v50  ;;  %v4840_v35 = vmul.f32 %v1964_v0, %v5180_v23  ;;  %v4843_v27 = vmul.f32 %v1968_v5, %v5181_v30  ;;  %v5183_v50 = vld [vmem:[#allocation9_spill] sm:$0xff]  ;;  %v5184_v23 = vld [vmem:[#allocation22_spill] sm:$0xff] }
 0x24d   :  { %v4846_v49 = vmul.f32 %v1972_v8, %v5182_v52  ;;  %v4849_v15 = vmul.f32 %v1976_v48, %v4607_v60  ;;  %v4852_v25 = vmul.f32 %v1980_v62, %v4664_v11  ;;  %v4855_v54 = vmul.f32 %v1984_v63, %v4631_v10  ;;  %v5185_v52 = vld [vmem:[#allocation16_spill] sm:$0xff]  ;;  %v5187_v60 = vld [vmem:[#allocation29_spill] sm:$0xff] }
 0x24e   :  { %v4858_v41 = vmul.f32 %v1988_v56, %v4700_v17  ;;  %v4861_v47 = vmul.f32 %v1960_v9, %v5183_v50  ;;  %v4864_v30 = vmul.f32 %v1964_v0, %v5184_v23  ;;  %v4867_v21 = vmul.f32 %v1968_v5, %v5185_v52  ;;  %v5190_v23 = vld [vmem:[#allocation10_spill] sm:$0xff]  ;;  %v5191_v52 = vld [vmem:[#allocation23_spill] sm:$0xff] }
 0x24f   :  { %v4870_v28 = vmul.f32 %v1972_v8, %v5187_v60  ;;  %v4873_v11 = vmul.f32 %v1976_v48, %v4610_v12  ;;  %v4876_v10 = vmul.f32 %v1980_v62, %v4669_v36  ;;  %v4879_v17 = vmul.f32 %v1984_v63, %v4634_v42  ;;  %v5193_v60 = vld [vmem:[#allocation17_spill] sm:$0xff]  ;;  %v5195_v12 = vld [vmem:[#allocation30_spill] sm:$0xff] }
 0x250   :  { %5186 = vst [vmem:[#allocation13_spill] sm:$0xff] %v4867_v21  ;;  %v4882_v50 = vmul.f32 %v1988_v56, %v4705_v37  ;;  %v4885_v14 = vmul.f32 %v1960_v9, %v5190_v23  ;;  %v4888_v21 = vmul.f32 %v1964_v0, %v5191_v52  ;;  %v4897_v36 = vmul.f32 %v1976_v48, %v4612_v55  ;;  %v5198_v52 = vld [vmem:[#allocation11_spill] sm:$0xff] }
 0x251   :  { %5188 = vst [vmem:[#allocation26_spill] sm:$0xff] %v4870_v28  ;;  %5189 = vst [vmem:[#allocation7_spill] sm:$0xff] %v4873_v11  ;;  %v4891_v28 = vmul.f32 %v1968_v5, %v5193_v60  ;;  %v4894_v11 = vmul.f32 %v1972_v8, %v5195_v12  ;;  %v4900_v42 = vmul.f32 %v1980_v62, %v4672_v4  ;;  %v5199_v60 = vld [vmem:[#allocation24_spill] sm:$0xff]  ;;  %v5201_v12 = vld [vmem:[#allocation18_spill] sm:$0xff] }
 0x252   :  { %5192 = vst [vmem:[#allocation20_spill] sm:$0xff] %v4888_v21  ;;  %5197 = vst [vmem:[#allocation8_spill] sm:$0xff] %v4897_v36  ;;  %v4903_v37 = vmul.f32 %v1984_v63, %v4637_v19  ;;  %v4906_v23 = vmul.f32 %v1988_v56, %v4708_v61  ;;  %v4909_v21 = vmul.f32 %v1960_v9, %v5198_v52  ;;  %v5203_v55 = vld [vmem:[#allocation31_spill] sm:$0xff] }
 0x253   :  { %5194 = vst [vmem:[#allocation14_spill] sm:$0xff] %v4891_v28  ;;  %5196 = vst [vmem:[#allocation27_spill] sm:$0xff] %v4894_v11  ;;  %v4912_v28 = vmul.f32 %v1964_v0, %v5199_v60  ;;  %v4915_v11 = vmul.f32 %v1968_v5, %v5201_v12  ;;  %v4918_v36 = vmul.f32 %v1972_v8, %v5203_v55  ;;  %v5209_v60 = vld [vmem:[#allocation12_spill] sm:$0xff]  ;;  %v5210_v12 = vld [vmem:[#allocation25_spill] sm:$0xff] }
 0x254   :  { %v4921_v4 = vmul.f32 %v1976_v48, %v4614_v31  ;;  %v4924_v19 = vmul.f32 %v1980_v62, %v4675_v40  ;;  %v4927_v61 = vmul.f32 %v1984_v63, %v4639_v34  ;;  %v4930_v52 = vmul.f32 %v1988_v56, %v4711_v53  ;;  %v5211_v55 = vld [vmem:[#allocation19_spill] sm:$0xff]  ;;  %v5212_v31 = vld [vmem:[#allocation32_spill] sm:$0xff]  ;;  %v5213_v40 = vld [vmem:[#allocation33_spill] sm:$0xff] }
 0x255   :  { %5200 = vst [vmem:[#allocation21_spill] sm:$0xff] %v4912_v28  ;;  %5202 = vst [vmem:[#allocation15_spill] sm:$0xff] %v4915_v11  ;;  %v4933_v28 = vmul.f32 %v1960_v9, %v5209_v60  ;;  %v4936_v11 = vmul.f32 %v1964_v0, %v5210_v12  ;;  %v5214_v34 = vld [vmem:[#allocation35_spill] sm:$0xff]  ;;  %v5215_v53 = vld [vmem:[#allocation34_spill] sm:$0xff]  ;;  %v2114_v0 = vadd.f32 %v4794_v26, %v2002_v44 }
 0x256   :  { %5204 = vst [vmem:[#allocation28_spill] sm:$0xff] %v4918_v36  ;;  %5205 = vst [vmem:[#allocation9_spill] sm:$0xff] %v4921_v4  ;;  %v4939_v36 = vmul.f32 %v1968_v5, %v5211_v55  ;;  %v4942_v4 = vmul.f32 %v1972_v8, %v5212_v31  ;;  %v5216_v9 = vld [vmem:[#allocation36_spill] sm:$0xff]  ;;  %v2115_v5 = vadd.f32 %v4797_v59, %v2003_v58 }
 0x257   :  { %5206 = vst [vmem:[#allocation22_spill] sm:$0xff] %v4924_v19  ;;  %5207 = vst [vmem:[#allocation16_spill] sm:$0xff] %v4927_v61  ;;  %v4945_v19 = vmul.f32 %v1976_v48, %v5213_v40  ;;  %v4948_v61 = vmul.f32 %v1980_v62, %v5214_v34  ;;  %v4954_v60 = vmul.f32 %v1988_v56, %v5216_v9 }
 0x258   :  { %5208 = vst [vmem:[#allocation29_spill] sm:$0xff] %v4930_v52  ;;  %v4951_v52 = vmul.f32 %v1984_v63, %v5215_v53  ;;  %v2116_v12 = vadd.f32 %v4799_v3, %v2004_v38  ;;  %v2117_v8 = vadd.f32 %v4803_v6, %v2005_v46  ;;  %v2118_v48 = vadd.f32 %v4805_v22, %v2006_v33 }
 0x259   :  { %v2119_v55 = vadd.f32 %v4807_v2, %v2007_v13  ;;  %v2120_v62 = vadd.f32 %v4809_v51, %v2008_v43  ;;  %v2121_v63 = vadd.f32 %v4811_v16, %v2009_v7  ;;  %v2123_v31 = vadd.f32 %v4794_v26, %v2011_v45  ;;  %2177 = vst [vmem:[#allocation2] sm:$0xff] %v2114_v0  ;;  %v5220_v40 = vld [vmem:[#allocation20_spill] sm:$0xff] }
 0x25a   :  { %v2124_v56 = vadd.f32 %v4797_v59, %v2012_v24  ;;  %v2125_v44 = vadd.f32 %v4799_v3, %v2013_v1  ;;  %v2126_v58 = vadd.f32 %v4803_v6, %v2014_v20  ;;  %2178 = vst [vmem:[#allocation2 + $0x8] sm:$0xff] %v2115_v5  ;;  %2179 = vst [vmem:[#allocation2 + $0x10] sm:$0xff] %v2116_v12  ;;  %v5221_v53 = vld [vmem:[#allocation14_spill] sm:$0xff] }
 0x25b   :  { %2180 = vst [vmem:[#allocation2 + $0x18] sm:$0xff] %v2117_v8  ;;  %v2127_v46 = vadd.f32 %v4805_v22, %v2015_v18  ;;  %v2128_v13 = vadd.f32 %v4807_v2, %v2016_v57  ;;  %v2129_v38 = vadd.f32 %v4809_v51, %v2017_v39  ;;  %v2130_v33 = vadd.f32 %v4811_v16, %v2018_v29  ;;  %v5217_v39 = vld [vmem:[#allocation13_spill] sm:$0xff] }
 0x25c   :  { %2181 = vst [vmem:[#allocation2 + $0x20] sm:$0xff] %v2118_v48  ;;  %2182 = vst [vmem:[#allocation2 + $0x28] sm:$0xff] %v2119_v55  ;;  %v2132_v43 = vadd.f32 %v4794_v26, %v4837_v32  ;;  %v2133_v7 = vadd.f32 %v4797_v59, %v4840_v35  ;;  %v2134_v45 = vadd.f32 %v4799_v3, %v4843_v27  ;;  %v5218_v32 = vld [vmem:[#allocation26_spill] sm:$0xff]  ;;  %v5224_v48 = vld [vmem:[#allocation21_spill] sm:$0xff] }
 0x25d   :  { %2183 = vst [vmem:[#allocation2 + $0x30] sm:$0xff] %v2120_v62  ;;  %2184 = vst [vmem:[#allocation2 + $0x38] sm:$0xff] %v2121_v63  ;;  %v2135_v24 = vadd.f32 %v4803_v6, %v4846_v49  ;;  %v2136_v1 = vadd.f32 %v4805_v22, %v4849_v15  ;;  %v2137_v20 = vadd.f32 %v4807_v2, %v4852_v25  ;;  %v5219_v15 = vld [vmem:[#allocation7_spill] sm:$0xff] }
 0x25e   :  { %2186 = vst [vmem:[#allocation2 + $0x48] sm:$0xff] %v2123_v31  ;;  %2187 = vst [vmem:[#allocation2 + $0x50] sm:$0xff] %v2124_v56  ;;  %v2138_v18 = vadd.f32 %v4809_v51, %v4855_v54  ;;  %v2139_v35 = vadd.f32 %v4811_v16, %v4858_v41  ;;  %v2141_v49 = vadd.f32 %v4794_v26, %v4861_v47  ;;  %v5225_v62 = vld [vmem:[#allocation15_spill] sm:$0xff]  ;;  %v5228_v56 = vld [vmem:[#allocation22_spill] sm:$0xff] }
 0x25f   :  { %2188 = vst [vmem:[#allocation2 + $0x58] sm:$0xff] %v2125_v44  ;;  %2189 = vst [vmem:[#allocation2 + $0x60] sm:$0xff] %v2126_v58  ;;  %v2142_v57 = vadd.f32 %v4797_v59, %v4864_v30  ;;  %v2143_v29 = vadd.f32 %v4799_v3, %v5217_v39  ;;  %v2144_v27 = vadd.f32 %v4803_v6, %v5218_v32  ;;  %v5235_v39 = vld [vmem:[#allocation37_spill] sm:$0xff]  ;;  %v5236_v32 = vld [vmem:[#allocation38_spill] sm:$0xff] }
 0x260   :  { %2190 = vst [vmem:[#allocation2 + $0x68] sm:$0xff] %v2127_v46  ;;  %2191 = vst [vmem:[#allocation2 + $0x70] sm:$0xff] %v2128_v13  ;;  %v2145_v25 = vadd.f32 %v4805_v22, %v5219_v15  ;;  %v2146_v54 = vadd.f32 %v4807_v2, %v4876_v10  ;;  %v2147_v41 = vadd.f32 %v4809_v51, %v4879_v17  ;;  %v5222_v10 = vld [vmem:[#allocation27_spill] sm:$0xff]  ;;  %v5223_v17 = vld [vmem:[#allocation8_spill] sm:$0xff] }
 0x261   :  { %2192 = vst [vmem:[#allocation2 + $0x78] sm:$0xff] %v2129_v38  ;;  %2193 = vst [vmem:[#allocation2 + $0x80] sm:$0xff] %v2130_v33  ;;  %v2148_v47 = vadd.f32 %v4811_v16, %v4882_v50  ;;  %v2150_v30 = vadd.f32 %v4794_v26, %v4885_v14  ;;  %v2151_v34 = vadd.f32 %v4797_v59, %v5220_v40  ;;  %v5230_v46 = vld [vmem:[#allocation29_spill] sm:$0xff]  ;;  %v5237_v15 = vld [vmem:[#allocation39_spill] sm:$0xff] }
 0x262   :  { %2195 = vst [vmem:[#allocation2 + $0x90] sm:$0xff] %v2132_v43  ;;  %2196 = vst [vmem:[#allocation2 + $0x98] sm:$0xff] %v2133_v7  ;;  %v2152_v9 = vadd.f32 %v4799_v3, %v5221_v53  ;;  %v2153_v0 = vadd.f32 %v4803_v6, %v5222_v10  ;;  %v2154_v50 = vadd.f32 %v4805_v22, %v5223_v17  ;;  %v5240_v40 = vld [vmem:[#allocation42_spill] sm:$0xff]  ;;  %v5241_v53 = vld [vmem:[#allocation43_spill] sm:$0xff] }
 0x263   :  { %2197 = vst [vmem:[#allocation2 + $0xa0] sm:$0xff] %v2134_v45  ;;  %2198 = vst [vmem:[#allocation2 + $0xa8] sm:$0xff] %v2135_v24  ;;  %v2155_v5 = vadd.f32 %v4807_v2, %v4900_v42  ;;  %v2156_v14 = vadd.f32 %v4809_v51, %v4903_v37  ;;  %v2157_v12 = vadd.f32 %v4811_v16, %v4906_v23  ;;  %v5226_v42 = vld [vmem:[#allocation28_spill] sm:$0xff]  ;;  %v5227_v37 = vld [vmem:[#allocation9_spill] sm:$0xff] }
 0x264   :  { %2199 = vst [vmem:[#allocation2 + $0xb0] sm:$0xff] %v2136_v1  ;;  %2200 = vst [vmem:[#allocation2 + $0xb8] sm:$0xff] %v2137_v20  ;;  %v2159_v8 = vadd.f32 %v4794_v26, %v4909_v21  ;;  %v2160_v55 = vadd.f32 %v4797_v59, %v5224_v48  ;;  %v2161_v63 = vadd.f32 %v4799_v3, %v5225_v62  ;;  %v5229_v21 = vld [vmem:[#allocation16_spill] sm:$0xff]  ;;  %v1860_v1 = vld [vmem:[%s5086_s4 + $0x8] sm:$0x1]  ;;  %s2838_s4 = scalar_lea.vmem %s2246_s19, 8064 }
 0x265   :  { %2201 = vst [vmem:[#allocation2 + $0xc0] sm:$0xff] %v2138_v18  ;;  %2202 = vst [vmem:[#allocation2 + $0xc8] sm:$0xff] %v2139_v35  ;;  %v2162_v31 = vadd.f32 %v4803_v6, %v5226_v42  ;;  %v2163_v23 = vadd.f32 %v4805_v22, %v5227_v37  ;;  %v2164_v44 = vadd.f32 %v4807_v2, %v5228_v56  ;;  %v5234_v35 = vld [vmem:[#allocation6_spill] sm:$0xff]  ;;  %p2839_p0 = scmp.ne.s32.totalorder %s2246_s19, %s2838_s4  ;;  %p2844_p2 = scmp.lt.s32.totalorder %s2838_s4, %s2838_s4 }
 0x266   :  { %2204 = vst [vmem:[#allocation2 + $0xd8] sm:$0xff] %v2141_v49  ;;  %2205 = vst [vmem:[#allocation2 + $0xe0] sm:$0xff] %v2142_v57  ;;  %v2165_v58 = vadd.f32 %v4809_v51, %v5229_v21  ;;  %v2166_v13 = vadd.f32 %v4811_v16, %v5230_v46  ;;  %v2168_v38 = vadd.f32 %v4794_v26, %v4933_v28  ;;  %v2435_v57 = vld [vmem:[%s5087_s5 + $0x8] ss:$0 sm:$0xff] }
 0x267   :  { %2206 = vst [vmem:[#allocation2 + $0xe8] sm:$0xff] %v2143_v29  ;;  %2207 = vst [vmem:[#allocation2 + $0xf0] sm:$0xff] %v2144_v27  ;;  %v2169_v33 = vadd.f32 %v4797_v59, %v4936_v11  ;;  %v2170_v43 = vadd.f32 %v4799_v3, %v4939_v36  ;;  %v2171_v7 = vadd.f32 %v4803_v6, %v4942_v4  ;;  %v5231_v3 = vld [vmem:[#allocation44_spill] sm:$0xff]  ;;  %v5232_v6 = vld [vmem:[#allocation45_spill] sm:$0xff]  ;;  %p2845_p3 = por %p2844_p2, %p2843_p1 }
 0x268   :  { %2208 = vst [vmem:[#allocation2 + $0xf8] sm:$0xff] %v2145_v25  ;;  %2209 = vst [vmem:[#allocation2 + $0x100] sm:$0xff] %v2146_v54  ;;  %v2172_v45 = vadd.f32 %v4805_v22, %v4945_v19  ;;  %v2173_v24 = vadd.f32 %v4807_v2, %v4948_v61  ;;  %v2174_v26 = vadd.f32 %v4809_v51, %v4951_v52  ;;  %v5233_v52 = vld [vmem:[#allocation5_spill] sm:$0xff]  ;;  %v5238_v54 = vld [vmem:[#allocation40_spill] sm:$0xff] }
 0x269   :  { %2210 = vst [vmem:[#allocation2 + $0x108] sm:$0xff] %v2147_v41  ;;  %2211 = vst [vmem:[#allocation2 + $0x110] sm:$0xff] %v2148_v47  ;;  %v2175_v59 = vadd.f32 %v4811_v16, %v4954_v60  ;;  %v1843_v22 = vadd.f32 %v5232_v6, %v5231_v3  ;;  %v5239_v47 = vld [vmem:[#allocation41_spill] sm:$0xff]  ;;  %p2846_p4 = pnand %p2845_p3, %p2839_p0 }
 0x26a   :  { %2213 = vst [vmem:[#allocation2 + $0x120] sm:$0xff] %v2150_v30  ;;  %2214 = vst [vmem:[#allocation2 + $0x128] sm:$0xff] %v2151_v34 }
 0x26b   :  { %2215 = vst [vmem:[#allocation2 + $0x130] sm:$0xff] %v2152_v9  ;;  %2216 = vst [vmem:[#allocation2 + $0x138] sm:$0xff] %v2153_v0  ;;  %v1844_v2 = vrot.slane %v1843_v22, 4 }
 0x26c   :  { %2217 = vst [vmem:[#allocation2 + $0x140] sm:$0xff] %v2154_v50  ;;  %2218 = vst [vmem:[#allocation2 + $0x148] sm:$0xff] %v2155_v5 }
 0x26d   :  { %2219 = vst [vmem:[#allocation2 + $0x150] sm:$0xff] %v2156_v14  ;;  %2220 = vst [vmem:[#allocation2 + $0x158] sm:$0xff] %v2157_v12  ;;  %v1845_v51 = vadd.f32 %v1844_v2, %v1843_v22 }
 0x26e   :  { %2222 = vst [vmem:[#allocation2 + $0x168] sm:$0xff] %v2159_v8  ;;  %2223 = vst [vmem:[#allocation2 + $0x170] sm:$0xff] %v2160_v55 }
 0x26f   :  { %2224 = vst [vmem:[#allocation2 + $0x178] sm:$0xff] %v2161_v63  ;;  %2225 = vst [vmem:[#allocation2 + $0x180] sm:$0xff] %v2162_v31  ;;  %v1846_v28 = vrot.slane %v1845_v51, 2 }
 0x270   :  { %2226 = vst [vmem:[#allocation2 + $0x188] sm:$0xff] %v2163_v23  ;;  %2227 = vst [vmem:[#allocation2 + $0x190] sm:$0xff] %v2164_v44 }
 0x271   :  { %2228 = vst [vmem:[#allocation2 + $0x198] sm:$0xff] %v2165_v58  ;;  %2229 = vst [vmem:[#allocation2 + $0x1a0] sm:$0xff] %v2166_v13  ;;  %v1847_v11 = vadd.f32 %v1846_v28, %v1845_v51 }
 0x272   :  { %2231 = vst [vmem:[#allocation2 + $0x1b0] sm:$0x1] %v2168_v38  ;;  %2232 = vst [vmem:[#allocation2 + $0x1b8] sm:$0x1] %v2169_v33 }
 0x273   :  { %2233 = vst [vmem:[#allocation2 + $0x1c0] sm:$0x1] %v2170_v43  ;;  %2234 = vst [vmem:[#allocation2 + $0x1c8] sm:$0x1] %v2171_v7  ;;  %v1848_v16 = vrot.slane %v1847_v11, 1 }
 0x274   :  { %2235 = vst [vmem:[#allocation2 + $0x1d0] sm:$0x1] %v2172_v45  ;;  %2236 = vst [vmem:[#allocation2 + $0x1d8] sm:$0x1] %v2173_v24 }
 0x275   :  { %2237 = vst [vmem:[#allocation2 + $0x1e0] sm:$0x1] %v2174_v26  ;;  %2238 = vst [vmem:[#allocation2 + $0x1e8] sm:$0x1] %v2175_v59  ;;  %v1849_v36 = vadd.f32 %v1848_v16, %v1847_v11 }
 0x277   :  { %v1858_v4 = vmul.f32 0.020408163, %v1849_v36 }
 0x279   :  { %v1869_v19 = vadd.f32 1e-05, %v1858_v4 }
 0x27b   :  { %2836 = vrsqrt.f32 %v1869_v19 }
 0x285   :  { %v2837_v61 = vpop.eup %2836 }
 0x286   :  { %v1943_v60 = vrot.slane %v2837_v61, %v5233_v52 }
 0x288   :  { %v1950_v20 = vrot.slane %v1943_v60, %v5233_v52 }
 0x28a   :  { %v1954_v18 = vmul.f32 %v1950_v20, %v1860_v1 }
 0x28c   :  { %v1992_v49 = vrot.slane %v1954_v18, %v5234_v35 }
 0x28e   :  { %v2010_v29 = vmul.f32 %v1992_v49, %v5235_v39  ;;  %v2019_v27 = vmul.f32 %v1992_v49, %v5236_v32  ;;  %v2028_v25 = vmul.f32 %v1992_v49, %v5237_v15  ;;  %v2037_v41 = vmul.f32 %v1992_v49, %v5238_v54 }
 0x28f   :  { %v2046_v30 = vmul.f32 %v1992_v49, %v5239_v47  ;;  %v2055_v34 = vmul.f32 %v1992_v49, %v5240_v40  ;;  %v2064_v9 = vmul.f32 %v1992_v49, %v5241_v53 }
 0x290   :  { %v2122_v10 = vadd.f32 %v2435_v57, %v2010_v29  ;;  %v2131_v0 = vadd.f32 %v2435_v57, %v2019_v27  ;;  %v2140_v17 = vadd.f32 %v2435_v57, %v2028_v25  ;;  %v2149_v50 = vadd.f32 %v2435_v57, %v2037_v41 }
 0x291   :  { %v2158_v5 = vadd.f32 %v2435_v57, %v2046_v30  ;;  %v2167_v14 = vadd.f32 %v2435_v57, %v2055_v34  ;;  %v2176_v12 = vadd.f32 %v2435_v57, %v2064_v9 }
 0x292   :  { %2185 = vst [vmem:[#allocation2 + $0x40] sm:$0xff] %v2122_v10  ;;  %2194 = vst [vmem:[#allocation2 + $0x88] sm:$0xff] %v2131_v0 }
 0x293   :  { %2203 = vst [vmem:[#allocation2 + $0xd0] sm:$0xff] %v2140_v17  ;;  %2212 = vst [vmem:[#allocation2 + $0x118] sm:$0xff] %v2149_v50 }
 0x294   :  { %2221 = vst [vmem:[#allocation2 + $0x160] sm:$0xff] %v2158_v5  ;;  %2230 = vst [vmem:[#allocation2 + $0x1a8] sm:$0xff] %v2167_v14 }
 0x295   :  { %2239 = vst [vmem:[#allocation2 + $0x1f0] sm:$0x1] %v2176_v12 }
 0x296   :  { %2849 = shalt.err (!%p2846_p4)
}
 0x297   :  { %s2850_s21 = scalar_lea.hbm %s5088_s6, 8064 }
 0x298   :  { %p2851_p5 = scmp.ne.s32.totalorder %s5088_s6, %s2850_s21  ;;  %p2854_p6 = scmp.lt.u32.totalorder %s2850_s21, %s5088_s6 }
 0x29a   :  { %p2856_p7 = pnand %p2854_p6, %p2851_p5 }
 0x29c   :  { %2859 = shalt.err (!%p2856_p7)
}
 0x29d   :  { %s2864_s24 = smov 1152   ;;  %s2865_s25 = smov 72  }
 0x29e   :  { %2251 = dma.vmem_to_hbm [thread:$0]  %s2246_s19, 8064, %s5088_s6, [#allocation3], %s2864_s24, %s2864_s24, %s2865_s25  }
 0x29f   :  { %2860 = dma.done.wait [#allocation3], 8064  }
 0x2a0   :  { %2861 = vsyncadd [#allocation3], 4294959232 }
 0x2a1   :  { %2255 = vsyncpa [#allocation3], 1 }

</bundles_post_ra>
